<compile_context>
chip_gen: v7x
topology: tpu7x:2x2x1
jax: 0.10.0
libtpu: 0.0.40
codegen_flags: <defaults>
</compile_context>

<pallas_src>
import functools

import jax
import jax.numpy as jnp
from jax.experimental import pallas as pl
from jax.experimental.pallas import tpu as pltpu


# ---------------------------------------------------------------------------
# Python-side bookkeeping (pure logging, no compute) — kept for parity.
# ---------------------------------------------------------------------------
class _SilentLogger:
    def info(self, *a, **k): pass
    def warning(self, *a, **k): pass


class DataCapsule:
    def __init__(self, name, logger):
        self.name, self.logger, self.iepoch, self.ready = name, logger, -1, False

    def _epoch(self, iepoch):
        if self.iepoch != iepoch:
            self.iepoch, self.ready = iepoch, True
    epoch = property(fset=_epoch)

    def __call__(self, **kwargs):
        if self.ready:
            self.logger.info(f"({self.name} MRR) {kwargs} @epoch {self.iepoch}")
            self.ready = False


class DataMonitor:
    def __init__(self, logger):
        self.logger, self.capsules = logger, {}

    def register(self, owner): self.capsules[owner] = DataCapsule(owner, self.logger)

    def update_epoch(self, iepoch):
        for v in self.capsules.values():
            v.epoch = iepoch

    def update_data(self, owner, **kwargs): self.capsules[owner](**kwargs)


# ---------------------------------------------------------------------------
# Mini BART-like dims
# ---------------------------------------------------------------------------
PAD_ID, BOS_ID = 1, 0
V, D, H, F, MAXLEN = 128, 64, 2, 128, 32
DH = D // H
SCALE = DH ** -0.5
NEG = -1e9
LN_EPS = 1e-5
OUT_LANES = 128     # lane-dense per-batch stats row: [loss_sum, n_valid, 0, ...]


# ---------------------------------------------------------------------------
# In-kernel math helpers (traced inside the single fused kernel)
# ---------------------------------------------------------------------------
def _erf(x):
    # Abramowitz & Stegun 7.1.26 (|err| < 1.5e-7): exact-style GELU without
    # relying on lax.erf lowering; VPU ops + one EUP exp.
    a1, a2, a3, a4, a5 = 0.254829592, -0.284496736, 1.421413741, -1.453152027, 1.061405429
    p = 0.3275911
    s = jnp.where(x >= 0.0, 1.0, -1.0)
    ax = jnp.abs(x)
    t = 1.0 / (1.0 + p * ax)
    poly = ((((a5 * t + a4) * t + a3) * t + a2) * t + a1) * t
    return s * (1.0 - poly * jnp.exp(-ax * ax))


def _gelu(x):
    return 0.5 * x * (1.0 + _erf(x * 0.7071067811865476))


def _layernorm(x, ln_ref):
    mu = jnp.mean(x, axis=-1, keepdims=True)
    var = jnp.mean((x - mu) ** 2, axis=-1, keepdims=True)
    y = (x - mu) * jax.lax.rsqrt(var + LN_EPS)
    lnp = ln_ref[...]                        # (2, D): row 0 = gamma, row 1 = beta
    return y * lnp[0:1, :] + lnp[1:2, :]


def _mha(q, k, v, wo_ref, bo_ref, mask_add):
    # q: (Sq, D), k/v: (Sk, D).  Heads are static lane slices — no transposes.
    Sq = q.shape[0]
    wo = wo_ref[...]
    out = jnp.zeros((Sq, D), jnp.float32)
    for h in range(H):
        sl = slice(h * DH, (h + 1) * DH)
        qh, kh, vh = q[:, sl], k[:, sl], v[:, sl]
        # q @ k^T via dot_general contracting dim 1 of both (MXU-native NT).
        s = jax.lax.dot_general(qh, kh, (((1,), (1,)), ((), ())),
                                preferred_element_type=jnp.float32) * SCALE
        s = s + mask_add
        s = s - jnp.max(s, axis=-1, keepdims=True)
        p = jnp.exp(s)
        p = p / jnp.sum(p, axis=-1, keepdims=True)   # exact softmax (no approx recip)
        oh = jnp.dot(p, vh, preferred_element_type=jnp.float32)
        # Wo applied to concat(heads) == sum_h (head_h @ Wo[h*DH:(h+1)*DH, :])
        out = out + jnp.dot(oh, wo[sl, :], preferred_element_type=jnp.float32)
    return out + bo_ref[...]


def _embed(ids_col, S, emb, pos):
    # ids_col: (S, 1) int32 -> embedding gather as a one-hot MXU matmul.
    onehot = (jax.lax.broadcasted_iota(jnp.int32, (S, V), 1) == ids_col).astype(jnp.float32)
    return jnp.dot(onehot, emb, preferred_element_type=jnp.float32) + pos[0:S, :]


# ---------------------------------------------------------------------------
# The single fused kernel: one grid point per batch element
# ---------------------------------------------------------------------------
def _fused_seq2seq_kernel(
        ids_e_ref, amask_e_ref, ids_d_ref, amask_d_ref, lab_ref,   # per-batch tokens
        emb_ref, pos_ref,
        e_wqkv, e_bqkv, e_wo, e_bo, e_ln1,
        e_fc1w, e_fc1b, e_fc2w, e_fc2b, e_ln2,
        s_wqkv, s_bqkv, s_wo, s_bo, s_ln,
        c_wq, c_bq, c_wkv, c_bkv, c_wo, c_bo, c_ln,
        f_fc1w, f_fc1b, f_fc2w, f_fc2b, f_ln,
        out_ref, *, Se, Sd):
    ids_e = ids_e_ref[0]          # (Se, 1) int32
    ids_d = ids_d_ref[0]          # (Sd, 1) int32
    lab = lab_ref[0]              # (Sd, 1) int32
    am_e = amask_e_ref[0]         # (1, Se) int32
    am_d = amask_d_ref[0]         # (1, Sd) int32

    emb = emb_ref[...]            # (V, D)
    pos = pos_ref[...]            # (MAXLEN, D)

    # Additive key-padding mask built in-kernel (broadcast over query rows).
    enc_key_mask = jnp.where(am_e > 0, 0.0, NEG)                     # (1, Se)

    # ---------------- encoder layer --------------------------------------
    x = _embed(ids_e, Se, emb, pos)                                  # (Se, D)
    qkv = jnp.dot(x, e_wqkv[...], preferred_element_type=jnp.float32) + e_bqkv[...]
    q, k, v = qkv[:, 0:D], qkv[:, D:2 * D], qkv[:, 2 * D:3 * D]
    x = _layernorm(x + _mha(q, k, v, e_wo, e_bo, enc_key_mask), e_ln1)
    hdn = _gelu(jnp.dot(x, e_fc1w[...], preferred_element_type=jnp.float32) + e_fc1b[...])
    x = _layernorm(
        x + jnp.dot(hdn, e_fc2w[...], preferred_element_type=jnp.float32) + e_fc2b[...],
        e_ln2)
    h_x = x    # encoder last hidden state (stays in VMEM; subword_net is None)

    # ---------------- decoder layer --------------------------------------
    y = _embed(ids_d, Sd, emb, pos)                                  # (Sd, D)
    row = jax.lax.broadcasted_iota(jnp.int32, (Sd, Sd), 0)
    col = jax.lax.broadcasted_iota(jnp.int32, (Sd, Sd), 1)
    self_mask = jnp.where(jnp.logical_and(row >= col, am_d > 0), 0.0, NEG)  # (Sd, Sd)

    qkv = jnp.dot(y, s_wqkv[...], preferred_element_type=jnp.float32) + s_bqkv[...]
    q, k, v = qkv[:, 0:D], qkv[:, D:2 * D], qkv[:, 2 * D:3 * D]
    y = _layernorm(y + _mha(q, k, v, s_wo, s_bo, self_mask), s_ln)

    q = jnp.dot(y, c_wq[...], preferred_element_type=jnp.float32) + c_bq[...]
    kv = jnp.dot(h_x, c_wkv[...], preferred_element_type=jnp.float32) + c_bkv[...]
    k, v = kv[:, 0:D], kv[:, D:2 * D]
    y = _layernorm(y + _mha(q, k, v, c_wo, c_bo, enc_key_mask), c_ln)

    hdn = _gelu(jnp.dot(y, f_fc1w[...], preferred_element_type=jnp.float32) + f_fc1b[...])
    y = _layernorm(
        y + jnp.dot(hdn, f_fc2w[...], preferred_element_type=jnp.float32) + f_fc2b[...],
        f_ln)
    # y == decoder last hidden state (coref_mrl is None -> only used by LM head)

    # ---------------- tied LM head + masked token cross-entropy ----------
    # h_y (Sd, D) x emb (V, D) contracting dim 1 of both — no host-side emb.T.
    logits = jax.lax.dot_general(y, emb, (((1,), (1,)), ((), ())),
                                 preferred_element_type=jnp.float32)  # (Sd, V)
    mx = jnp.max(logits, axis=-1, keepdims=True)
    lse = jnp.log(jnp.sum(jnp.exp(logits - mx), axis=-1, keepdims=True)) + mx
    hit = jax.lax.broadcasted_iota(jnp.int32, (Sd, V), 1) == lab
    tgt = jnp.sum(jnp.where(hit, logits, 0.0), axis=-1, keepdims=True)
    nll = lse - tgt                                                   # (Sd, 1)
    # ignore PAD_ID and any negative (-100 style) label
    valid = jnp.logical_and(lab != PAD_ID, lab >= 0).astype(jnp.float32)

    loss_sum = jnp.sum(nll * valid)
    n_valid = jnp.sum(valid)

    lane = jax.lax.broadcasted_iota(jnp.int32, (1, 1, OUT_LANES), 2)
    out_ref[...] = (jnp.where(lane == 0, loss_sum, 0.0)
                    + jnp.where(lane == 1, n_valid, 0.0))


# ---------------------------------------------------------------------------
# Parameters
# ---------------------------------------------------------------------------
def _dense(key, fan_in, fan_out):
    w = jax.random.normal(key, (fan_in, fan_out), jnp.float32) * (fan_in ** -0.5)
    return w, jnp.zeros((1, fan_out), jnp.float32)


def _ln_param():
    return jnp.concatenate(
        [jnp.ones((1, D), jnp.float32), jnp.zeros((1, D), jnp.float32)], axis=0)


def init_params(key):
    ks = jax.random.split(key, 16)
    e_wqkv, e_bqkv = _dense(ks[2], D, 3 * D)
    e_wo, e_bo = _dense(ks[3], D, D)
    e_f1w, e_f1b = _dense(ks[4], D, F)
    e_f2w, e_f2b = _dense(ks[5], F, D)
    s_wqkv, s_bqkv = _dense(ks[6], D, 3 * D)
    s_wo, s_bo = _dense(ks[7], D, D)
    c_wq, c_bq = _dense(ks[8], D, D)
    c_wkv, c_bkv = _dense(ks[9], D, 2 * D)
    c_wo, c_bo = _dense(ks[10], D, D)
    d_f1w, d_f1b = _dense(ks[11], D, F)
    d_f2w, d_f2b = _dense(ks[12], F, D)
    return {
        "emb": jax.random.normal(ks[0], (V, D), jnp.float32) * 0.02,
        "pos": jax.random.normal(ks[1], (MAXLEN, D), jnp.float32) * 0.02,
        "enc": {"wqkv": e_wqkv, "bqkv": e_bqkv, "wo": e_wo, "bo": e_bo,
                "ln1": _ln_param(), "fc1_w": e_f1w, "fc1_b": e_f1b,
                "fc2_w": e_f2w, "fc2_b": e_f2b, "ln2": _ln_param()},
        "dec_self": {"wqkv": s_wqkv, "bqkv": s_bqkv, "wo": s_wo, "bo": s_bo,
                     "ln": _ln_param()},
        "dec_cross": {"wq": c_wq, "bq": c_bq, "wkv": c_wkv, "bkv": c_bkv,
                      "wo": c_wo, "bo": c_bo, "ln": _ln_param()},
        "dec_ffn": {"fc1_w": d_f1w, "fc1_b": d_f1b, "fc2_w": d_f2w,
                    "fc2_b": d_f2b, "ln": _ln_param()},
    }


def _weight_list(p):
    e, s, c, f = p["enc"], p["dec_self"], p["dec_cross"], p["dec_ffn"]
    return [
        p["emb"], p["pos"],
        e["wqkv"], e["bqkv"], e["wo"], e["bo"], e["ln1"],
        e["fc1_w"], e["fc1_b"], e["fc2_w"], e["fc2_b"], e["ln2"],
        s["wqkv"], s["bqkv"], s["wo"], s["bo"], s["ln"],
        c["wq"], c["bq"], c["wkv"], c["bkv"], c["wo"], c["bo"], c["ln"],
        f["fc1_w"], f["fc1_b"], f["fc2_w"], f["fc2_b"], f["ln"],
    ]


# ---------------------------------------------------------------------------
# Forward wrapper: exactly one pallas_call for the whole forward
# ---------------------------------------------------------------------------
def seq2seq_forward(params, input_ids, attention_mask,
                    decoder_input_ids, decoder_attention_mask, labels):
    B, Se = input_ids.shape
    Sd = decoder_input_ids.shape[1]

    # Host-side glue is metadata-only reshapes of the small int token tensors;
    # masks / one-hot embeddings are built inside the kernel.
    ids_e = input_ids.astype(jnp.int32)[:, :, None]                  # (B, Se, 1)
    am_e = attention_mask.astype(jnp.int32)[:, None, :]              # (B, 1, Se)
    ids_d = decoder_input_ids.astype(jnp.int32)[:, :, None]          # (B, Sd, 1)
    am_d = decoder_attention_mask.astype(jnp.int32)[:, None, :]      # (B, 1, Sd)
    lab = labels.astype(jnp.int32)[:, :, None]                       # (B, Sd, 1)

    weights = _weight_list(params)

    tok_specs = [
        pl.BlockSpec((1, Se, 1), lambda b: (b, 0, 0)),
        pl.BlockSpec((1, 1, Se), lambda b: (b, 0, 0)),
        pl.BlockSpec((1, Sd, 1), lambda b: (b, 0, 0)),
        pl.BlockSpec((1, 1, Sd), lambda b: (b, 0, 0)),
        pl.BlockSpec((1, Sd, 1), lambda b: (b, 0, 0)),
    ]
    # all weights are 2-D full-array blocks; constant index_map keeps them
    # resident in VMEM across the whole grid (DMA'd once).
    w_specs = [pl.BlockSpec(w.shape, lambda b: (0, 0)) for w in weights]

    stats = pl.pallas_call(
        functools.partial(_fused_seq2seq_kernel, Se=Se, Sd=Sd),
        out_shape=jax.ShapeDtypeStruct((B, 1, OUT_LANES), jnp.float32),
        grid=(B,),
        in_specs=tok_specs + w_specs,
        out_specs=pl.BlockSpec((1, 1, OUT_LANES), lambda b: (b, 0, 0)),
        compiler_params=pltpu.CompilerParams(
            dimension_semantics=("parallel",)),   # v7x: 2 TCs split the batch
    )(ids_e, am_e, ids_d, am_d, lab, *weights)

    loss_sum = jnp.sum(stats[:, 0, 0])
    n_valid = jnp.sum(stats[:, 0, 1])
    return loss_sum / jnp.maximum(n_valid, 1.0)


# ---------------------------------------------------------------------------
# Model.forward equivalent
# ---------------------------------------------------------------------------
class Model:
    def __init__(self, params, logger=None):
        self.params = params
        self.data_monitor = DataMonitor(logger or _SilentLogger())
        self.subword_net = None      # 'subword' in exclude_modules
        self.coref_mrl = None        # 'coref_mrl' in exclude_modules
        self._fwd = jax.jit(seq2seq_forward)

    def forward(self, batch, options, iepoch):
        self.data_monitor.update_epoch(iepoch)
        inputs = batch[0]
        loss = self._fwd(
            self.params,
            inputs["input_ids"], inputs["attention_mask"],
            inputs["decoder_input_ids"], inputs["decoder_attention_mask"],
            inputs["labels"],
        )
        m_output = {"cost": loss}
        # subword_net is None -> encoder/decoder last hidden states never leave VMEM
        # coref_mrl is None   -> no extra cost term
        return m_output


# ---------------------------------------------------------------------------
if __name__ == "__main__":
    key = jax.random.PRNGKey(0)
    kp, k1, k2 = jax.random.split(key, 3)

    B, Se, Sd = 2, 16, 16
    params = init_params(kp)

    input_ids = jax.random.randint(k1, (B, Se), 3, V).astype(jnp.int32)
    input_ids = input_ids.at[:, -3:].set(PAD_ID)
    attention_mask = (input_ids != PAD_ID).astype(jnp.int32)

    labels = jax.random.randint(k2, (B, Sd), 3, V).astype(jnp.int32)
    labels = labels.at[:, -2:].set(PAD_ID)
    decoder_input_ids = jnp.concatenate(
        [jnp.full((B, 1), BOS_ID, jnp.int32), labels[:, :-1]], axis=1)
    decoder_attention_mask = (decoder_input_ids != PAD_ID).astype(jnp.int32)

    batch = ({
        "input_ids": input_ids,
        "attention_mask": attention_mask,
        "decoder_input_ids": decoder_input_ids,
        "decoder_attention_mask": decoder_attention_mask,
        "labels": labels,
    },)

    model = Model(params)
    out = model.forward(batch, options=None, iepoch=0)
    jax.block_until_ready(out["cost"])
    assert out["cost"].shape == () and bool(jnp.isfinite(out["cost"]))
    print("KERNEL_OK")
</pallas_src>

<mosaic_0001>
module attributes {stable_mosaic.version = 11 : i64} {
  func.func @_fused_seq2seq_kernel(%arg0: i32, %arg1: memref<1x16x1xi32, #tpu.memory_space<vmem>>, %arg2: memref<1x1x16xi32, #tpu.memory_space<vmem>>, %arg3: memref<1x16x1xi32, #tpu.memory_space<vmem>>, %arg4: memref<1x1x16xi32, #tpu.memory_space<vmem>>, %arg5: memref<1x16x1xi32, #tpu.memory_space<vmem>>, %arg6: memref<128x64xf32, #tpu.memory_space<vmem>>, %arg7: memref<32x64xf32, #tpu.memory_space<vmem>>, %arg8: memref<64x192xf32, #tpu.memory_space<vmem>>, %arg9: memref<1x192xf32, #tpu.memory_space<vmem>>, %arg10: memref<64x64xf32, #tpu.memory_space<vmem>>, %arg11: memref<1x64xf32, #tpu.memory_space<vmem>>, %arg12: memref<2x64xf32, #tpu.memory_space<vmem>>, %arg13: memref<64x128xf32, #tpu.memory_space<vmem>>, %arg14: memref<1x128xf32, #tpu.memory_space<vmem>>, %arg15: memref<128x64xf32, #tpu.memory_space<vmem>>, %arg16: memref<1x64xf32, #tpu.memory_space<vmem>>, %arg17: memref<2x64xf32, #tpu.memory_space<vmem>>, %arg18: memref<64x192xf32, #tpu.memory_space<vmem>>, %arg19: memref<1x192xf32, #tpu.memory_space<vmem>>, %arg20: memref<64x64xf32, #tpu.memory_space<vmem>>, %arg21: memref<1x64xf32, #tpu.memory_space<vmem>>, %arg22: memref<2x64xf32, #tpu.memory_space<vmem>>, %arg23: memref<64x64xf32, #tpu.memory_space<vmem>>, %arg24: memref<1x64xf32, #tpu.memory_space<vmem>>, %arg25: memref<64x128xf32, #tpu.memory_space<vmem>>, %arg26: memref<1x128xf32, #tpu.memory_space<vmem>>, %arg27: memref<64x64xf32, #tpu.memory_space<vmem>>, %arg28: memref<1x64xf32, #tpu.memory_space<vmem>>, %arg29: memref<2x64xf32, #tpu.memory_space<vmem>>, %arg30: memref<64x128xf32, #tpu.memory_space<vmem>>, %arg31: memref<1x128xf32, #tpu.memory_space<vmem>>, %arg32: memref<128x64xf32, #tpu.memory_space<vmem>>, %arg33: memref<1x64xf32, #tpu.memory_space<vmem>>, %arg34: memref<2x64xf32, #tpu.memory_space<vmem>>, %arg35: memref<1x1x128xf32, #tpu.memory_space<vmem>>) attributes {dimension_semantics = [#tpu.dimension_semantics<parallel>], iteration_bounds = array<i64: 2>, scalar_prefetch = 0 : i64, scratch_operands = 0 : i64, tpu.core_type = #tpu.core_type<tc>, window_params = [{transform_indices = @transform_0, window_bounds = array<i64: 1, 16, 1>}, {transform_indices = @transform_1, window_bounds = array<i64: 1, 1, 16>}, {transform_indices = @transform_2, window_bounds = array<i64: 1, 16, 1>}, {transform_indices = @transform_3, window_bounds = array<i64: 1, 1, 16>}, {transform_indices = @transform_4, window_bounds = array<i64: 1, 16, 1>}, {pipeline_mode = #tpu.pipeline_mode<synchronous>, transform_indices = @transform_5, window_bounds = array<i64: 128, 64>}, {pipeline_mode = #tpu.pipeline_mode<synchronous>, transform_indices = @transform_6, window_bounds = array<i64: 32, 64>}, {pipeline_mode = #tpu.pipeline_mode<synchronous>, transform_indices = @transform_7, window_bounds = array<i64: 64, 192>}, {pipeline_mode = #tpu.pipeline_mode<synchronous>, transform_indices = @transform_8, window_bounds = array<i64: 1, 192>}, {pipeline_mode = #tpu.pipeline_mode<synchronous>, transform_indices = @transform_9, window_bounds = array<i64: 64, 64>}, {pipeline_mode = #tpu.pipeline_mode<synchronous>, transform_indices = @transform_10, window_bounds = array<i64: 1, 64>}, {pipeline_mode = #tpu.pipeline_mode<synchronous>, transform_indices = @transform_11, window_bounds = array<i64: 2, 64>}, {pipeline_mode = #tpu.pipeline_mode<synchronous>, transform_indices = @transform_12, window_bounds = array<i64: 64, 128>}, {pipeline_mode = #tpu.pipeline_mode<synchronous>, transform_indices = @transform_13, window_bounds = array<i64: 1, 128>}, {pipeline_mode = #tpu.pipeline_mode<synchronous>, transform_indices = @transform_14, window_bounds = array<i64: 128, 64>}, {pipeline_mode = #tpu.pipeline_mode<synchronous>, transform_indices = @transform_15, window_bounds = array<i64: 1, 64>}, {pipeline_mode = #tpu.pipeline_mode<synchronous>, transform_indices = @transform_16, window_bounds = array<i64: 2, 64>}, {pipeline_mode = #tpu.pipeline_mode<synchronous>, transform_indices = @transform_17, window_bounds = array<i64: 64, 192>}, {pipeline_mode = #tpu.pipeline_mode<synchronous>, transform_indices = @transform_18, window_bounds = array<i64: 1, 192>}, {pipeline_mode = #tpu.pipeline_mode<synchronous>, transform_indices = @transform_19, window_bounds = array<i64: 64, 64>}, {pipeline_mode = #tpu.pipeline_mode<synchronous>, transform_indices = @transform_20, window_bounds = array<i64: 1, 64>}, {pipeline_mode = #tpu.pipeline_mode<synchronous>, transform_indices = @transform_21, window_bounds = array<i64: 2, 64>}, {pipeline_mode = #tpu.pipeline_mode<synchronous>, transform_indices = @transform_22, window_bounds = array<i64: 64, 64>}, {pipeline_mode = #tpu.pipeline_mode<synchronous>, transform_indices = @transform_23, window_bounds = array<i64: 1, 64>}, {pipeline_mode = #tpu.pipeline_mode<synchronous>, transform_indices = @transform_24, window_bounds = array<i64: 64, 128>}, {pipeline_mode = #tpu.pipeline_mode<synchronous>, transform_indices = @transform_25, window_bounds = array<i64: 1, 128>}, {pipeline_mode = #tpu.pipeline_mode<synchronous>, transform_indices = @transform_26, window_bounds = array<i64: 64, 64>}, {pipeline_mode = #tpu.pipeline_mode<synchronous>, transform_indices = @transform_27, window_bounds = array<i64: 1, 64>}, {pipeline_mode = #tpu.pipeline_mode<synchronous>, transform_indices = @transform_28, window_bounds = array<i64: 2, 64>}, {pipeline_mode = #tpu.pipeline_mode<synchronous>, transform_indices = @transform_29, window_bounds = array<i64: 64, 128>}, {pipeline_mode = #tpu.pipeline_mode<synchronous>, transform_indices = @transform_30, window_bounds = array<i64: 1, 128>}, {pipeline_mode = #tpu.pipeline_mode<synchronous>, transform_indices = @transform_31, window_bounds = array<i64: 128, 64>}, {pipeline_mode = #tpu.pipeline_mode<synchronous>, transform_indices = @transform_32, window_bounds = array<i64: 1, 64>}, {pipeline_mode = #tpu.pipeline_mode<synchronous>, transform_indices = @transform_33, window_bounds = array<i64: 2, 64>}, {transform_indices = @transform_34, window_bounds = array<i64: 1, 1, 128>}]} {
    %c0 = arith.constant 0 : index
    %c0_0 = arith.constant 0 : index
    %c0_1 = arith.constant 0 : index
    %0 = vector.load %arg1[%c0, %c0_0, %c0_1] : memref<1x16x1xi32, #tpu.memory_space<vmem>>, vector<1x16x1xi32>
    %1 = vector.shape_cast %0 : vector<1x16x1xi32> to vector<16x1xi32>
    %c0_2 = arith.constant 0 : index
    %c0_3 = arith.constant 0 : index
    %c0_4 = arith.constant 0 : index
    %2 = vector.load %arg3[%c0_2, %c0_3, %c0_4] : memref<1x16x1xi32, #tpu.memory_space<vmem>>, vector<1x16x1xi32>
    %3 = vector.shape_cast %2 : vector<1x16x1xi32> to vector<16x1xi32>
    %c0_5 = arith.constant 0 : index
    %c0_6 = arith.constant 0 : index
    %c0_7 = arith.constant 0 : index
    %4 = vector.load %arg5[%c0_5, %c0_6, %c0_7] : memref<1x16x1xi32, #tpu.memory_space<vmem>>, vector<1x16x1xi32>
    %5 = vector.shape_cast %4 : vector<1x16x1xi32> to vector<16x1xi32>
    %c0_8 = arith.constant 0 : index
    %c0_9 = arith.constant 0 : index
    %c0_10 = arith.constant 0 : index
    %6 = vector.load %arg2[%c0_8, %c0_9, %c0_10] : memref<1x1x16xi32, #tpu.memory_space<vmem>>, vector<1x1x16xi32>
    %7 = vector.shape_cast %6 : vector<1x1x16xi32> to vector<1x16xi32>
    %c0_11 = arith.constant 0 : index
    %c0_12 = arith.constant 0 : index
    %c0_13 = arith.constant 0 : index
    %8 = vector.load %arg4[%c0_11, %c0_12, %c0_13] : memref<1x1x16xi32, #tpu.memory_space<vmem>>, vector<1x1x16xi32>
    %9 = vector.shape_cast %8 : vector<1x1x16xi32> to vector<1x16xi32>
    %c0_14 = arith.constant 0 : index
    %c0_15 = arith.constant 0 : index
    %10 = vector.load %arg6[%c0_14, %c0_15] : memref<128x64xf32, #tpu.memory_space<vmem>>, vector<128x64xf32>
    %c0_16 = arith.constant 0 : index
    %c0_17 = arith.constant 0 : index
    %11 = vector.load %arg7[%c0_16, %c0_17] : memref<32x64xf32, #tpu.memory_space<vmem>>, vector<32x64xf32>
    %c0_i32 = arith.constant 0 : i32
    %12 = vector.broadcast %c0_i32 : i32 to vector<1x16xi32>
    %13 = arith.cmpi sgt, %7, %12 : vector<1x16xi32>
    %cst = arith.constant 0.000000e+00 : f32
    %cst_18 = arith.constant -1.000000e+09 : f32
    %14 = vector.broadcast %cst : f32 to vector<1x16xf32>
    %15 = vector.broadcast %cst_18 : f32 to vector<1x16xf32>
    %16 = arith.select %13, %14, %15 : vector<1x16xi1>, vector<1x16xf32>
    %17 = tpu.iota {dimensions = array<i32: 1>} : vector<16x128xi32>
    %18 = vector.broadcast %1 : vector<16x1xi32> to vector<16x128xi32>
    %19 = arith.cmpi eq, %17, %18 : vector<16x128xi32>
    %20 = arith.extui %19 : vector<16x128xi1> to vector<16x128xi32>
    %21 = arith.sitofp %20 : vector<16x128xi32> to vector<16x128xf32>
    %cst_19 = arith.constant dense<0.000000e+00> : vector<16x64xf32>
    %22 = tpu.matmul %21, %10, %cst_19 {dimension_numbers = #tpu.dot_dimension_numbers<[1], [0], [0], [1], [0, 0, 1, 1], [], []>} : vector<16x128xf32>, vector<128x64xf32>, vector<16x64xf32> -> vector<16x64xf32>
    %23 = vector.extract_strided_slice %11 {offsets = [0, 0], sizes = [16, 64], strides = [1, 1]} : vector<32x64xf32> to vector<16x64xf32>
    %24 = arith.addf %22, %23 : vector<16x64xf32>
    %c0_20 = arith.constant 0 : index
    %c0_21 = arith.constant 0 : index
    %25 = vector.load %arg8[%c0_20, %c0_21] : memref<64x192xf32, #tpu.memory_space<vmem>>, vector<64x192xf32>
    %cst_22 = arith.constant dense<0.000000e+00> : vector<16x192xf32>
    %26 = tpu.matmul %24, %25, %cst_22 {dimension_numbers = #tpu.dot_dimension_numbers<[1], [0], [0], [1], [0, 0, 1, 1], [], []>} : vector<16x64xf32>, vector<64x192xf32>, vector<16x192xf32> -> vector<16x192xf32>
    %c0_23 = arith.constant 0 : index
    %c0_24 = arith.constant 0 : index
    %27 = vector.load %arg9[%c0_23, %c0_24] : memref<1x192xf32, #tpu.memory_space<vmem>>, vector<1x192xf32>
    %28 = vector.broadcast %27 : vector<1x192xf32> to vector<16x192xf32>
    %29 = arith.addf %26, %28 : vector<16x192xf32>
    %30 = vector.extract_strided_slice %29 {offsets = [0, 0], sizes = [16, 64], strides = [1, 1]} : vector<16x192xf32> to vector<16x64xf32>
    %31 = vector.extract_strided_slice %29 {offsets = [0, 64], sizes = [16, 64], strides = [1, 1]} : vector<16x192xf32> to vector<16x64xf32>
    %32 = vector.extract_strided_slice %29 {offsets = [0, 128], sizes = [16, 64], strides = [1, 1]} : vector<16x192xf32> to vector<16x64xf32>
    %c0_25 = arith.constant 0 : index
    %c0_26 = arith.constant 0 : index
    %33 = vector.load %arg10[%c0_25, %c0_26] : memref<64x64xf32, #tpu.memory_space<vmem>>, vector<64x64xf32>
    %cst_27 = arith.constant 0.000000e+00 : f32
    %34 = vector.broadcast %cst_27 : f32 to vector<16x64xf32>
    %35 = vector.extract_strided_slice %30 {offsets = [0, 0], sizes = [16, 32], strides = [1, 1]} : vector<16x64xf32> to vector<16x32xf32>
    %36 = vector.extract_strided_slice %31 {offsets = [0, 0], sizes = [16, 32], strides = [1, 1]} : vector<16x64xf32> to vector<16x32xf32>
    %37 = vector.extract_strided_slice %32 {offsets = [0, 0], sizes = [16, 32], strides = [1, 1]} : vector<16x64xf32> to vector<16x32xf32>
    %cst_28 = arith.constant dense<0.000000e+00> : vector<16x16xf32>
    %38 = tpu.matmul %35, %36, %cst_28 {dimension_numbers = #tpu.dot_dimension_numbers<[1], [1], [0], [0], [0, 0, 1, 0], [], []>} : vector<16x32xf32>, vector<16x32xf32>, vector<16x16xf32> -> vector<16x16xf32>
    %cst_29 = arith.constant 0.176776692 : f32
    %39 = vector.broadcast %cst_29 : f32 to vector<16x16xf32>
    %40 = arith.mulf %38, %39 : vector<16x16xf32>
    %41 = vector.broadcast %16 : vector<1x16xf32> to vector<16x16xf32>
    %42 = arith.addf %40, %41 : vector<16x16xf32>
    %cst_30 = arith.constant dense<0xFF800000> : vector<16xf32>
    %43 = vector.multi_reduction <maximumf>, %42, %cst_30 [1] : vector<16x16xf32> to vector<16xf32>
    %44 = vector.shape_cast %43 : vector<16xf32> to vector<16x1xf32>
    %45 = vector.broadcast %44 : vector<16x1xf32> to vector<16x16xf32>
    %46 = arith.subf %42, %45 : vector<16x16xf32>
    %47 = math.exp %46 : vector<16x16xf32>
    %cst_31 = arith.constant dense<0.000000e+00> : vector<16xf32>
    %48 = vector.multi_reduction <add>, %47, %cst_31 [1] : vector<16x16xf32> to vector<16xf32>
    %49 = vector.shape_cast %48 : vector<16xf32> to vector<16x1xf32>
    %50 = vector.broadcast %49 : vector<16x1xf32> to vector<16x16xf32>
    %51 = arith.divf %47, %50 : vector<16x16xf32>
    %cst_32 = arith.constant dense<0.000000e+00> : vector<16x32xf32>
    %52 = tpu.matmul %51, %37, %cst_32 {dimension_numbers = #tpu.dot_dimension_numbers<[1], [0], [0], [1], [0, 0, 1, 1], [], []>} : vector<16x16xf32>, vector<16x32xf32>, vector<16x32xf32> -> vector<16x32xf32>
    %53 = vector.extract_strided_slice %33 {offsets = [0, 0], sizes = [32, 64], strides = [1, 1]} : vector<64x64xf32> to vector<32x64xf32>
    %cst_33 = arith.constant dense<0.000000e+00> : vector<16x64xf32>
    %54 = tpu.matmul %52, %53, %cst_33 {dimension_numbers = #tpu.dot_dimension_numbers<[1], [0], [0], [1], [0, 0, 1, 1], [], []>} : vector<16x32xf32>, vector<32x64xf32>, vector<16x64xf32> -> vector<16x64xf32>
    %55 = arith.addf %34, %54 : vector<16x64xf32>
    %56 = vector.extract_strided_slice %30 {offsets = [0, 32], sizes = [16, 32], strides = [1, 1]} : vector<16x64xf32> to vector<16x32xf32>
    %57 = vector.extract_strided_slice %31 {offsets = [0, 32], sizes = [16, 32], strides = [1, 1]} : vector<16x64xf32> to vector<16x32xf32>
    %58 = vector.extract_strided_slice %32 {offsets = [0, 32], sizes = [16, 32], strides = [1, 1]} : vector<16x64xf32> to vector<16x32xf32>
    %cst_34 = arith.constant dense<0.000000e+00> : vector<16x16xf32>
    %59 = tpu.matmul %56, %57, %cst_34 {dimension_numbers = #tpu.dot_dimension_numbers<[1], [1], [0], [0], [0, 0, 1, 0], [], []>} : vector<16x32xf32>, vector<16x32xf32>, vector<16x16xf32> -> vector<16x16xf32>
    %cst_35 = arith.constant 0.176776692 : f32
    %60 = vector.broadcast %cst_35 : f32 to vector<16x16xf32>
    %61 = arith.mulf %59, %60 : vector<16x16xf32>
    %62 = vector.broadcast %16 : vector<1x16xf32> to vector<16x16xf32>
    %63 = arith.addf %61, %62 : vector<16x16xf32>
    %cst_36 = arith.constant dense<0xFF800000> : vector<16xf32>
    %64 = vector.multi_reduction <maximumf>, %63, %cst_36 [1] : vector<16x16xf32> to vector<16xf32>
    %65 = vector.shape_cast %64 : vector<16xf32> to vector<16x1xf32>
    %66 = vector.broadcast %65 : vector<16x1xf32> to vector<16x16xf32>
    %67 = arith.subf %63, %66 : vector<16x16xf32>
    %68 = math.exp %67 : vector<16x16xf32>
    %cst_37 = arith.constant dense<0.000000e+00> : vector<16xf32>
    %69 = vector.multi_reduction <add>, %68, %cst_37 [1] : vector<16x16xf32> to vector<16xf32>
    %70 = vector.shape_cast %69 : vector<16xf32> to vector<16x1xf32>
    %71 = vector.broadcast %70 : vector<16x1xf32> to vector<16x16xf32>
    %72 = arith.divf %68, %71 : vector<16x16xf32>
    %cst_38 = arith.constant dense<0.000000e+00> : vector<16x32xf32>
    %73 = tpu.matmul %72, %58, %cst_38 {dimension_numbers = #tpu.dot_dimension_numbers<[1], [0], [0], [1], [0, 0, 1, 1], [], []>} : vector<16x16xf32>, vector<16x32xf32>, vector<16x32xf32> -> vector<16x32xf32>
    %74 = vector.extract_strided_slice %33 {offsets = [32, 0], sizes = [32, 64], strides = [1, 1]} : vector<64x64xf32> to vector<32x64xf32>
    %cst_39 = arith.constant dense<0.000000e+00> : vector<16x64xf32>
    %75 = tpu.matmul %73, %74, %cst_39 {dimension_numbers = #tpu.dot_dimension_numbers<[1], [0], [0], [1], [0, 0, 1, 1], [], []>} : vector<16x32xf32>, vector<32x64xf32>, vector<16x64xf32> -> vector<16x64xf32>
    %76 = arith.addf %55, %75 : vector<16x64xf32>
    %c0_40 = arith.constant 0 : index
    %c0_41 = arith.constant 0 : index
    %77 = vector.load %arg11[%c0_40, %c0_41] : memref<1x64xf32, #tpu.memory_space<vmem>>, vector<1x64xf32>
    %78 = vector.broadcast %77 : vector<1x64xf32> to vector<16x64xf32>
    %79 = arith.addf %76, %78 : vector<16x64xf32>
    %80 = arith.addf %24, %79 : vector<16x64xf32>
    %cst_42 = arith.constant dense<0.000000e+00> : vector<16xf32>
    %81 = vector.multi_reduction <add>, %80, %cst_42 [1] : vector<16x64xf32> to vector<16xf32>
    %82 = vector.shape_cast %81 : vector<16xf32> to vector<16x1xf32>
    %cst_43 = arith.constant 6.400000e+01 : f32
    %83 = vector.broadcast %cst_43 : f32 to vector<16x1xf32>
    %84 = arith.divf %82, %83 : vector<16x1xf32>
    %85 = vector.broadcast %84 : vector<16x1xf32> to vector<16x64xf32>
    %86 = arith.subf %80, %85 : vector<16x64xf32>
    %87 = arith.mulf %86, %86 : vector<16x64xf32>
    %cst_44 = arith.constant dense<0.000000e+00> : vector<16xf32>
    %88 = vector.multi_reduction <add>, %87, %cst_44 [1] : vector<16x64xf32> to vector<16xf32>
    %89 = vector.shape_cast %88 : vector<16xf32> to vector<16x1xf32>
    %cst_45 = arith.constant 6.400000e+01 : f32
    %90 = vector.broadcast %cst_45 : f32 to vector<16x1xf32>
    %91 = arith.divf %89, %90 : vector<16x1xf32>
    %92 = vector.broadcast %84 : vector<16x1xf32> to vector<16x64xf32>
    %93 = arith.subf %80, %92 : vector<16x64xf32>
    %cst_46 = arith.constant 9.99999974E-6 : f32
    %94 = vector.broadcast %cst_46 : f32 to vector<16x1xf32>
    %95 = arith.addf %91, %94 : vector<16x1xf32>
    %96 = math.rsqrt %95 : vector<16x1xf32>
    %97 = vector.broadcast %96 : vector<16x1xf32> to vector<16x64xf32>
    %98 = arith.mulf %93, %97 : vector<16x64xf32>
    %c0_47 = arith.constant 0 : index
    %c0_48 = arith.constant 0 : index
    %99 = vector.load %arg12[%c0_47, %c0_48] : memref<2x64xf32, #tpu.memory_space<vmem>>, vector<2x64xf32>
    %100 = vector.extract_strided_slice %99 {offsets = [0, 0], sizes = [1, 64], strides = [1, 1]} : vector<2x64xf32> to vector<1x64xf32>
    %101 = vector.broadcast %100 : vector<1x64xf32> to vector<16x64xf32>
    %102 = arith.mulf %98, %101 : vector<16x64xf32>
    %103 = vector.extract_strided_slice %99 {offsets = [1, 0], sizes = [1, 64], strides = [1, 1]} : vector<2x64xf32> to vector<1x64xf32>
    %104 = vector.broadcast %103 : vector<1x64xf32> to vector<16x64xf32>
    %105 = arith.addf %102, %104 : vector<16x64xf32>
    %c0_49 = arith.constant 0 : index
    %c0_50 = arith.constant 0 : index
    %106 = vector.load %arg13[%c0_49, %c0_50] : memref<64x128xf32, #tpu.memory_space<vmem>>, vector<64x128xf32>
    %cst_51 = arith.constant dense<0.000000e+00> : vector<16x128xf32>
    %107 = tpu.matmul %105, %106, %cst_51 {dimension_numbers = #tpu.dot_dimension_numbers<[1], [0], [0], [1], [0, 0, 1, 1], [], []>} : vector<16x64xf32>, vector<64x128xf32>, vector<16x128xf32> -> vector<16x128xf32>
    %c0_52 = arith.constant 0 : index
    %c0_53 = arith.constant 0 : index
    %108 = vector.load %arg14[%c0_52, %c0_53] : memref<1x128xf32, #tpu.memory_space<vmem>>, vector<1x128xf32>
    %109 = vector.broadcast %108 : vector<1x128xf32> to vector<16x128xf32>
    %110 = arith.addf %107, %109 : vector<16x128xf32>
    %cst_54 = arith.constant 5.000000e-01 : f32
    %111 = vector.broadcast %cst_54 : f32 to vector<16x128xf32>
    %112 = arith.mulf %111, %110 : vector<16x128xf32>
    %cst_55 = arith.constant 0.707106769 : f32
    %113 = vector.broadcast %cst_55 : f32 to vector<16x128xf32>
    %114 = arith.mulf %110, %113 : vector<16x128xf32>
    %cst_56 = arith.constant 0.000000e+00 : f32
    %115 = vector.broadcast %cst_56 : f32 to vector<16x128xf32>
    %116 = arith.cmpf oge, %114, %115 : vector<16x128xf32>
    %cst_57 = arith.constant 1.000000e+00 : f32
    %cst_58 = arith.constant -1.000000e+00 : f32
    %117 = vector.broadcast %cst_57 : f32 to vector<16x128xf32>
    %118 = vector.broadcast %cst_58 : f32 to vector<16x128xf32>
    %119 = arith.select %116, %117, %118 : vector<16x128xi1>, vector<16x128xf32>
    %120 = math.absf %114 : vector<16x128xf32>
    %cst_59 = arith.constant 0.327591091 : f32
    %121 = vector.broadcast %cst_59 : f32 to vector<16x128xf32>
    %122 = arith.mulf %121, %120 : vector<16x128xf32>
    %cst_60 = arith.constant 1.000000e+00 : f32
    %123 = vector.broadcast %cst_60 : f32 to vector<16x128xf32>
    %124 = arith.addf %123, %122 : vector<16x128xf32>
    %cst_61 = arith.constant 1.000000e+00 : f32
    %125 = vector.broadcast %cst_61 : f32 to vector<16x128xf32>
    %126 = arith.divf %125, %124 : vector<16x128xf32>
    %cst_62 = arith.constant 1.06140542 : f32
    %127 = vector.broadcast %cst_62 : f32 to vector<16x128xf32>
    %128 = arith.mulf %127, %126 : vector<16x128xf32>
    %cst_63 = arith.constant -1.45315206 : f32
    %129 = vector.broadcast %cst_63 : f32 to vector<16x128xf32>
    %130 = arith.addf %128, %129 : vector<16x128xf32>
    %131 = arith.mulf %130, %126 : vector<16x128xf32>
    %cst_64 = arith.constant 1.42141378 : f32
    %132 = vector.broadcast %cst_64 : f32 to vector<16x128xf32>
    %133 = arith.addf %131, %132 : vector<16x128xf32>
    %134 = arith.mulf %133, %126 : vector<16x128xf32>
    %cst_65 = arith.constant -0.284496725 : f32
    %135 = vector.broadcast %cst_65 : f32 to vector<16x128xf32>
    %136 = arith.addf %134, %135 : vector<16x128xf32>
    %137 = arith.mulf %136, %126 : vector<16x128xf32>
    %cst_66 = arith.constant 0.254829586 : f32
    %138 = vector.broadcast %cst_66 : f32 to vector<16x128xf32>
    %139 = arith.addf %137, %138 : vector<16x128xf32>
    %140 = arith.mulf %139, %126 : vector<16x128xf32>
    %cst_67 = arith.constant 0.000000e+00 : f32
    %141 = vector.broadcast %cst_67 : f32 to vector<16x128xf32>
    %142 = arith.subf %141, %120 : vector<16x128xf32>
    %143 = arith.mulf %142, %120 : vector<16x128xf32>
    %144 = math.exp %143 : vector<16x128xf32>
    %145 = arith.mulf %140, %144 : vector<16x128xf32>
    %cst_68 = arith.constant 1.000000e+00 : f32
    %146 = vector.broadcast %cst_68 : f32 to vector<16x128xf32>
    %147 = arith.subf %146, %145 : vector<16x128xf32>
    %148 = arith.mulf %119, %147 : vector<16x128xf32>
    %cst_69 = arith.constant 1.000000e+00 : f32
    %149 = vector.broadcast %cst_69 : f32 to vector<16x128xf32>
    %150 = arith.addf %149, %148 : vector<16x128xf32>
    %151 = arith.mulf %112, %150 : vector<16x128xf32>
    %c0_70 = arith.constant 0 : index
    %c0_71 = arith.constant 0 : index
    %152 = vector.load %arg15[%c0_70, %c0_71] : memref<128x64xf32, #tpu.memory_space<vmem>>, vector<128x64xf32>
    %cst_72 = arith.constant dense<0.000000e+00> : vector<16x64xf32>
    %153 = tpu.matmul %151, %152, %cst_72 {dimension_numbers = #tpu.dot_dimension_numbers<[1], [0], [0], [1], [0, 0, 1, 1], [], []>} : vector<16x128xf32>, vector<128x64xf32>, vector<16x64xf32> -> vector<16x64xf32>
    %154 = arith.addf %105, %153 : vector<16x64xf32>
    %c0_73 = arith.constant 0 : index
    %c0_74 = arith.constant 0 : index
    %155 = vector.load %arg16[%c0_73, %c0_74] : memref<1x64xf32, #tpu.memory_space<vmem>>, vector<1x64xf32>
    %156 = vector.broadcast %155 : vector<1x64xf32> to vector<16x64xf32>
    %157 = arith.addf %154, %156 : vector<16x64xf32>
    %cst_75 = arith.constant dense<0.000000e+00> : vector<16xf32>
    %158 = vector.multi_reduction <add>, %157, %cst_75 [1] : vector<16x64xf32> to vector<16xf32>
    %159 = vector.shape_cast %158 : vector<16xf32> to vector<16x1xf32>
    %cst_76 = arith.constant 6.400000e+01 : f32
    %160 = vector.broadcast %cst_76 : f32 to vector<16x1xf32>
    %161 = arith.divf %159, %160 : vector<16x1xf32>
    %162 = vector.broadcast %161 : vector<16x1xf32> to vector<16x64xf32>
    %163 = arith.subf %157, %162 : vector<16x64xf32>
    %164 = arith.mulf %163, %163 : vector<16x64xf32>
    %cst_77 = arith.constant dense<0.000000e+00> : vector<16xf32>
    %165 = vector.multi_reduction <add>, %164, %cst_77 [1] : vector<16x64xf32> to vector<16xf32>
    %166 = vector.shape_cast %165 : vector<16xf32> to vector<16x1xf32>
    %cst_78 = arith.constant 6.400000e+01 : f32
    %167 = vector.broadcast %cst_78 : f32 to vector<16x1xf32>
    %168 = arith.divf %166, %167 : vector<16x1xf32>
    %169 = vector.broadcast %161 : vector<16x1xf32> to vector<16x64xf32>
    %170 = arith.subf %157, %169 : vector<16x64xf32>
    %cst_79 = arith.constant 9.99999974E-6 : f32
    %171 = vector.broadcast %cst_79 : f32 to vector<16x1xf32>
    %172 = arith.addf %168, %171 : vector<16x1xf32>
    %173 = math.rsqrt %172 : vector<16x1xf32>
    %174 = vector.broadcast %173 : vector<16x1xf32> to vector<16x64xf32>
    %175 = arith.mulf %170, %174 : vector<16x64xf32>
    %c0_80 = arith.constant 0 : index
    %c0_81 = arith.constant 0 : index
    %176 = vector.load %arg17[%c0_80, %c0_81] : memref<2x64xf32, #tpu.memory_space<vmem>>, vector<2x64xf32>
    %177 = vector.extract_strided_slice %176 {offsets = [0, 0], sizes = [1, 64], strides = [1, 1]} : vector<2x64xf32> to vector<1x64xf32>
    %178 = vector.broadcast %177 : vector<1x64xf32> to vector<16x64xf32>
    %179 = arith.mulf %175, %178 : vector<16x64xf32>
    %180 = vector.extract_strided_slice %176 {offsets = [1, 0], sizes = [1, 64], strides = [1, 1]} : vector<2x64xf32> to vector<1x64xf32>
    %181 = vector.broadcast %180 : vector<1x64xf32> to vector<16x64xf32>
    %182 = arith.addf %179, %181 : vector<16x64xf32>
    %183 = tpu.iota {dimensions = array<i32: 1>} : vector<16x128xi32>
    %184 = vector.broadcast %3 : vector<16x1xi32> to vector<16x128xi32>
    %185 = arith.cmpi eq, %183, %184 : vector<16x128xi32>
    %186 = arith.extui %185 : vector<16x128xi1> to vector<16x128xi32>
    %187 = arith.sitofp %186 : vector<16x128xi32> to vector<16x128xf32>
    %cst_82 = arith.constant dense<0.000000e+00> : vector<16x64xf32>
    %188 = tpu.matmul %187, %10, %cst_82 {dimension_numbers = #tpu.dot_dimension_numbers<[1], [0], [0], [1], [0, 0, 1, 1], [], []>} : vector<16x128xf32>, vector<128x64xf32>, vector<16x64xf32> -> vector<16x64xf32>
    %189 = vector.extract_strided_slice %11 {offsets = [0, 0], sizes = [16, 64], strides = [1, 1]} : vector<32x64xf32> to vector<16x64xf32>
    %190 = arith.addf %188, %189 : vector<16x64xf32>
    %191 = tpu.iota {dimensions = array<i32: 0>} : vector<16x16xi32>
    %192 = tpu.iota {dimensions = array<i32: 1>} : vector<16x16xi32>
    %193 = arith.cmpi sge, %191, %192 : vector<16x16xi32>
    %c0_i32_83 = arith.constant 0 : i32
    %194 = vector.broadcast %c0_i32_83 : i32 to vector<1x16xi32>
    %195 = arith.cmpi sgt, %9, %194 : vector<1x16xi32>
    %196 = vector.broadcast %195 : vector<1x16xi1> to vector<16x16xi1>
    %197 = arith.andi %193, %196 : vector<16x16xi1>
    %cst_84 = arith.constant 0.000000e+00 : f32
    %cst_85 = arith.constant -1.000000e+09 : f32
    %198 = vector.broadcast %cst_84 : f32 to vector<16x16xf32>
    %199 = vector.broadcast %cst_85 : f32 to vector<16x16xf32>
    %200 = arith.select %197, %198, %199 : vector<16x16xi1>, vector<16x16xf32>
    %c0_86 = arith.constant 0 : index
    %c0_87 = arith.constant 0 : index
    %201 = vector.load %arg18[%c0_86, %c0_87] : memref<64x192xf32, #tpu.memory_space<vmem>>, vector<64x192xf32>
    %cst_88 = arith.constant dense<0.000000e+00> : vector<16x192xf32>
    %202 = tpu.matmul %190, %201, %cst_88 {dimension_numbers = #tpu.dot_dimension_numbers<[1], [0], [0], [1], [0, 0, 1, 1], [], []>} : vector<16x64xf32>, vector<64x192xf32>, vector<16x192xf32> -> vector<16x192xf32>
    %c0_89 = arith.constant 0 : index
    %c0_90 = arith.constant 0 : index
    %203 = vector.load %arg19[%c0_89, %c0_90] : memref<1x192xf32, #tpu.memory_space<vmem>>, vector<1x192xf32>
    %204 = vector.broadcast %203 : vector<1x192xf32> to vector<16x192xf32>
    %205 = arith.addf %202, %204 : vector<16x192xf32>
    %206 = vector.extract_strided_slice %205 {offsets = [0, 0], sizes = [16, 64], strides = [1, 1]} : vector<16x192xf32> to vector<16x64xf32>
    %207 = vector.extract_strided_slice %205 {offsets = [0, 64], sizes = [16, 64], strides = [1, 1]} : vector<16x192xf32> to vector<16x64xf32>
    %208 = vector.extract_strided_slice %205 {offsets = [0, 128], sizes = [16, 64], strides = [1, 1]} : vector<16x192xf32> to vector<16x64xf32>
    %c0_91 = arith.constant 0 : index
    %c0_92 = arith.constant 0 : index
    %209 = vector.load %arg20[%c0_91, %c0_92] : memref<64x64xf32, #tpu.memory_space<vmem>>, vector<64x64xf32>
    %cst_93 = arith.constant 0.000000e+00 : f32
    %210 = vector.broadcast %cst_93 : f32 to vector<16x64xf32>
    %211 = vector.extract_strided_slice %206 {offsets = [0, 0], sizes = [16, 32], strides = [1, 1]} : vector<16x64xf32> to vector<16x32xf32>
    %212 = vector.extract_strided_slice %207 {offsets = [0, 0], sizes = [16, 32], strides = [1, 1]} : vector<16x64xf32> to vector<16x32xf32>
    %213 = vector.extract_strided_slice %208 {offsets = [0, 0], sizes = [16, 32], strides = [1, 1]} : vector<16x64xf32> to vector<16x32xf32>
    %cst_94 = arith.constant dense<0.000000e+00> : vector<16x16xf32>
    %214 = tpu.matmul %211, %212, %cst_94 {dimension_numbers = #tpu.dot_dimension_numbers<[1], [1], [0], [0], [0, 0, 1, 0], [], []>} : vector<16x32xf32>, vector<16x32xf32>, vector<16x16xf32> -> vector<16x16xf32>
    %cst_95 = arith.constant 0.176776692 : f32
    %215 = vector.broadcast %cst_95 : f32 to vector<16x16xf32>
    %216 = arith.mulf %214, %215 : vector<16x16xf32>
    %217 = arith.addf %216, %200 : vector<16x16xf32>
    %cst_96 = arith.constant dense<0xFF800000> : vector<16xf32>
    %218 = vector.multi_reduction <maximumf>, %217, %cst_96 [1] : vector<16x16xf32> to vector<16xf32>
    %219 = vector.shape_cast %218 : vector<16xf32> to vector<16x1xf32>
    %220 = vector.broadcast %219 : vector<16x1xf32> to vector<16x16xf32>
    %221 = arith.subf %217, %220 : vector<16x16xf32>
    %222 = math.exp %221 : vector<16x16xf32>
    %cst_97 = arith.constant dense<0.000000e+00> : vector<16xf32>
    %223 = vector.multi_reduction <add>, %222, %cst_97 [1] : vector<16x16xf32> to vector<16xf32>
    %224 = vector.shape_cast %223 : vector<16xf32> to vector<16x1xf32>
    %225 = vector.broadcast %224 : vector<16x1xf32> to vector<16x16xf32>
    %226 = arith.divf %222, %225 : vector<16x16xf32>
    %cst_98 = arith.constant dense<0.000000e+00> : vector<16x32xf32>
    %227 = tpu.matmul %226, %213, %cst_98 {dimension_numbers = #tpu.dot_dimension_numbers<[1], [0], [0], [1], [0, 0, 1, 1], [], []>} : vector<16x16xf32>, vector<16x32xf32>, vector<16x32xf32> -> vector<16x32xf32>
    %228 = vector.extract_strided_slice %209 {offsets = [0, 0], sizes = [32, 64], strides = [1, 1]} : vector<64x64xf32> to vector<32x64xf32>
    %cst_99 = arith.constant dense<0.000000e+00> : vector<16x64xf32>
    %229 = tpu.matmul %227, %228, %cst_99 {dimension_numbers = #tpu.dot_dimension_numbers<[1], [0], [0], [1], [0, 0, 1, 1], [], []>} : vector<16x32xf32>, vector<32x64xf32>, vector<16x64xf32> -> vector<16x64xf32>
    %230 = arith.addf %210, %229 : vector<16x64xf32>
    %231 = vector.extract_strided_slice %206 {offsets = [0, 32], sizes = [16, 32], strides = [1, 1]} : vector<16x64xf32> to vector<16x32xf32>
    %232 = vector.extract_strided_slice %207 {offsets = [0, 32], sizes = [16, 32], strides = [1, 1]} : vector<16x64xf32> to vector<16x32xf32>
    %233 = vector.extract_strided_slice %208 {offsets = [0, 32], sizes = [16, 32], strides = [1, 1]} : vector<16x64xf32> to vector<16x32xf32>
    %cst_100 = arith.constant dense<0.000000e+00> : vector<16x16xf32>
    %234 = tpu.matmul %231, %232, %cst_100 {dimension_numbers = #tpu.dot_dimension_numbers<[1], [1], [0], [0], [0, 0, 1, 0], [], []>} : vector<16x32xf32>, vector<16x32xf32>, vector<16x16xf32> -> vector<16x16xf32>
    %cst_101 = arith.constant 0.176776692 : f32
    %235 = vector.broadcast %cst_101 : f32 to vector<16x16xf32>
    %236 = arith.mulf %234, %235 : vector<16x16xf32>
    %237 = arith.addf %236, %200 : vector<16x16xf32>
    %cst_102 = arith.constant dense<0xFF800000> : vector<16xf32>
    %238 = vector.multi_reduction <maximumf>, %237, %cst_102 [1] : vector<16x16xf32> to vector<16xf32>
    %239 = vector.shape_cast %238 : vector<16xf32> to vector<16x1xf32>
    %240 = vector.broadcast %239 : vector<16x1xf32> to vector<16x16xf32>
    %241 = arith.subf %237, %240 : vector<16x16xf32>
    %242 = math.exp %241 : vector<16x16xf32>
    %cst_103 = arith.constant dense<0.000000e+00> : vector<16xf32>
    %243 = vector.multi_reduction <add>, %242, %cst_103 [1] : vector<16x16xf32> to vector<16xf32>
    %244 = vector.shape_cast %243 : vector<16xf32> to vector<16x1xf32>
    %245 = vector.broadcast %244 : vector<16x1xf32> to vector<16x16xf32>
    %246 = arith.divf %242, %245 : vector<16x16xf32>
    %cst_104 = arith.constant dense<0.000000e+00> : vector<16x32xf32>
    %247 = tpu.matmul %246, %233, %cst_104 {dimension_numbers = #tpu.dot_dimension_numbers<[1], [0], [0], [1], [0, 0, 1, 1], [], []>} : vector<16x16xf32>, vector<16x32xf32>, vector<16x32xf32> -> vector<16x32xf32>
    %248 = vector.extract_strided_slice %209 {offsets = [32, 0], sizes = [32, 64], strides = [1, 1]} : vector<64x64xf32> to vector<32x64xf32>
    %cst_105 = arith.constant dense<0.000000e+00> : vector<16x64xf32>
    %249 = tpu.matmul %247, %248, %cst_105 {dimension_numbers = #tpu.dot_dimension_numbers<[1], [0], [0], [1], [0, 0, 1, 1], [], []>} : vector<16x32xf32>, vector<32x64xf32>, vector<16x64xf32> -> vector<16x64xf32>
    %250 = arith.addf %230, %249 : vector<16x64xf32>
    %c0_106 = arith.constant 0 : index
    %c0_107 = arith.constant 0 : index
    %251 = vector.load %arg21[%c0_106, %c0_107] : memref<1x64xf32, #tpu.memory_space<vmem>>, vector<1x64xf32>
    %252 = vector.broadcast %251 : vector<1x64xf32> to vector<16x64xf32>
    %253 = arith.addf %250, %252 : vector<16x64xf32>
    %254 = arith.addf %190, %253 : vector<16x64xf32>
    %cst_108 = arith.constant dense<0.000000e+00> : vector<16xf32>
    %255 = vector.multi_reduction <add>, %254, %cst_108 [1] : vector<16x64xf32> to vector<16xf32>
    %256 = vector.shape_cast %255 : vector<16xf32> to vector<16x1xf32>
    %cst_109 = arith.constant 6.400000e+01 : f32
    %257 = vector.broadcast %cst_109 : f32 to vector<16x1xf32>
    %258 = arith.divf %256, %257 : vector<16x1xf32>
    %259 = vector.broadcast %258 : vector<16x1xf32> to vector<16x64xf32>
    %260 = arith.subf %254, %259 : vector<16x64xf32>
    %261 = arith.mulf %260, %260 : vector<16x64xf32>
    %cst_110 = arith.constant dense<0.000000e+00> : vector<16xf32>
    %262 = vector.multi_reduction <add>, %261, %cst_110 [1] : vector<16x64xf32> to vector<16xf32>
    %263 = vector.shape_cast %262 : vector<16xf32> to vector<16x1xf32>
    %cst_111 = arith.constant 6.400000e+01 : f32
    %264 = vector.broadcast %cst_111 : f32 to vector<16x1xf32>
    %265 = arith.divf %263, %264 : vector<16x1xf32>
    %266 = vector.broadcast %258 : vector<16x1xf32> to vector<16x64xf32>
    %267 = arith.subf %254, %266 : vector<16x64xf32>
    %cst_112 = arith.constant 9.99999974E-6 : f32
    %268 = vector.broadcast %cst_112 : f32 to vector<16x1xf32>
    %269 = arith.addf %265, %268 : vector<16x1xf32>
    %270 = math.rsqrt %269 : vector<16x1xf32>
    %271 = vector.broadcast %270 : vector<16x1xf32> to vector<16x64xf32>
    %272 = arith.mulf %267, %271 : vector<16x64xf32>
    %c0_113 = arith.constant 0 : index
    %c0_114 = arith.constant 0 : index
    %273 = vector.load %arg22[%c0_113, %c0_114] : memref<2x64xf32, #tpu.memory_space<vmem>>, vector<2x64xf32>
    %274 = vector.extract_strided_slice %273 {offsets = [0, 0], sizes = [1, 64], strides = [1, 1]} : vector<2x64xf32> to vector<1x64xf32>
    %275 = vector.broadcast %274 : vector<1x64xf32> to vector<16x64xf32>
    %276 = arith.mulf %272, %275 : vector<16x64xf32>
    %277 = vector.extract_strided_slice %273 {offsets = [1, 0], sizes = [1, 64], strides = [1, 1]} : vector<2x64xf32> to vector<1x64xf32>
    %278 = vector.broadcast %277 : vector<1x64xf32> to vector<16x64xf32>
    %279 = arith.addf %276, %278 : vector<16x64xf32>
    %c0_115 = arith.constant 0 : index
    %c0_116 = arith.constant 0 : index
    %280 = vector.load %arg23[%c0_115, %c0_116] : memref<64x64xf32, #tpu.memory_space<vmem>>, vector<64x64xf32>
    %cst_117 = arith.constant dense<0.000000e+00> : vector<16x64xf32>
    %281 = tpu.matmul %279, %280, %cst_117 {dimension_numbers = #tpu.dot_dimension_numbers<[1], [0], [0], [1], [0, 0, 1, 1], [], []>} : vector<16x64xf32>, vector<64x64xf32>, vector<16x64xf32> -> vector<16x64xf32>
    %c0_118 = arith.constant 0 : index
    %c0_119 = arith.constant 0 : index
    %282 = vector.load %arg24[%c0_118, %c0_119] : memref<1x64xf32, #tpu.memory_space<vmem>>, vector<1x64xf32>
    %283 = vector.broadcast %282 : vector<1x64xf32> to vector<16x64xf32>
    %284 = arith.addf %281, %283 : vector<16x64xf32>
    %c0_120 = arith.constant 0 : index
    %c0_121 = arith.constant 0 : index
    %285 = vector.load %arg25[%c0_120, %c0_121] : memref<64x128xf32, #tpu.memory_space<vmem>>, vector<64x128xf32>
    %cst_122 = arith.constant dense<0.000000e+00> : vector<16x128xf32>
    %286 = tpu.matmul %182, %285, %cst_122 {dimension_numbers = #tpu.dot_dimension_numbers<[1], [0], [0], [1], [0, 0, 1, 1], [], []>} : vector<16x64xf32>, vector<64x128xf32>, vector<16x128xf32> -> vector<16x128xf32>
    %c0_123 = arith.constant 0 : index
    %c0_124 = arith.constant 0 : index
    %287 = vector.load %arg26[%c0_123, %c0_124] : memref<1x128xf32, #tpu.memory_space<vmem>>, vector<1x128xf32>
    %288 = vector.broadcast %287 : vector<1x128xf32> to vector<16x128xf32>
    %289 = arith.addf %286, %288 : vector<16x128xf32>
    %290 = vector.extract_strided_slice %289 {offsets = [0, 0], sizes = [16, 64], strides = [1, 1]} : vector<16x128xf32> to vector<16x64xf32>
    %291 = vector.extract_strided_slice %289 {offsets = [0, 64], sizes = [16, 64], strides = [1, 1]} : vector<16x128xf32> to vector<16x64xf32>
    %c0_125 = arith.constant 0 : index
    %c0_126 = arith.constant 0 : index
    %292 = vector.load %arg27[%c0_125, %c0_126] : memref<64x64xf32, #tpu.memory_space<vmem>>, vector<64x64xf32>
    %cst_127 = arith.constant 0.000000e+00 : f32
    %293 = vector.broadcast %cst_127 : f32 to vector<16x64xf32>
    %294 = vector.extract_strided_slice %284 {offsets = [0, 0], sizes = [16, 32], strides = [1, 1]} : vector<16x64xf32> to vector<16x32xf32>
    %295 = vector.extract_strided_slice %290 {offsets = [0, 0], sizes = [16, 32], strides = [1, 1]} : vector<16x64xf32> to vector<16x32xf32>
    %296 = vector.extract_strided_slice %291 {offsets = [0, 0], sizes = [16, 32], strides = [1, 1]} : vector<16x64xf32> to vector<16x32xf32>
    %cst_128 = arith.constant dense<0.000000e+00> : vector<16x16xf32>
    %297 = tpu.matmul %294, %295, %cst_128 {dimension_numbers = #tpu.dot_dimension_numbers<[1], [1], [0], [0], [0, 0, 1, 0], [], []>} : vector<16x32xf32>, vector<16x32xf32>, vector<16x16xf32> -> vector<16x16xf32>
    %cst_129 = arith.constant 0.176776692 : f32
    %298 = vector.broadcast %cst_129 : f32 to vector<16x16xf32>
    %299 = arith.mulf %297, %298 : vector<16x16xf32>
    %300 = vector.broadcast %16 : vector<1x16xf32> to vector<16x16xf32>
    %301 = arith.addf %299, %300 : vector<16x16xf32>
    %cst_130 = arith.constant dense<0xFF800000> : vector<16xf32>
    %302 = vector.multi_reduction <maximumf>, %301, %cst_130 [1] : vector<16x16xf32> to vector<16xf32>
    %303 = vector.shape_cast %302 : vector<16xf32> to vector<16x1xf32>
    %304 = vector.broadcast %303 : vector<16x1xf32> to vector<16x16xf32>
    %305 = arith.subf %301, %304 : vector<16x16xf32>
    %306 = math.exp %305 : vector<16x16xf32>
    %cst_131 = arith.constant dense<0.000000e+00> : vector<16xf32>
    %307 = vector.multi_reduction <add>, %306, %cst_131 [1] : vector<16x16xf32> to vector<16xf32>
    %308 = vector.shape_cast %307 : vector<16xf32> to vector<16x1xf32>
    %309 = vector.broadcast %308 : vector<16x1xf32> to vector<16x16xf32>
    %310 = arith.divf %306, %309 : vector<16x16xf32>
    %cst_132 = arith.constant dense<0.000000e+00> : vector<16x32xf32>
    %311 = tpu.matmul %310, %296, %cst_132 {dimension_numbers = #tpu.dot_dimension_numbers<[1], [0], [0], [1], [0, 0, 1, 1], [], []>} : vector<16x16xf32>, vector<16x32xf32>, vector<16x32xf32> -> vector<16x32xf32>
    %312 = vector.extract_strided_slice %292 {offsets = [0, 0], sizes = [32, 64], strides = [1, 1]} : vector<64x64xf32> to vector<32x64xf32>
    %cst_133 = arith.constant dense<0.000000e+00> : vector<16x64xf32>
    %313 = tpu.matmul %311, %312, %cst_133 {dimension_numbers = #tpu.dot_dimension_numbers<[1], [0], [0], [1], [0, 0, 1, 1], [], []>} : vector<16x32xf32>, vector<32x64xf32>, vector<16x64xf32> -> vector<16x64xf32>
    %314 = arith.addf %293, %313 : vector<16x64xf32>
    %315 = vector.extract_strided_slice %284 {offsets = [0, 32], sizes = [16, 32], strides = [1, 1]} : vector<16x64xf32> to vector<16x32xf32>
    %316 = vector.extract_strided_slice %290 {offsets = [0, 32], sizes = [16, 32], strides = [1, 1]} : vector<16x64xf32> to vector<16x32xf32>
    %317 = vector.extract_strided_slice %291 {offsets = [0, 32], sizes = [16, 32], strides = [1, 1]} : vector<16x64xf32> to vector<16x32xf32>
    %cst_134 = arith.constant dense<0.000000e+00> : vector<16x16xf32>
    %318 = tpu.matmul %315, %316, %cst_134 {dimension_numbers = #tpu.dot_dimension_numbers<[1], [1], [0], [0], [0, 0, 1, 0], [], []>} : vector<16x32xf32>, vector<16x32xf32>, vector<16x16xf32> -> vector<16x16xf32>
    %cst_135 = arith.constant 0.176776692 : f32
    %319 = vector.broadcast %cst_135 : f32 to vector<16x16xf32>
    %320 = arith.mulf %318, %319 : vector<16x16xf32>
    %321 = vector.broadcast %16 : vector<1x16xf32> to vector<16x16xf32>
    %322 = arith.addf %320, %321 : vector<16x16xf32>
    %cst_136 = arith.constant dense<0xFF800000> : vector<16xf32>
    %323 = vector.multi_reduction <maximumf>, %322, %cst_136 [1] : vector<16x16xf32> to vector<16xf32>
    %324 = vector.shape_cast %323 : vector<16xf32> to vector<16x1xf32>
    %325 = vector.broadcast %324 : vector<16x1xf32> to vector<16x16xf32>
    %326 = arith.subf %322, %325 : vector<16x16xf32>
    %327 = math.exp %326 : vector<16x16xf32>
    %cst_137 = arith.constant dense<0.000000e+00> : vector<16xf32>
    %328 = vector.multi_reduction <add>, %327, %cst_137 [1] : vector<16x16xf32> to vector<16xf32>
    %329 = vector.shape_cast %328 : vector<16xf32> to vector<16x1xf32>
    %330 = vector.broadcast %329 : vector<16x1xf32> to vector<16x16xf32>
    %331 = arith.divf %327, %330 : vector<16x16xf32>
    %cst_138 = arith.constant dense<0.000000e+00> : vector<16x32xf32>
    %332 = tpu.matmul %331, %317, %cst_138 {dimension_numbers = #tpu.dot_dimension_numbers<[1], [0], [0], [1], [0, 0, 1, 1], [], []>} : vector<16x16xf32>, vector<16x32xf32>, vector<16x32xf32> -> vector<16x32xf32>
    %333 = vector.extract_strided_slice %292 {offsets = [32, 0], sizes = [32, 64], strides = [1, 1]} : vector<64x64xf32> to vector<32x64xf32>
    %cst_139 = arith.constant dense<0.000000e+00> : vector<16x64xf32>
    %334 = tpu.matmul %332, %333, %cst_139 {dimension_numbers = #tpu.dot_dimension_numbers<[1], [0], [0], [1], [0, 0, 1, 1], [], []>} : vector<16x32xf32>, vector<32x64xf32>, vector<16x64xf32> -> vector<16x64xf32>
    %335 = arith.addf %314, %334 : vector<16x64xf32>
    %c0_140 = arith.constant 0 : index
    %c0_141 = arith.constant 0 : index
    %336 = vector.load %arg28[%c0_140, %c0_141] : memref<1x64xf32, #tpu.memory_space<vmem>>, vector<1x64xf32>
    %337 = vector.broadcast %336 : vector<1x64xf32> to vector<16x64xf32>
    %338 = arith.addf %335, %337 : vector<16x64xf32>
    %339 = arith.addf %279, %338 : vector<16x64xf32>
    %cst_142 = arith.constant dense<0.000000e+00> : vector<16xf32>
    %340 = vector.multi_reduction <add>, %339, %cst_142 [1] : vector<16x64xf32> to vector<16xf32>
    %341 = vector.shape_cast %340 : vector<16xf32> to vector<16x1xf32>
    %cst_143 = arith.constant 6.400000e+01 : f32
    %342 = vector.broadcast %cst_143 : f32 to vector<16x1xf32>
    %343 = arith.divf %341, %342 : vector<16x1xf32>
    %344 = vector.broadcast %343 : vector<16x1xf32> to vector<16x64xf32>
    %345 = arith.subf %339, %344 : vector<16x64xf32>
    %346 = arith.mulf %345, %345 : vector<16x64xf32>
    %cst_144 = arith.constant dense<0.000000e+00> : vector<16xf32>
    %347 = vector.multi_reduction <add>, %346, %cst_144 [1] : vector<16x64xf32> to vector<16xf32>
    %348 = vector.shape_cast %347 : vector<16xf32> to vector<16x1xf32>
    %cst_145 = arith.constant 6.400000e+01 : f32
    %349 = vector.broadcast %cst_145 : f32 to vector<16x1xf32>
    %350 = arith.divf %348, %349 : vector<16x1xf32>
    %351 = vector.broadcast %343 : vector<16x1xf32> to vector<16x64xf32>
    %352 = arith.subf %339, %351 : vector<16x64xf32>
    %cst_146 = arith.constant 9.99999974E-6 : f32
    %353 = vector.broadcast %cst_146 : f32 to vector<16x1xf32>
    %354 = arith.addf %350, %353 : vector<16x1xf32>
    %355 = math.rsqrt %354 : vector<16x1xf32>
    %356 = vector.broadcast %355 : vector<16x1xf32> to vector<16x64xf32>
    %357 = arith.mulf %352, %356 : vector<16x64xf32>
    %c0_147 = arith.constant 0 : index
    %c0_148 = arith.constant 0 : index
    %358 = vector.load %arg29[%c0_147, %c0_148] : memref<2x64xf32, #tpu.memory_space<vmem>>, vector<2x64xf32>
    %359 = vector.extract_strided_slice %358 {offsets = [0, 0], sizes = [1, 64], strides = [1, 1]} : vector<2x64xf32> to vector<1x64xf32>
    %360 = vector.broadcast %359 : vector<1x64xf32> to vector<16x64xf32>
    %361 = arith.mulf %357, %360 : vector<16x64xf32>
    %362 = vector.extract_strided_slice %358 {offsets = [1, 0], sizes = [1, 64], strides = [1, 1]} : vector<2x64xf32> to vector<1x64xf32>
    %363 = vector.broadcast %362 : vector<1x64xf32> to vector<16x64xf32>
    %364 = arith.addf %361, %363 : vector<16x64xf32>
    %c0_149 = arith.constant 0 : index
    %c0_150 = arith.constant 0 : index
    %365 = vector.load %arg30[%c0_149, %c0_150] : memref<64x128xf32, #tpu.memory_space<vmem>>, vector<64x128xf32>
    %cst_151 = arith.constant dense<0.000000e+00> : vector<16x128xf32>
    %366 = tpu.matmul %364, %365, %cst_151 {dimension_numbers = #tpu.dot_dimension_numbers<[1], [0], [0], [1], [0, 0, 1, 1], [], []>} : vector<16x64xf32>, vector<64x128xf32>, vector<16x128xf32> -> vector<16x128xf32>
    %c0_152 = arith.constant 0 : index
    %c0_153 = arith.constant 0 : index
    %367 = vector.load %arg31[%c0_152, %c0_153] : memref<1x128xf32, #tpu.memory_space<vmem>>, vector<1x128xf32>
    %368 = vector.broadcast %367 : vector<1x128xf32> to vector<16x128xf32>
    %369 = arith.addf %366, %368 : vector<16x128xf32>
    %cst_154 = arith.constant 5.000000e-01 : f32
    %370 = vector.broadcast %cst_154 : f32 to vector<16x128xf32>
    %371 = arith.mulf %370, %369 : vector<16x128xf32>
    %cst_155 = arith.constant 0.707106769 : f32
    %372 = vector.broadcast %cst_155 : f32 to vector<16x128xf32>
    %373 = arith.mulf %369, %372 : vector<16x128xf32>
    %cst_156 = arith.constant 0.000000e+00 : f32
    %374 = vector.broadcast %cst_156 : f32 to vector<16x128xf32>
    %375 = arith.cmpf oge, %373, %374 : vector<16x128xf32>
    %cst_157 = arith.constant 1.000000e+00 : f32
    %cst_158 = arith.constant -1.000000e+00 : f32
    %376 = vector.broadcast %cst_157 : f32 to vector<16x128xf32>
    %377 = vector.broadcast %cst_158 : f32 to vector<16x128xf32>
    %378 = arith.select %375, %376, %377 : vector<16x128xi1>, vector<16x128xf32>
    %379 = math.absf %373 : vector<16x128xf32>
    %cst_159 = arith.constant 0.327591091 : f32
    %380 = vector.broadcast %cst_159 : f32 to vector<16x128xf32>
    %381 = arith.mulf %380, %379 : vector<16x128xf32>
    %cst_160 = arith.constant 1.000000e+00 : f32
    %382 = vector.broadcast %cst_160 : f32 to vector<16x128xf32>
    %383 = arith.addf %382, %381 : vector<16x128xf32>
    %cst_161 = arith.constant 1.000000e+00 : f32
    %384 = vector.broadcast %cst_161 : f32 to vector<16x128xf32>
    %385 = arith.divf %384, %383 : vector<16x128xf32>
    %cst_162 = arith.constant 1.06140542 : f32
    %386 = vector.broadcast %cst_162 : f32 to vector<16x128xf32>
    %387 = arith.mulf %386, %385 : vector<16x128xf32>
    %cst_163 = arith.constant -1.45315206 : f32
    %388 = vector.broadcast %cst_163 : f32 to vector<16x128xf32>
    %389 = arith.addf %387, %388 : vector<16x128xf32>
    %390 = arith.mulf %389, %385 : vector<16x128xf32>
    %cst_164 = arith.constant 1.42141378 : f32
    %391 = vector.broadcast %cst_164 : f32 to vector<16x128xf32>
    %392 = arith.addf %390, %391 : vector<16x128xf32>
    %393 = arith.mulf %392, %385 : vector<16x128xf32>
    %cst_165 = arith.constant -0.284496725 : f32
    %394 = vector.broadcast %cst_165 : f32 to vector<16x128xf32>
    %395 = arith.addf %393, %394 : vector<16x128xf32>
    %396 = arith.mulf %395, %385 : vector<16x128xf32>
    %cst_166 = arith.constant 0.254829586 : f32
    %397 = vector.broadcast %cst_166 : f32 to vector<16x128xf32>
    %398 = arith.addf %396, %397 : vector<16x128xf32>
    %399 = arith.mulf %398, %385 : vector<16x128xf32>
    %cst_167 = arith.constant 0.000000e+00 : f32
    %400 = vector.broadcast %cst_167 : f32 to vector<16x128xf32>
    %401 = arith.subf %400, %379 : vector<16x128xf32>
    %402 = arith.mulf %401, %379 : vector<16x128xf32>
    %403 = math.exp %402 : vector<16x128xf32>
    %404 = arith.mulf %399, %403 : vector<16x128xf32>
    %cst_168 = arith.constant 1.000000e+00 : f32
    %405 = vector.broadcast %cst_168 : f32 to vector<16x128xf32>
    %406 = arith.subf %405, %404 : vector<16x128xf32>
    %407 = arith.mulf %378, %406 : vector<16x128xf32>
    %cst_169 = arith.constant 1.000000e+00 : f32
    %408 = vector.broadcast %cst_169 : f32 to vector<16x128xf32>
    %409 = arith.addf %408, %407 : vector<16x128xf32>
    %410 = arith.mulf %371, %409 : vector<16x128xf32>
    %c0_170 = arith.constant 0 : index
    %c0_171 = arith.constant 0 : index
    %411 = vector.load %arg32[%c0_170, %c0_171] : memref<128x64xf32, #tpu.memory_space<vmem>>, vector<128x64xf32>
    %cst_172 = arith.constant dense<0.000000e+00> : vector<16x64xf32>
    %412 = tpu.matmul %410, %411, %cst_172 {dimension_numbers = #tpu.dot_dimension_numbers<[1], [0], [0], [1], [0, 0, 1, 1], [], []>} : vector<16x128xf32>, vector<128x64xf32>, vector<16x64xf32> -> vector<16x64xf32>
    %413 = arith.addf %364, %412 : vector<16x64xf32>
    %c0_173 = arith.constant 0 : index
    %c0_174 = arith.constant 0 : index
    %414 = vector.load %arg33[%c0_173, %c0_174] : memref<1x64xf32, #tpu.memory_space<vmem>>, vector<1x64xf32>
    %415 = vector.broadcast %414 : vector<1x64xf32> to vector<16x64xf32>
    %416 = arith.addf %413, %415 : vector<16x64xf32>
    %cst_175 = arith.constant dense<0.000000e+00> : vector<16xf32>
    %417 = vector.multi_reduction <add>, %416, %cst_175 [1] : vector<16x64xf32> to vector<16xf32>
    %418 = vector.shape_cast %417 : vector<16xf32> to vector<16x1xf32>
    %cst_176 = arith.constant 6.400000e+01 : f32
    %419 = vector.broadcast %cst_176 : f32 to vector<16x1xf32>
    %420 = arith.divf %418, %419 : vector<16x1xf32>
    %421 = vector.broadcast %420 : vector<16x1xf32> to vector<16x64xf32>
    %422 = arith.subf %416, %421 : vector<16x64xf32>
    %423 = arith.mulf %422, %422 : vector<16x64xf32>
    %cst_177 = arith.constant dense<0.000000e+00> : vector<16xf32>
    %424 = vector.multi_reduction <add>, %423, %cst_177 [1] : vector<16x64xf32> to vector<16xf32>
    %425 = vector.shape_cast %424 : vector<16xf32> to vector<16x1xf32>
    %cst_178 = arith.constant 6.400000e+01 : f32
    %426 = vector.broadcast %cst_178 : f32 to vector<16x1xf32>
    %427 = arith.divf %425, %426 : vector<16x1xf32>
    %428 = vector.broadcast %420 : vector<16x1xf32> to vector<16x64xf32>
    %429 = arith.subf %416, %428 : vector<16x64xf32>
    %cst_179 = arith.constant 9.99999974E-6 : f32
    %430 = vector.broadcast %cst_179 : f32 to vector<16x1xf32>
    %431 = arith.addf %427, %430 : vector<16x1xf32>
    %432 = math.rsqrt %431 : vector<16x1xf32>
    %433 = vector.broadcast %432 : vector<16x1xf32> to vector<16x64xf32>
    %434 = arith.mulf %429, %433 : vector<16x64xf32>
    %c0_180 = arith.constant 0 : index
    %c0_181 = arith.constant 0 : index
    %435 = vector.load %arg34[%c0_180, %c0_181] : memref<2x64xf32, #tpu.memory_space<vmem>>, vector<2x64xf32>
    %436 = vector.extract_strided_slice %435 {offsets = [0, 0], sizes = [1, 64], strides = [1, 1]} : vector<2x64xf32> to vector<1x64xf32>
    %437 = vector.broadcast %436 : vector<1x64xf32> to vector<16x64xf32>
    %438 = arith.mulf %434, %437 : vector<16x64xf32>
    %439 = vector.extract_strided_slice %435 {offsets = [1, 0], sizes = [1, 64], strides = [1, 1]} : vector<2x64xf32> to vector<1x64xf32>
    %440 = vector.broadcast %439 : vector<1x64xf32> to vector<16x64xf32>
    %441 = arith.addf %438, %440 : vector<16x64xf32>
    %cst_182 = arith.constant dense<0.000000e+00> : vector<16x128xf32>
    %442 = tpu.matmul %441, %10, %cst_182 {dimension_numbers = #tpu.dot_dimension_numbers<[1], [1], [0], [0], [0, 0, 1, 0], [], []>} : vector<16x64xf32>, vector<128x64xf32>, vector<16x128xf32> -> vector<16x128xf32>
    %cst_183 = arith.constant dense<0xFF800000> : vector<16xf32>
    %443 = vector.multi_reduction <maximumf>, %442, %cst_183 [1] : vector<16x128xf32> to vector<16xf32>
    %444 = vector.shape_cast %443 : vector<16xf32> to vector<16x1xf32>
    %445 = vector.broadcast %444 : vector<16x1xf32> to vector<16x128xf32>
    %446 = arith.subf %442, %445 : vector<16x128xf32>
    %447 = math.exp %446 : vector<16x128xf32>
    %cst_184 = arith.constant dense<0.000000e+00> : vector<16xf32>
    %448 = vector.multi_reduction <add>, %447, %cst_184 [1] : vector<16x128xf32> to vector<16xf32>
    %449 = vector.shape_cast %448 : vector<16xf32> to vector<16x1xf32>
    %450 = math.log %449 : vector<16x1xf32>
    %451 = arith.addf %450, %444 : vector<16x1xf32>
    %452 = tpu.iota {dimensions = array<i32: 1>} : vector<16x128xi32>
    %453 = vector.broadcast %5 : vector<16x1xi32> to vector<16x128xi32>
    %454 = arith.cmpi eq, %452, %453 : vector<16x128xi32>
    %cst_185 = arith.constant 0.000000e+00 : f32
    %455 = vector.broadcast %cst_185 : f32 to vector<16x128xf32>
    %456 = arith.select %454, %442, %455 : vector<16x128xi1>, vector<16x128xf32>
    %cst_186 = arith.constant dense<0.000000e+00> : vector<16xf32>
    %457 = vector.multi_reduction <add>, %456, %cst_186 [1] : vector<16x128xf32> to vector<16xf32>
    %458 = vector.shape_cast %457 : vector<16xf32> to vector<16x1xf32>
    %459 = arith.subf %451, %458 : vector<16x1xf32>
    %c1_i32 = arith.constant 1 : i32
    %460 = vector.broadcast %c1_i32 : i32 to vector<16x1xi32>
    %461 = arith.cmpi ne, %5, %460 : vector<16x1xi32>
    %c0_i32_187 = arith.constant 0 : i32
    %462 = vector.broadcast %c0_i32_187 : i32 to vector<16x1xi32>
    %463 = arith.cmpi sge, %5, %462 : vector<16x1xi32>
    %464 = arith.andi %461, %463 : vector<16x1xi1>
    %465 = arith.extui %464 : vector<16x1xi1> to vector<16x1xi32>
    %466 = arith.sitofp %465 : vector<16x1xi32> to vector<16x1xf32>
    %467 = arith.mulf %459, %466 : vector<16x1xf32>
    %468 = vector.shape_cast %467 : vector<16x1xf32> to vector<1x16x1xf32>
    %cst_188 = arith.constant dense<0.000000e+00> : vector<1xf32>
    %469 = vector.multi_reduction <add>, %468, %cst_188 [1, 2] : vector<1x16x1xf32> to vector<1xf32>
    %470 = vector.shape_cast %469 : vector<1xf32> to vector<1x1x1xf32>
    %471 = vector.extract %470[0, 0, 0] : f32 from vector<1x1x1xf32>
    %472 = vector.shape_cast %466 : vector<16x1xf32> to vector<1x16x1xf32>
    %cst_189 = arith.constant dense<0.000000e+00> : vector<1xf32>
    %473 = vector.multi_reduction <add>, %472, %cst_189 [1, 2] : vector<1x16x1xf32> to vector<1xf32>
    %474 = vector.shape_cast %473 : vector<1xf32> to vector<1x1x1xf32>
    %475 = vector.extract %474[0, 0, 0] : f32 from vector<1x1x1xf32>
    %476 = tpu.iota {dimensions = array<i32: 2>} : vector<1x1x128xi32>
    %c0_i32_190 = arith.constant 0 : i32
    %477 = vector.broadcast %c0_i32_190 : i32 to vector<1x1x128xi32>
    %478 = arith.cmpi eq, %476, %477 : vector<1x1x128xi32>
    %cst_191 = arith.constant 0.000000e+00 : f32
    %479 = vector.broadcast %471 : f32 to vector<1x1x128xf32>
    %480 = vector.broadcast %cst_191 : f32 to vector<1x1x128xf32>
    %481 = arith.select %478, %479, %480 : vector<1x1x128xi1>, vector<1x1x128xf32>
    %c1_i32_192 = arith.constant 1 : i32
    %482 = vector.broadcast %c1_i32_192 : i32 to vector<1x1x128xi32>
    %483 = arith.cmpi eq, %476, %482 : vector<1x1x128xi32>
    %cst_193 = arith.constant 0.000000e+00 : f32
    %484 = vector.broadcast %475 : f32 to vector<1x1x128xf32>
    %485 = vector.broadcast %cst_193 : f32 to vector<1x1x128xf32>
    %486 = arith.select %483, %484, %485 : vector<1x1x128xi1>, vector<1x1x128xf32>
    %487 = arith.addf %481, %486 : vector<1x1x128xf32>
    %c0_194 = arith.constant 0 : index
    %c0_195 = arith.constant 0 : index
    %c0_196 = arith.constant 0 : index
    %488 = vector.load %arg35[%c0_194, %c0_195, %c0_196] : memref<1x1x128xf32, #tpu.memory_space<vmem>>, vector<1x1x128xf32>
    tpu.vector_store %arg35[%c0_194, %c0_195, %c0_196], %487 {strides = array<i32>} : memref<1x1x128xf32, #tpu.memory_space<vmem>>, vector<1x1x128xf32>,
    return
  }
  func.func @transform_0(%arg0: i32) -> (i32, i32, i32) {
    %c0_i32 = arith.constant 0 : i32
    %c0_i32_0 = arith.constant 0 : i32
    %c0_i32_1 = arith.constant 0 : i32
    return %arg0, %c0_i32, %c0_i32_0 : i32, i32, i32
  }
  func.func @transform_1(%arg0: i32) -> (i32, i32, i32) {
    %c0_i32 = arith.constant 0 : i32
    %c0_i32_0 = arith.constant 0 : i32
    %c0_i32_1 = arith.constant 0 : i32
    return %arg0, %c0_i32, %c0_i32_0 : i32, i32, i32
  }
  func.func @transform_2(%arg0: i32) -> (i32, i32, i32) {
    %c0_i32 = arith.constant 0 : i32
    %c0_i32_0 = arith.constant 0 : i32
    %c0_i32_1 = arith.constant 0 : i32
    return %arg0, %c0_i32, %c0_i32_0 : i32, i32, i32
  }
  func.func @transform_3(%arg0: i32) -> (i32, i32, i32) {
    %c0_i32 = arith.constant 0 : i32
    %c0_i32_0 = arith.constant 0 : i32
    %c0_i32_1 = arith.constant 0 : i32
    return %arg0, %c0_i32, %c0_i32_0 : i32, i32, i32
  }
  func.func @transform_4(%arg0: i32) -> (i32, i32, i32) {
    %c0_i32 = arith.constant 0 : i32
    %c0_i32_0 = arith.constant 0 : i32
    %c0_i32_1 = arith.constant 0 : i32
    return %arg0, %c0_i32, %c0_i32_0 : i32, i32, i32
  }
  func.func @transform_5(%arg0: i32) -> (i32, i32) {
    %c0_i32 = arith.constant 0 : i32
    %c0_i32_0 = arith.constant 0 : i32
    %c0_i32_1 = arith.constant 0 : i32
    return %c0_i32, %c0_i32_0 : i32, i32
  }
  func.func @transform_6(%arg0: i32) -> (i32, i32) {
    %c0_i32 = arith.constant 0 : i32
    %c0_i32_0 = arith.constant 0 : i32
    %c0_i32_1 = arith.constant 0 : i32
    return %c0_i32, %c0_i32_0 : i32, i32
  }
  func.func @transform_7(%arg0: i32) -> (i32, i32) {
    %c0_i32 = arith.constant 0 : i32
    %c0_i32_0 = arith.constant 0 : i32
    %c0_i32_1 = arith.constant 0 : i32
    return %c0_i32, %c0_i32_0 : i32, i32
  }
  func.func @transform_8(%arg0: i32) -> (i32, i32) {
    %c0_i32 = arith.constant 0 : i32
    %c0_i32_0 = arith.constant 0 : i32
    %c0_i32_1 = arith.constant 0 : i32
    return %c0_i32, %c0_i32_0 : i32, i32
  }
  func.func @transform_9(%arg0: i32) -> (i32, i32) {
    %c0_i32 = arith.constant 0 : i32
    %c0_i32_0 = arith.constant 0 : i32
    %c0_i32_1 = arith.constant 0 : i32
    return %c0_i32, %c0_i32_0 : i32, i32
  }
  func.func @transform_10(%arg0: i32) -> (i32, i32) {
    %c0_i32 = arith.constant 0 : i32
    %c0_i32_0 = arith.constant 0 : i32
    %c0_i32_1 = arith.constant 0 : i32
    return %c0_i32, %c0_i32_0 : i32, i32
  }
  func.func @transform_11(%arg0: i32) -> (i32, i32) {
    %c0_i32 = arith.constant 0 : i32
    %c0_i32_0 = arith.constant 0 : i32
    %c0_i32_1 = arith.constant 0 : i32
    return %c0_i32, %c0_i32_0 : i32, i32
  }
  func.func @transform_12(%arg0: i32) -> (i32, i32) {
    %c0_i32 = arith.constant 0 : i32
    %c0_i32_0 = arith.constant 0 : i32
    %c0_i32_1 = arith.constant 0 : i32
    return %c0_i32, %c0_i32_0 : i32, i32
  }
  func.func @transform_13(%arg0: i32) -> (i32, i32) {
    %c0_i32 = arith.constant 0 : i32
    %c0_i32_0 = arith.constant 0 : i32
    %c0_i32_1 = arith.constant 0 : i32
    return %c0_i32, %c0_i32_0 : i32, i32
  }
  func.func @transform_14(%arg0: i32) -> (i32, i32) {
    %c0_i32 = arith.constant 0 : i32
    %c0_i32_0 = arith.constant 0 : i32
    %c0_i32_1 = arith.constant 0 : i32
    return %c0_i32, %c0_i32_0 : i32, i32
  }
  func.func @transform_15(%arg0: i32) -> (i32, i32) {
    %c0_i32 = arith.constant 0 : i32
    %c0_i32_0 = arith.constant 0 : i32
    %c0_i32_1 = arith.constant 0 : i32
    return %c0_i32, %c0_i32_0 : i32, i32
  }
  func.func @transform_16(%arg0: i32) -> (i32, i32) {
    %c0_i32 = arith.constant 0 : i32
    %c0_i32_0 = arith.constant 0 : i32
    %c0_i32_1 = arith.constant 0 : i32
    return %c0_i32, %c0_i32_0 : i32, i32
  }
  func.func @transform_17(%arg0: i32) -> (i32, i32) {
    %c0_i32 = arith.constant 0 : i32
    %c0_i32_0 = arith.constant 0 : i32
    %c0_i32_1 = arith.constant 0 : i32
    return %c0_i32, %c0_i32_0 : i32, i32
  }
  func.func @transform_18(%arg0: i32) -> (i32, i32) {
    %c0_i32 = arith.constant 0 : i32
    %c0_i32_0 = arith.constant 0 : i32
    %c0_i32_1 = arith.constant 0 : i32
    return %c0_i32, %c0_i32_0 : i32, i32
  }
  func.func @transform_19(%arg0: i32) -> (i32, i32) {
    %c0_i32 = arith.constant 0 : i32
    %c0_i32_0 = arith.constant 0 : i32
    %c0_i32_1 = arith.constant 0 : i32
    return %c0_i32, %c0_i32_0 : i32, i32
  }
  func.func @transform_20(%arg0: i32) -> (i32, i32) {
    %c0_i32 = arith.constant 0 : i32
    %c0_i32_0 = arith.constant 0 : i32
    %c0_i32_1 = arith.constant 0 : i32
    return %c0_i32, %c0_i32_0 : i32, i32
  }
  func.func @transform_21(%arg0: i32) -> (i32, i32) {
    %c0_i32 = arith.constant 0 : i32
    %c0_i32_0 = arith.constant 0 : i32
    %c0_i32_1 = arith.constant 0 : i32
    return %c0_i32, %c0_i32_0 : i32, i32
  }
  func.func @transform_22(%arg0: i32) -> (i32, i32) {
    %c0_i32 = arith.constant 0 : i32
    %c0_i32_0 = arith.constant 0 : i32
    %c0_i32_1 = arith.constant 0 : i32
    return %c0_i32, %c0_i32_0 : i32, i32
  }
  func.func @transform_23(%arg0: i32) -> (i32, i32) {
    %c0_i32 = arith.constant 0 : i32
    %c0_i32_0 = arith.constant 0 : i32
    %c0_i32_1 = arith.constant 0 : i32
    return %c0_i32, %c0_i32_0 : i32, i32
  }
  func.func @transform_24(%arg0: i32) -> (i32, i32) {
    %c0_i32 = arith.constant 0 : i32
    %c0_i32_0 = arith.constant 0 : i32
    %c0_i32_1 = arith.constant 0 : i32
    return %c0_i32, %c0_i32_0 : i32, i32
  }
  func.func @transform_25(%arg0: i32) -> (i32, i32) {
    %c0_i32 = arith.constant 0 : i32
    %c0_i32_0 = arith.constant 0 : i32
    %c0_i32_1 = arith.constant 0 : i32
    return %c0_i32, %c0_i32_0 : i32, i32
  }
  func.func @transform_26(%arg0: i32) -> (i32, i32) {
    %c0_i32 = arith.constant 0 : i32
    %c0_i32_0 = arith.constant 0 : i32
    %c0_i32_1 = arith.constant 0 : i32
    return %c0_i32, %c0_i32_0 : i32, i32
  }
  func.func @transform_27(%arg0: i32) -> (i32, i32) {
    %c0_i32 = arith.constant 0 : i32
    %c0_i32_0 = arith.constant 0 : i32
    %c0_i32_1 = arith.constant 0 : i32
    return %c0_i32, %c0_i32_0 : i32, i32
  }
  func.func @transform_28(%arg0: i32) -> (i32, i32) {
    %c0_i32 = arith.constant 0 : i32
    %c0_i32_0 = arith.constant 0 : i32
    %c0_i32_1 = arith.constant 0 : i32
    return %c0_i32, %c0_i32_0 : i32, i32
  }
  func.func @transform_29(%arg0: i32) -> (i32, i32) {
    %c0_i32 = arith.constant 0 : i32
    %c0_i32_0 = arith.constant 0 : i32
    %c0_i32_1 = arith.constant 0 : i32
    return %c0_i32, %c0_i32_0 : i32, i32
  }
  func.func @transform_30(%arg0: i32) -> (i32, i32) {
    %c0_i32 = arith.constant 0 : i32
    %c0_i32_0 = arith.constant 0 : i32
    %c0_i32_1 = arith.constant 0 : i32
    return %c0_i32, %c0_i32_0 : i32, i32
  }
  func.func @transform_31(%arg0: i32) -> (i32, i32) {
    %c0_i32 = arith.constant 0 : i32
    %c0_i32_0 = arith.constant 0 : i32
    %c0_i32_1 = arith.constant 0 : i32
    return %c0_i32, %c0_i32_0 : i32, i32
  }
  func.func @transform_32(%arg0: i32) -> (i32, i32) {
    %c0_i32 = arith.constant 0 : i32
    %c0_i32_0 = arith.constant 0 : i32
    %c0_i32_1 = arith.constant 0 : i32
    return %c0_i32, %c0_i32_0 : i32, i32
  }
  func.func @transform_33(%arg0: i32) -> (i32, i32) {
    %c0_i32 = arith.constant 0 : i32
    %c0_i32_0 = arith.constant 0 : i32
    %c0_i32_1 = arith.constant 0 : i32
    return %c0_i32, %c0_i32_0 : i32, i32
  }
  func.func @transform_34(%arg0: i32) -> (i32, i32, i32) {
    %c0_i32 = arith.constant 0 : i32
    %c0_i32_0 = arith.constant 0 : i32
    %c0_i32_1 = arith.constant 0 : i32
    return %arg0, %c0_i32, %c0_i32_0 : i32, i32, i32
  }
}

</mosaic_0001>

<bundles_post_ra>
// kernel: seq2seq_forward.1
= control target key start
LH: loop header
LB: loop body
LE: loop exit
PB: predicated region body
PF: predicated region fallthrough
CT: control target
= control target key end

     0   :  { %s6695_s6 = smov 1   ;;  %s6696_s10 = smov 2   ;;  %s7716_s0 = inlined_call_operand.smem [shape: u32[35], index: -1, kind: input, shape index: {}] }
   0x1   :  { %s6760_s5 = sld [smem:[%s7716_s0]]   ;;  %s6697_s14 = smov 3  }
   0x2   :  { %s6765_s9 = sld [smem:[%s7716_s0 + %s6695_s6]]   ;;  %s6698_s18 = smov 4  }
   0x3   :  { %s6770_s13 = sld [smem:[%s7716_s0 + %s6696_s10]]   ;;  %s6699_s22 = smov 5  }
   0x4   :  { %s6775_s17 = sld [smem:[%s7716_s0 + %s6697_s14]]   ;;  %s6700_s26 = smov 6  }
   0x5   :  { %s6780_s21 = sld [smem:[%s7716_s0 + %s6698_s18]]   ;;  %s6701_s30 = smov 7  }
   0x6   :  { %s6785_s25 = sld [smem:[%s7716_s0 + %s6699_s22]]   ;;  %s6702_s4 = smov 8  }
   0x7   :  { %s6790_s29 = sld [smem:[%s7716_s0 + %s6700_s26]]   ;;  %s6703_s10 = smov 9  }
   0x8   :  { %7731 = sst [smem:[#allocation29_spill]] %s6765_s9  ;;  %s6704_s15 = smov 10  }
   0x9   :  { %7732 = sst [smem:[#allocation30_spill]] %s6770_s13  ;;  %s6705_s20 = smov 11  }
   0xa   :  { %7733 = sst [smem:[#allocation31_spill]] %s6775_s17  ;;  %s6706_s26 = smov 12  }
   0xb   :  { %7734 = sst [smem:[#allocation32_spill]] %s6780_s21  ;;  %s6707_s1 = smov 13  }
   0xc   :  { %s6795_s3 = sld [smem:[%s7716_s0 + %s6701_s30]]   ;;  %s6708_s7 = smov 14  }
   0xd   :  { %7735 = sst [smem:[#allocation33_spill]] %s6790_s29  ;;  %s6710_s22 = smov 16  }
   0xe   :  { %s6800_s8 = sld [smem:[%s7716_s0 + %s6702_s4]]   ;;  %s6711_s28 = smov 17  }
   0xf   :  { %s6805_s14 = sld [smem:[%s7716_s0 + %s6703_s10]]  }
  0x10   :  { %s6810_s19 = sld [smem:[%s7716_s0 + %s6704_s15]]   ;;  %s6709_s15 = smov 15  }
  0x11   :  { %s6815_s24 = sld [smem:[%s7716_s0 + %s6705_s20]]  }
  0x12   :  { %s6820_s30 = sld [smem:[%s7716_s0 + %s6706_s26]]  }
  0x13   :  { %s6825_s6 = sld [smem:[%s7716_s0 + %s6707_s1]]  }
  0x14   :  { %7736 = sst [smem:[#allocation34_spill]] %s6800_s8 }
  0x15   :  { %7737 = sst [smem:[#allocation35_spill]] %s6805_s14 }
  0x16   :  { %7738 = sst [smem:[#allocation36_spill]] %s6810_s19 }
  0x17   :  { %7739 = sst [smem:[#allocation37_spill]] %s6815_s24 }
  0x18   :  { %7740 = sst [smem:[#allocation38_spill]] %s6820_s30 }
  0x19   :  { %7741 = sst [smem:[#allocation39_spill]] %s6825_s6 }
  0x1a   :  { %s6830_s12 = sld [smem:[%s7716_s0 + %s6708_s7]]   ;;  %s6712_s7 = smov 18  }
  0x1b   :  { %s6835_s20 = sld [smem:[%s7716_s0 + %s6709_s15]]   ;;  %s6713_s15 = smov 19  }
  0x1c   :  { %s6840_s27 = sld [smem:[%s7716_s0 + %s6710_s22]]   ;;  %s6714_s22 = smov 20  }
  0x1d   :  { %s6845_s4 = sld [smem:[%s7716_s0 + %s6711_s28]]   ;;  %s6715_s28 = smov 21  }
  0x1e   :  { %s6850_s21 = sld [smem:[%s7716_s0 + %s6712_s7]]   ;;  %s6716_s7 = smov 22  }
  0x1f   :  { %s6865_s17 = sld [smem:[%s7716_s0 + %s6715_s28]]   ;;  %s6719_s28 = smov 25  }
  0x20   :  { %7742 = sst [smem:[#allocation40_spill]] %s6830_s12 }
  0x21   :  { %7743 = sst [smem:[#allocation41_spill]] %s6835_s20 }
  0x22   :  { %7744 = sst [smem:[#allocation42_spill]] %s6840_s27 }
  0x23   :  { %7745 = sst [smem:[#allocation43_spill]] %s6845_s4 }
  0x24   :  { %s6855_s20 = sld [smem:[%s7716_s0 + %s6713_s15]]   ;;  %s6717_s15 = smov 23  }
  0x25   :  { %s6860_s27 = sld [smem:[%s7716_s0 + %s6714_s22]]   ;;  %s6718_s22 = smov 24  }
  0x26   :  { %s6870_s6 = sld [smem:[%s7716_s0 + %s6716_s7]]   ;;  %s6720_s7 = smov 26  }
  0x27   :  { %s6880_s12 = sld [smem:[%s7716_s0 + %s6718_s22]]   ;;  %s6722_s22 = smov 28  }
  0x28   :  { %s6885_s4 = sld [smem:[%s7716_s0 + %s6719_s28]]   ;;  %s6723_s28 = smov 29  }
  0x29   :  { %s6900_s30 = sld [smem:[%s7716_s0 + %s6722_s22]]   ;;  %s6726_s22 = smov 32  }
  0x2a   :  { %7746 = sst [smem:[#allocation44_spill]] %s6855_s20 }
  0x2b   :  { %s6875_s20 = sld [smem:[%s7716_s0 + %s6717_s15]]   ;;  %s6721_s15 = smov 27  }
  0x2c   :  { %7747 = sst [smem:[#allocation45_spill]] %s6870_s6 }
  0x2d   :  { %s6890_s6 = sld [smem:[%s7716_s0 + %s6720_s7]]   ;;  %s6724_s7 = smov 30  }
  0x2e   :  { %7748 = sst [smem:[#allocation46_spill]] %s6885_s4 }
  0x2f   :  { %s6895_s24 = sld [smem:[%s7716_s0 + %s6721_s15]]   ;;  %s6725_s15 = smov 31  }
  0x30   :  { %s6905_s13 = sld [smem:[%s7716_s0 + %s6723_s28]]   ;;  %s6727_s28 = smov 33  }
  0x31   :  { %s6910_s19 = sld [smem:[%s7716_s0 + %s6724_s7]]   ;;  %s6728_s7 = smov 34  }
  0x32   :  { %s6915_s14 = sld [smem:[%s7716_s0 + %s6725_s15]]  }
  0x33   :  { %s6920_s9 = sld [smem:[%s7716_s0 + %s6726_s22]]  }
  0x34   :  { %s6925_s8 = sld [smem:[%s7716_s0 + %s6727_s28]]  }
  0x35   :  { %s6930_s29 = sld [smem:[%s7716_s0 + %s6728_s7]]  }
  0x36   :  { %74 = vsyncpa [#allocation3], 0 }
  0x37   :  { %75 = vsyncpa [#allocation5], 0 }
  0x38   :  { %76 = vsyncpa [#allocation8], 0 }
  0x39   :  { %77 = vsyncpa [#allocation11], 0 }
  0x3a   :  { %78 = vsyncpa [#allocation14], 0 }
  0x3b   :  { %79 = vsyncpa [#allocation17], 0 }
  0x3c   :  { %80 = vsyncpa [#allocation20], 0  ;;  %s6932_s15 = smov 0  }
  0x3d LB: > { %s7749_s4 = sld [smem:[#allocation46_spill]]  ;;  %s6729_s16 = smov [#allocation4]   ;;  %s6693_s15 = sphi %s6932_s15, %s86_s15  }
  0x3e   : > { %s922_s0 = sshll.u32 %s6729_s16, 4  ;;  %s6938_s18 = sadd.s32 4294967295, %s6693_s15   ;;  %s6943_s0 = int_to_ptr.vmem [resolvable:$true] %s922_s0 }
  0x3f   : > { %p4831_p0 = scmp.ge.s32.totalorder %s6693_s15, 1  ;;  %p856_p1 = scmp.lt.s32.totalorder %s6693_s15, 3 }
  0x40   : > { %p7724_p2 = scmp.eq.s32.totalorder %s6938_s18, 0  ;;  %s6730_s23 = smov [#allocation7]  }
  0x41   : > { %p6945_p3 = pnand %p4831_p0, %p856_p1  ;;  %s947_s26 = sshll.u32 %s6730_s23, 4  ;;  %s6951_s26 = int_to_ptr.vmem [resolvable:$true] %s947_s26 }
  0x42   : > { %s6731_s28 = smov [#allocation10]   ;;  %s6732_s7 = smov [#allocation13]  }
  0x43   : > { %s7750_s22 = scalar_select %p6945_p3, 1, 0 }
  0x44   : > { %p6025_p4 = pneg %p6945_p3  ;;  %s971_s1 = sshll.u32 %s6731_s28, 4  ;;  %s6959_s1 = int_to_ptr.vmem [resolvable:$true] %s971_s1 }
  0x45   : > { %s995_s10 = sshll.u32 %s6732_s7, 4  ;;  %s6295_s11 = scalar_lea.hbm %s6860_s27, 16  ;;  %s6961_s10 = int_to_ptr.vmem [resolvable:$true] %s995_s10 }
  0x46   : > { %p6955_p5 = pnand %p7724_p2, %p6025_p4  ;;  %p6296_p6 = scmp.ne.s32.totalorder %s6860_s27, %s6295_s11 }
  0x47   : > { %p6302_p10 = scmp.lt.u32.totalorder %s6295_s11, %s6860_s27 }
  0x48   : > { %p6967_p7 = pneg %p6955_p5 }
  0x4a   : > { %p6298_p8 = pnand %p6967_p7, %p6296_p6 }
  0x4c   : > { %p6299_p9 = pneg %p6298_p8 }
  0x4e   : > { %p6304_p11 = pnand %p6302_p10, %p6299_p9 }
  0x50   : > { %6307 = shalt.err (!%p6304_p11)
}
  0x51   : > { %s6308_s23 = scalar_lea.vmem %s6943_s0, 16  ;;  %s6315_s28 = scalar_lea.vmem %s6943_s0, 32 }
  0x52   : > { %p6309_p12 = scmp.ne.s32.totalorder %s6943_s0, %s6308_s23  ;;  %p6316_p1 = scmp.lt.s32.totalorder %s6943_s0, %s6943_s0 }
  0x53   : > { %p6317_p4 = scmp.lt.s32.totalorder %s6315_s28, %s6308_s23 }
  0x54   : > { %p6311_p13 = pnand %p6309_p12, %p6967_p7 }
  0x55   : > { %p6318_p2 = por %p6317_p4, %p6316_p1 }
  0x56   : > { %p6312_p0 = pneg %p6311_p13 }
  0x58   : > { %p6319_p6 = pnand %p6318_p2, %p6312_p0 }
  0x5a   : > { %6322 = shalt.err (!%p6319_p6)
}
  0x5b   : > { %6031 = dma.hbm_to_vmem [thread:$0]  (!%p6955_p5), %s6860_s27, 16, %s6943_s0, [#allocation5]  }
  0x5c   : > { %s6323_s7 = scalar_lea.hbm %s6875_s20, 16 }
  0x5d   : > { %p6324_p8 = scmp.ne.s32.totalorder %s6875_s20, %s6323_s7  ;;  %p6330_p11 = scmp.lt.u32.totalorder %s6323_s7, %s6875_s20 }
  0x5f   : > { %p6326_p9 = pnand %p6324_p8, %p6967_p7 }
  0x61   : > { %p6327_p10 = pneg %p6326_p9 }
  0x63   : > { %p6332_p12 = pnand %p6330_p11, %p6327_p10 }
  0x65   : > { %6335 = shalt.err (!%p6332_p12)
}
  0x66   : > { %s6336_s11 = scalar_lea.vmem %s6951_s26, 16  ;;  %s6343_s23 = scalar_lea.vmem %s6951_s26, 32 }
  0x67   : > { %p6337_p2 = scmp.ne.s32.totalorder %s6951_s26, %s6336_s11  ;;  %p6344_p1 = scmp.lt.s32.totalorder %s6951_s26, %s6951_s26 }
  0x68   : > { %p6345_p4 = scmp.lt.s32.totalorder %s6343_s23, %s6336_s11 }
  0x69   : > { %p6339_p13 = pnand %p6337_p2, %p6967_p7 }
  0x6a   : > { %p6346_p6 = por %p6345_p4, %p6344_p1 }
  0x6b   : > { %p6340_p0 = pneg %p6339_p13 }
  0x6d   : > { %p6347_p8 = pnand %p6346_p6, %p6340_p0 }
  0x6f   : > { %6350 = shalt.err (!%p6347_p8)
}
  0x70   : > { %6037 = dma.hbm_to_vmem [thread:$0]  (!%p6955_p5), %s6875_s20, 16, %s6951_s26, [#allocation8]  }
  0x71   : > { %s6351_s0 = scalar_lea.hbm %s7749_s4, 16 }
  0x72   : > { %p6352_p9 = scmp.ne.s32.totalorder %s7749_s4, %s6351_s0  ;;  %p6358_p12 = scmp.lt.u32.totalorder %s6351_s0, %s7749_s4 }
  0x74   : > { %p6354_p10 = pnand %p6352_p9, %p6967_p7 }
  0x76   : > { %p6355_p11 = pneg %p6354_p10 }
  0x78   : > { %p6360_p2 = pnand %p6358_p12, %p6355_p11 }
  0x7a   : > { %6363 = shalt.err (!%p6360_p2)
}
  0x7b   : > { %s6364_s28 = scalar_lea.vmem %s6959_s1, 16  ;;  %s6371_s7 = scalar_lea.vmem %s6959_s1, 32 }
  0x7c   : > { %p6365_p13 = scmp.ne.s32.totalorder %s6959_s1, %s6364_s28  ;;  %p6372_p4 = scmp.lt.s32.totalorder %s6959_s1, %s6959_s1 }
  0x7d   : > { %p6373_p6 = scmp.lt.s32.totalorder %s6371_s7, %s6364_s28 }
  0x7e   : > { %p6367_p0 = pnand %p6365_p13, %p6967_p7 }
  0x7f   : > { %p6374_p8 = por %p6373_p6, %p6372_p4 }
  0x80   : > { %p6368_p1 = pneg %p6367_p0 }
  0x82   : > { %p6375_p9 = pnand %p6374_p8, %p6368_p1 }
  0x84   : > { %6378 = shalt.err (!%p6375_p9)
}
  0x85   : > { %6043 = dma.hbm_to_vmem [thread:$0]  (!%p6955_p5), %s7749_s4, 16, %s6959_s1, [#allocation11]  }
  0x86   : > { %s6379_s26 = scalar_lea.hbm %s6895_s24, 16 }
  0x87   : > { %p6380_p10 = scmp.ne.s32.totalorder %s6895_s24, %s6379_s26  ;;  %p6386_p2 = scmp.lt.u32.totalorder %s6379_s26, %s6895_s24 }
  0x89   : > { %p6382_p11 = pnand %p6380_p10, %p6967_p7 }
  0x8b   : > { %p6383_p12 = pneg %p6382_p11 }
  0x8d   : > { %p6388_p13 = pnand %p6386_p2, %p6383_p12 }
  0x8f   : > { %6391 = shalt.err (!%p6388_p13)
}
  0x90   : > { %s6392_s11 = scalar_lea.vmem %s6961_s10, 16  ;;  %s6399_s23 = scalar_lea.vmem %s6961_s10, 32 }
  0x91   : > { %p6393_p0 = scmp.ne.s32.totalorder %s6961_s10, %s6392_s11  ;;  %p6400_p6 = scmp.lt.s32.totalorder %s6961_s10, %s6961_s10 }
  0x92   : > { %p6401_p8 = scmp.lt.s32.totalorder %s6399_s23, %s6392_s11 }
  0x93   : > { %p6395_p1 = pnand %p6393_p0, %p6967_p7 }
  0x94   : > { %p6402_p9 = por %p6401_p8, %p6400_p6 }
  0x95   : > { %p6396_p4 = pneg %p6395_p1 }
  0x97   : > { %p6403_p10 = pnand %p6402_p9, %p6396_p4 }
  0x99   : > { %6406 = shalt.err (!%p6403_p10)
}
  0x9a   : > { %6049 = dma.hbm_to_vmem [thread:$0]  (!%p6955_p5), %s6895_s24, 16, %s6961_s10, [#allocation14]  }
  0x9b   : > { %s6733_s1 = smov [#allocation16]   ;;  %s6734_s28 = smov [#allocation19]  }
  0x9c   : > { %s1016_s0 = sshll.u32 %s6733_s1, 4  ;;  %s1044_s7 = sshll.u32 %s6734_s28, 4  ;;  %s1017_s0 = int_to_ptr.vmem [resolvable:$true] %s1016_s0  ;;  %s1045_s7 = int_to_ptr.vmem [resolvable:$true] %s1044_s7 }
  0x9d   : > { %s6407_s26 = scalar_lea.hbm %s6905_s13, 1024 }
  0x9e   : > { %p6408_p11 = scmp.ne.s32.totalorder %s6905_s13, %s6407_s26  ;;  %p6414_p13 = scmp.lt.u32.totalorder %s6407_s26, %s6905_s13 }
  0xa0   : > { %p6410_p12 = pnand %p6408_p11, %p6967_p7 }
  0xa2   : > { %p6411_p2 = pneg %p6410_p12 }
  0xa4   : > { %p6416_p0 = pnand %p6414_p13, %p6411_p2 }
  0xa6   : > { %6419 = shalt.err (!%p6416_p0)
}
  0xa7   : > { %s6420_s11 = scalar_lea.vmem %s1017_s0, 1024  ;;  %p6428_p8 = scmp.lt.s32.totalorder %s1017_s0, %s1017_s0 }
  0xa8   : > { %p6421_p1 = scmp.ne.s32.totalorder %s1017_s0, %s6420_s11  ;;  %p6429_p9 = scmp.lt.s32.totalorder %s6420_s11, %s6420_s11 }
  0xaa   : > { %p6423_p4 = pnand %p6421_p1, %p6967_p7  ;;  %p6430_p10 = por %p6429_p9, %p6428_p8 }
  0xac   : > { %p6424_p6 = pneg %p6423_p4 }
  0xae   : > { %p6431_p3 = pnand %p6430_p10, %p6424_p6 }
  0xb0   : > { %6434 = shalt.err (!%p6431_p3)
}
  0xb1   : > { %s7726_s10 = smov 128   ;;  %s7728_s23 = smov 8  }
  0xb2   : > { %6055 = dma.hbm_to_vmem [thread:$0]  (!%p6955_p5), %s6905_s13, 1024, %s1017_s0, [#allocation17], %s7726_s10, %s7726_s10, %s7728_s23  }
  0xb3   : > { %s6435_s1 = scalar_lea.hbm %s6920_s9, 16 }
  0xb4   : > { %p6436_p11 = scmp.ne.s32.totalorder %s6920_s9, %s6435_s1  ;;  %p6442_p3 = scmp.lt.u32.totalorder %s6435_s1, %s6920_s9 }
  0xb6   : > { %p6438_p12 = pnand %p6436_p11, %p6967_p7 }
  0xb8   : > { %p6439_p2 = pneg %p6438_p12 }
  0xba   : > { %p6444_p13 = pnand %p6442_p3, %p6439_p2 }
  0xbc   : > { %6447 = shalt.err (!%p6444_p13)
}
  0xbd   : > { %s6448_s28 = scalar_lea.vmem %s1045_s7, 16  ;;  %s6455_s26 = scalar_lea.vmem %s1045_s7, 32 }
  0xbe   : > { %p6449_p0 = scmp.ne.s32.totalorder %s1045_s7, %s6448_s28  ;;  %p6456_p6 = scmp.lt.s32.totalorder %s1045_s7, %s1045_s7 }
  0xbf   : > { %p6457_p8 = scmp.lt.s32.totalorder %s6455_s26, %s6448_s28 }
  0xc0   : > { %p6451_p1 = pnand %p6449_p0, %p6967_p7 }
  0xc1   : > { %p6458_p9 = por %p6457_p8, %p6456_p6 }
  0xc2   : > { %p6452_p4 = pneg %p6451_p1 }
  0xc4   : > { %p6459_p10 = pnand %p6458_p9, %p6452_p4 }
  0xc6   : > { %6462 = shalt.err (!%p6459_p10)
}
  0xc7   : > { %6061 = dma.hbm_to_vmem [thread:$0]  (!%p6955_p5), %s6920_s9, 16, %s1045_s7, [#allocation20]  }
  0xc8   : > { %s6737_s0 = smov [#allocation2]   ;;  %s6738_s1 = smov [#allocation6]  }
  0xc9   : > { %s908_s11 = sshll.u32 %s6737_s0, 4  ;;  %s933_s10 = sshll.u32 %s6738_s1, 4  ;;  %s909_s11 = int_to_ptr.vmem [resolvable:$true] %s908_s11  ;;  %s934_s10 = int_to_ptr.vmem [resolvable:$true] %s933_s10 }
  0xca   : > { %s6463_s23 = scalar_lea.hbm %s6850_s21, 32 }
  0xcb   : > { %p6464_p11 = scmp.ne.s32.totalorder %s6850_s21, %s6463_s23  ;;  %p6470_p3 = scmp.lt.u32.totalorder %s6463_s23, %s6850_s21 }
  0xcd   : > { %p6466_p12 = pnand %p6464_p11, %p6967_p7 }
  0xcf   : > { %p6467_p2 = pneg %p6466_p12 }
  0xd1   : > { %p6472_p13 = pnand %p6470_p3, %p6467_p2 }
  0xd3   : > { %6475 = shalt.err (!%p6472_p13)
}
  0xd4   : > { %s6476_s28 = scalar_lea.vmem %s909_s11, 32  ;;  %p6484_p6 = scmp.lt.s32.totalorder %s909_s11, %s909_s11 }
  0xd5   : > { %p6477_p0 = scmp.ne.s32.totalorder %s909_s11, %s6476_s28  ;;  %p6485_p8 = scmp.lt.s32.totalorder %s6476_s28, %s6476_s28 }
  0xd7   : > { %p6479_p1 = pnand %p6477_p0, %p6967_p7  ;;  %p6486_p9 = por %p6485_p8, %p6484_p6 }
  0xd9   : > { %p6480_p4 = pneg %p6479_p1 }
  0xdb   : > { %p6487_p10 = pnand %p6486_p9, %p6480_p4 }
  0xdd   : > { %6490 = shalt.err (!%p6487_p10)
}
  0xde   : > { %6028 = dma.hbm_to_vmem [thread:$0]  (!%p6955_p5), %s6850_s21, 32, %s909_s11, [#allocation3]  }
  0xdf   : > { %s6491_s7 = scalar_lea.hbm %s6865_s17, 32 }
  0xe0   : > { %p6492_p11 = scmp.ne.s32.totalorder %s6865_s17, %s6491_s7  ;;  %p6498_p3 = scmp.lt.u32.totalorder %s6491_s7, %s6865_s17 }
  0xe2   : > { %p6494_p12 = pnand %p6492_p11, %p6967_p7 }
  0xe4   : > { %p6495_p2 = pneg %p6494_p12 }
  0xe6   : > { %p6500_p13 = pnand %p6498_p3, %p6495_p2 }
  0xe8   : > { %6503 = shalt.err (!%p6500_p13)
}
  0xe9   : > { %s6504_s23 = scalar_lea.vmem %s934_s10, 32  ;;  %p6512_p6 = scmp.lt.s32.totalorder %s934_s10, %s934_s10 }
  0xea   : > { %p6505_p0 = scmp.ne.s32.totalorder %s934_s10, %s6504_s23  ;;  %p6513_p8 = scmp.lt.s32.totalorder %s6504_s23, %s6504_s23 }
  0xec   : > { %p6507_p1 = pnand %p6505_p0, %p6967_p7  ;;  %p6514_p9 = por %p6513_p8, %p6512_p6 }
  0xee   : > { %p6508_p4 = pneg %p6507_p1 }
  0xf0   : > { %p6515_p10 = pnand %p6514_p9, %p6508_p4 }
  0xf2   : > { %6518 = shalt.err (!%p6515_p10)
}
  0xf3   : > { %6034 = dma.hbm_to_vmem [thread:$0]  (!%p6955_p5), %s6865_s17, 32, %s934_s10, [#allocation5]  }
  0xf4   : > { %s6739_s26 = smov [#allocation9]   ;;  %s6740_s11 = smov [#allocation12]  }
  0xf5   : > { %s957_s0 = sshll.u32 %s6739_s26, 4  ;;  %s981_s1 = sshll.u32 %s6740_s11, 4  ;;  %s958_s0 = int_to_ptr.vmem [resolvable:$true] %s957_s0  ;;  %s982_s1 = int_to_ptr.vmem [resolvable:$true] %s981_s1 }
  0xf6   : > { %s6519_s28 = scalar_lea.hbm %s6880_s12, 1024 }
  0xf7   : > { %p6520_p11 = scmp.ne.s32.totalorder %s6880_s12, %s6519_s28  ;;  %p6526_p3 = scmp.lt.u32.totalorder %s6519_s28, %s6880_s12 }
  0xf9   : > { %p6522_p12 = pnand %p6520_p11, %p6967_p7 }
  0xfb   : > { %p6523_p2 = pneg %p6522_p12 }
  0xfd   : > { %p6528_p13 = pnand %p6526_p3, %p6523_p2 }
  0xff   : > { %6531 = shalt.err (!%p6528_p13)
}
 0x100   : > { %s6532_s7 = scalar_lea.vmem %s958_s0, 1024  ;;  %p6540_p6 = scmp.lt.s32.totalorder %s958_s0, %s958_s0 }
 0x101   : > { %p6533_p0 = scmp.ne.s32.totalorder %s958_s0, %s6532_s7  ;;  %p6541_p8 = scmp.lt.s32.totalorder %s6532_s7, %s6532_s7 }
 0x103   : > { %p6535_p1 = pnand %p6533_p0, %p6967_p7  ;;  %p6542_p9 = por %p6541_p8, %p6540_p6 }
 0x105   : > { %p6536_p4 = pneg %p6535_p1 }
 0x107   : > { %p6543_p10 = pnand %p6542_p9, %p6536_p4 }
 0x109   : > { %6546 = shalt.err (!%p6543_p10)
}
 0x10a   : > { %s7753_s10 = smov 8   ;;  %s7754_s23 = smov 128  }
 0x10b   : > { %6040 = dma.hbm_to_vmem [thread:$0]  (!%p6955_p5), %s6880_s12, 1024, %s958_s0, [#allocation8], %s7754_s23, %s7754_s23, %s7753_s10  }
 0x10c   : > { %s6547_s26 = scalar_lea.hbm %s6890_s6, 1024 }
 0x10d   : > { %p6548_p11 = scmp.ne.s32.totalorder %s6890_s6, %s6547_s26  ;;  %p6554_p3 = scmp.lt.u32.totalorder %s6547_s26, %s6890_s6 }
 0x10f   : > { %p6550_p12 = pnand %p6548_p11, %p6967_p7 }
 0x111   : > { %p6551_p2 = pneg %p6550_p12 }
 0x113   : > { %p6556_p13 = pnand %p6554_p3, %p6551_p2 }
 0x115   : > { %6559 = shalt.err (!%p6556_p13)
}
 0x116   : > { %s6560_s11 = scalar_lea.vmem %s982_s1, 1024  ;;  %p6568_p6 = scmp.lt.s32.totalorder %s982_s1, %s982_s1 }
 0x117   : > { %p6561_p0 = scmp.ne.s32.totalorder %s982_s1, %s6560_s11  ;;  %p6569_p8 = scmp.lt.s32.totalorder %s6560_s11, %s6560_s11 }
 0x119   : > { %p6563_p1 = pnand %p6561_p0, %p6967_p7  ;;  %p6570_p9 = por %p6569_p8, %p6568_p6 }
 0x11b   : > { %p6564_p4 = pneg %p6563_p1 }
 0x11d   : > { %p6571_p10 = pnand %p6570_p9, %p6564_p4 }
 0x11f   : > { %6574 = shalt.err (!%p6571_p10)
}
 0x120   : > { %6046 = dma.hbm_to_vmem [thread:$0]  (!%p6955_p5), %s6890_s6, 1024, %s982_s1, [#allocation11], %s7754_s23, %s7754_s23, %s7753_s10  }
 0x121   : > { %s6741_s0 = smov [#allocation15]   ;;  %s6742_s7 = smov [#allocation18]  }
 0x122   : > { %s1006_s28 = sshll.u32 %s6741_s0, 4  ;;  %s1030_s26 = sshll.u32 %s6742_s7, 4  ;;  %s1007_s28 = int_to_ptr.vmem [resolvable:$true] %s1006_s28  ;;  %s1031_s26 = int_to_ptr.vmem [resolvable:$true] %s1030_s26 }
 0x123   : > { %s6575_s11 = scalar_lea.hbm %s6900_s30, 32 }
 0x124   : > { %p6576_p11 = scmp.ne.s32.totalorder %s6900_s30, %s6575_s11  ;;  %p6582_p3 = scmp.lt.u32.totalorder %s6575_s11, %s6900_s30 }
 0x126   : > { %p6578_p12 = pnand %p6576_p11, %p6967_p7 }
 0x128   : > { %p6579_p2 = pneg %p6578_p12 }
 0x12a   : > { %p6584_p13 = pnand %p6582_p3, %p6579_p2 }
 0x12c   : > { %6587 = shalt.err (!%p6584_p13)
}
 0x12d   : > { %s6588_s4 = scalar_lea.vmem %s1007_s28, 32  ;;  %p6596_p6 = scmp.lt.s32.totalorder %s1007_s28, %s1007_s28 }
 0x12e   : > { %p6589_p0 = scmp.ne.s32.totalorder %s1007_s28, %s6588_s4  ;;  %p6597_p8 = scmp.lt.s32.totalorder %s6588_s4, %s6588_s4 }
 0x130   : > { %p6591_p1 = pnand %p6589_p0, %p6967_p7  ;;  %p6598_p9 = por %p6597_p8, %p6596_p6 }
 0x132   : > { %p6592_p4 = pneg %p6591_p1 }
 0x134   : > { %p6599_p10 = pnand %p6598_p9, %p6592_p4 }
 0x136   : > { %6602 = shalt.err (!%p6599_p10)
}
 0x137   : > { %6052 = dma.hbm_to_vmem [thread:$0]  (!%p6955_p5), %s6900_s30, 32, %s1007_s28, [#allocation14]  }
 0x138   : > { %s6603_s1 = scalar_lea.hbm %s6910_s19, 16 }
 0x139   : > { %p6604_p11 = scmp.ne.s32.totalorder %s6910_s19, %s6603_s1  ;;  %p6610_p3 = scmp.lt.u32.totalorder %s6603_s1, %s6910_s19 }
 0x13b   : > { %p6606_p12 = pnand %p6604_p11, %p6967_p7 }
 0x13d   : > { %p6607_p2 = pneg %p6606_p12 }
 0x13f   : > { %p6612_p13 = pnand %p6610_p3, %p6607_p2 }
 0x141   : > { %6615 = shalt.err (!%p6612_p13)
}
 0x142   : > { %s6616_s4 = scalar_lea.vmem %s1031_s26, 16  ;;  %s6623_s10 = scalar_lea.vmem %s1031_s26, 32 }
 0x143   : > { %p6617_p0 = scmp.ne.s32.totalorder %s1031_s26, %s6616_s4  ;;  %p6624_p6 = scmp.lt.s32.totalorder %s1031_s26, %s1031_s26 }
 0x144   : > { %p6625_p8 = scmp.lt.s32.totalorder %s6623_s10, %s6616_s4 }
 0x145   : > { %p6619_p1 = pnand %p6617_p0, %p6967_p7 }
 0x146   : > { %p6626_p9 = por %p6625_p8, %p6624_p6 }
 0x147   : > { %p6620_p4 = pneg %p6619_p1 }
 0x149   : > { %p6627_p10 = pnand %p6626_p9, %p6620_p4 }
 0x14b   : > { %6630 = shalt.err (!%p6627_p10)
}
 0x14c   : > { %6058 = dma.hbm_to_vmem [thread:$0]  (!%p6955_p5), %s6910_s19, 16, %s1031_s26, [#allocation17]  }
 0x14d   : > { %s6743_s23 = smov [#allocation21]   ;;  %s6631_s28 = scalar_lea.hbm %s6925_s8, 32 }
 0x14e   : > { %s1055_s0 = sshll.u32 %s6743_s23, 4  ;;  %p6632_p11 = scmp.ne.s32.totalorder %s6925_s8, %s6631_s28  ;;  %s1056_s0 = int_to_ptr.vmem [resolvable:$true] %s1055_s0 }
 0x14f   : > { %p6638_p3 = scmp.lt.u32.totalorder %s6631_s28, %s6925_s8 }
 0x150   : > { %p6634_p12 = pnand %p6632_p11, %p6967_p7 }
 0x152   : > { %p6635_p2 = pneg %p6634_p12 }
 0x154   : > { %p6640_p13 = pnand %p6638_p3, %p6635_p2 }
 0x156   : > { %6643 = shalt.err (!%p6640_p13)
}
 0x157   : > { %s6644_s7 = scalar_lea.vmem %s1056_s0, 32  ;;  %p6652_p6 = scmp.lt.s32.totalorder %s1056_s0, %s1056_s0 }
 0x158   : > { %p6645_p0 = scmp.ne.s32.totalorder %s1056_s0, %s6644_s7  ;;  %p6653_p8 = scmp.lt.s32.totalorder %s6644_s7, %s6644_s7 }
 0x15a   : > { %p6647_p1 = pnand %p6645_p0, %p6967_p7  ;;  %p6654_p9 = por %p6653_p8, %p6652_p6 }
 0x15c   : > { %p6648_p4 = pneg %p6647_p1 }
 0x15e   : > { %p6655_p10 = pnand %p6654_p9, %p6648_p4 }
 0x160   : > { %6658 = shalt.err (!%p6655_p10)
}
 0x161   : > { %6064 = dma.hbm_to_vmem [thread:$0]  (!%p6955_p5), %s6925_s8, 32, %s1056_s0, [#allocation20]  }
 0x162   : > { %p7755_p11 = scmp.ne.s32.totalorder %s7750_s22, 0 }
 0x163   : > { %p7756_p12 = scmp.eq.s32.totalorder (!%p7755_p11), %s6938_s18, 0 }
 0x164   : > { %1104 = sbr.rel (%p7755_p11) target bundleno = 8939 (0x22eb), region = 156 }
 0x16b   : > { %6664 = dma.done.wait (%p7756_p12), [#allocation3], 32   ;;  %p7757_p2 = pmov %p7756_p12 }
 0x16d   : > { %6666 = vsyncadd (%p7757_p2), [#allocation3], 4294967264  ;;  %p7758_p7 = pmov %p7757_p2 }
 0x16e   : > { %p7759_p3 = pmov %p7757_p2 }
 0x16f   : > { %6668 = dma.done.wait (%p7758_p7), [#allocation5], 48  }
 0x170   : > { %6670 = vsyncadd (%p7759_p3), [#allocation5], 4294967248  ;;  %p7760_p13 = pmov %p7757_p2 }
 0x171   : > { %p7761_p5 = pmov %p7757_p2 }
 0x172   : > { %6672 = dma.done.wait (%p7760_p13), [#allocation8], 1040  }
 0x173   : > { %6674 = vsyncadd (%p7761_p5), [#allocation8], 4294966256  ;;  %p7762_p0 = pmov %p7757_p2 }
 0x175   : > { %6676 = dma.done.wait (%p7762_p0), [#allocation11], 1040   ;;  %p7763_p1 = pmov %p7762_p0 }
 0x176   : > { %p7764_p4 = pmov %p7762_p0 }
 0x177   : > { %6678 = vsyncadd (%p7763_p1), [#allocation11], 4294966256 }
 0x178   : > { %6680 = dma.done.wait (%p7764_p4), [#allocation14], 48   ;;  %p7765_p6 = pmov %p7762_p0 }
 0x179   : > { %p7766_p8 = pmov %p7762_p0 }
 0x17a   : > { %6682 = vsyncadd (%p7765_p6), [#allocation14], 4294967248 }
 0x17b   : > { %6684 = dma.done.wait (%p7766_p8), [#allocation17], 1040   ;;  %p7767_p9 = pmov %p7762_p0 }
 0x17c   : > { %p7768_p10 = pmov %p7762_p0 }
 0x17d   : > { %6686 = vsyncadd (%p7767_p9), [#allocation17], 4294966256 }
 0x17e   : > { %6688 = dma.done.wait (%p7768_p10), [#allocation20], 48   ;;  %p7769_p11 = pmov %p7762_p0 }
 0x17f   : > { %p1252_p12 = scmp.lt.s32.totalorder %s6938_s18, 1  ;;  %v6744_v0 = vmov 0   ;;  %v1284_v2 = vld [vmem:[%s6785_s25] sm:$0xff]  ;;  %v1285_v3 = vld [vmem:[%s6785_s25 + $0x8] sm:$0xff]  ;;  %v1286_v6 = vld [vmem:[%s6785_s25 + $0x10] sm:$0xff]  ;;  %v1304_v45 = vlaneseq  ;;  %s7770_s16 = sld [smem:[#allocation33_spill]] }
 0x180   : > { %6690 = vsyncadd (%p7769_p11), [#allocation20], 4294967248  ;;  %6156 = vset.pattern.permute.xlu0 %v6744_v0  ;;  %6172 = vset.pattern.permute.xlu1 %v6744_v0  ;;  %v7175_v5 = vpack.c.bf16 %v1285_v3, %v1284_v2  ;;  %v1287_v7 = vld [vmem:[%s6785_s25 + $0x18] sm:$0xff]  ;;  %v1288_v9 = vld [vmem:[%s6785_s25 + $0x20] sm:$0xff]  ;;  %v6745_v48 = vmov 1.0   ;;  %s7771_s26 = sld [smem:[#allocation34_spill]] }
 0x181   : > { %s7792_s18 = smov (!%p1252_p12, %s6938_s18), 1  ;;  %v7179_v8 = vpack.c.bf16 %v1287_v7, %v1286_v6  ;;  %v1289_v10 = vld [vmem:[%s6785_s25 + $0x28] sm:$0xff]  ;;  %v1290_v12 = vld [vmem:[%s6785_s25 + $0x30] sm:$0xff]  ;;  %v1291_v13 = vld [vmem:[%s6785_s25 + $0x38] sm:$0xff]  ;;  %v7233_v46 = vand.u32 127, %v1304_v45  ;;  %v6746_v56 = vmov 0.0  }
 0x182   : > { %s7169_s22 = sshll.u32 %s7792_s18, 4  ;;  %5584 = vmatprep.subr.bf16.mxu0 %v7175_v5  ;;  %v7186_v11 = vpack.c.bf16 %v1289_v10, %v1288_v9  ;;  %v1394_v14 = vld [vmem:[%s6795_s3 + $0x8] sm:$0xff]  ;;  %v1396_v15 = vld [vmem:[%s6795_s3 + $0x18] sm:$0xff]  ;;  %v1393_v16 = vld [vmem:[%s6795_s3] sm:$0xff]  ;;  %v7202_v27 = vpack.c.bf16 %v1291_v13, %v1290_v12  ;;  %1492 = vmatprep.mubr.f32.mxu1 %v6746_v56  ;;  %vm1421_vm2 = vcmask 523264   ;;  %v7261_v63 = vshrl.u32 %v1304_v45, 7 }
 0x183   : > { %s1256_s2 = scalar_lea.vmem %s6760_s5, %s7169_s22  ;;  %5586 = vmatpush3.bf16.msra.mxu0 %v7175_v5  ;;  %v1395_v17 = vld [vmem:[%s6795_s3 + $0x10] sm:$0xff]  ;;  %v5615_v18 = vpack.c.bf16 %v1396_v15, %v1394_v14  ;;  %v1398_v20 = vld [vmem:[%s6795_s3 + $0x28] sm:$0xff]  ;;  %v1400_v21 = vld [vmem:[%s6795_s3 + $0x38] sm:$0xff]  ;;  %vm1519_vm3 = vcmask 261120   ;;  %s7772_s11 = sld [smem:[#allocation29_spill]]  ;;  %vm1613_vm6 = vcmask 130048  }
 0x184   : > { %v1276_v1 = vld [vmem:[%s1256_s2] sm:$0xff]  ;;  %v1277_v4 = vld [vmem:[%s1256_s2 + $0x8] sm:$0xff]  ;;  %5588 = vmatprep.subr.bf16.mxu0 %v7179_v8  ;;  %v5617_v19 = vpack.c.bf16 %v1395_v17, %v1393_v16  ;;  %v5619_v23 = vpack.c.bf16 %v1400_v21, %v1398_v20  ;;  %v1399_v24 = vld [vmem:[%s6795_s3 + $0x30] sm:$0xff]  ;;  %s6747_s1 = smov 64   ;;  %s6749_s10 = smov 96   ;;  %vm2517_vm14 = vcmp.ge.s32.totalorder %v7261_v63, %v7233_v46 }
 0x185   : > { %1307 = vperm.xlu0 %6156, %v1276_v1   ;;  %v1397_v22 = vld [vmem:[%s6795_s3 + $0x20] sm:$0xff]  ;;  %v1402_v25 = vld [vmem:[%s6795_s3 + $0x48] sm:$0xff]  ;;  %v1404_v26 = vld [vmem:[%s6795_s3 + $0x58] sm:$0xff]  ;;  %5616 = vmatprep.subr.bf16.mxu1 %v5615_v18  ;;  %v7264_v1 = vsub.s32 0, %v7261_v63  ;;  %s6750_s23 = smov 32   ;;  %s7775_s0 = sld [smem:[#allocation35_spill]] }
 0x186   : > { %v1292_v28 = vld [vmem:[%s6785_s25 + $0x40] sm:$0xff]  ;;  %v1293_v29 = vld [vmem:[%s6785_s25 + $0x48] sm:$0xff]  ;;  %5618 = vmatpush1.bf16.msra.mxu1 %v5617_v19  ;;  %v5621_v30 = vpack.c.bf16 %v1399_v24, %v1397_v22  ;;  %v5623_v31 = vpack.c.bf16 %v1404_v26, %v1402_v25  ;;  %v1403_v33 = vld [vmem:[%s6795_s3 + $0x50] sm:$0xff]  ;;  %v6748_v26 = vmov -1e+09   ;;  %s7776_s28 = sld [smem:[#allocation36_spill]] }
 0x187   : > { %5590 = vmatpush3.bf16.msra.mxu0 %v7179_v8  ;;  %5620 = vmatprep.subr.bf16.mxu1 %v5619_v23  ;;  %v1401_v32 = vld [vmem:[%s6795_s3 + $0x40] sm:$0xff]  ;;  %v7210_v34 = vpack.c.bf16 %v1293_v29, %v1292_v28  ;;  %v1294_v35 = vld [vmem:[%s6785_s25 + $0x50] sm:$0xff]  ;;  %v1295_v36 = vld [vmem:[%s6785_s25 + $0x58] sm:$0xff]  ;;  %s7777_s7 = sld [smem:[#allocation30_spill]] }
 0x188   : > { %5592 = vmatprep.subr.bf16.mxu0 %v7186_v11  ;;  %v5625_v37 = vpack.c.bf16 %v1403_v33, %v1401_v32  ;;  %v7216_v38 = vpack.c.bf16 %v1295_v36, %v1294_v35  ;;  %v1296_v39 = vld [vmem:[%s6785_s25 + $0x60] sm:$0xff]  ;;  %v1297_v40 = vld [vmem:[%s6785_s25 + $0x68] sm:$0xff]  ;;  %v1298_v42 = vld [vmem:[%s6785_s25 + $0x70] sm:$0xff]  ;;  %s7778_s2 = sld [smem:[#allocation38_spill]] }
 0x189   : > { %1310 = vperm.xlu0 %6156, %v1277_v4   ;;  %v7222_v41 = vpack.c.bf16 %v1297_v40, %v1296_v39  ;;  %v1299_v43 = vld [vmem:[%s6785_s25 + $0x78] sm:$0xff]  ;;  %v1406_v50 = vld [vmem:[%s6795_s3 + $0x68] sm:$0xff]  ;;  %v1405_v53 = vld [vmem:[%s6795_s3 + $0x60] sm:$0xff]  ;;  %v7269_v4 = vsub.s32 1, %v7261_v63  ;;  %s1259_s4 = scalar_lea.vmem %s7772_s11, %s7792_s18  ;;  %s7779_s11 = sld [smem:[#allocation37_spill]] }
 0x18a   : > { %5622 = vmatpush1.bf16.msra.mxu1 %v5621_v30  ;;  %v7228_v44 = vpack.c.bf16 %v1299_v43, %v1298_v42  ;;  %v1408_v51 = vld [vmem:[%s6795_s3 + $0x78] sm:$0xff]  ;;  %v1407_v54 = vld [vmem:[%s6795_s3 + $0x70] sm:$0xff]  ;;  %v7245_v57 = vld [vmem:[%s7770_s16] sm:$0xff] }
 0x18b   : > { %5594 = vmatpush3.bf16.msra.mxu0 %v7186_v11  ;;  %5624 = vmatprep.subr.bf16.mxu1 %v5623_v31  ;;  %v5627_v52 = vpack.c.bf16 %v1408_v51, %v1406_v50  ;;  %v5629_v55 = vpack.c.bf16 %v1407_v54, %v1405_v53  ;;  %v7251_v61 = vld [vmem:[%s7770_s16 + $0x8] sm:$0xff]  ;;  %v1409_v2 = vld [vmem:[%s7771_s26] sm:$0x3]  ;;  %vm7284_vm4 = vmpackc.low %vm1519_vm3, %vm1519_vm3 }
 0x18c   : > { %5596 = vmatprep.subr.bf16.mxu0 %v7202_v27  ;;  %v1414_v3 = vrot.slane %v1409_v2, %v7264_v1  ;;  %v1418_v10 = vrot.slane %v1409_v2, %v7269_v4  ;;  %v1282_v25 = vld [vmem:[%s1259_s4] sm:$0x1]  ;;  %s7780_s4 = sld [smem:[#allocation43_spill]] }
 0x18d   : > { %vm1302_vm5 = vcmp.gt.s32.totalorder %v1282_v25, 0  ;;  %s1264_s26 = scalar_lea.vmem %s7777_s7, %s7169_s22  ;;  %s7782_s7 = sld [smem:[#allocation39_spill]] }
 0x18e   : > { %5626 = vmatpush1.bf16.msra.mxu1 %v5625_v37  ;;  %v1303_v28 = vsel %vm1302_vm5, 0.0, %v6748_v26 }
 0x18f   : > { %5598 = vmatpush3.bf16.msra.mxu0 %v7202_v27  ;;  %5628 = vmatprep.subr.bf16.mxu1 %v5627_v52  ;;  %v7297_v29 = vrot.slane %v1303_v28, %v7264_v1 }
 0x190   : > { %5600 = vmatprep.subr.bf16.mxu0 %v7210_v34 }
 0x192   : > { %5630 = vmatpush1.bf16.msra.mxu1 %v5629_v55 }
 0x193   : > { %5602 = vmatpush3.bf16.msra.mxu0 %v7210_v34 }
 0x194   : > { %5604 = vmatprep.subr.bf16.mxu0 %v7216_v38 }
 0x197   : > { %5606 = vmatpush3.bf16.msra.mxu0 %v7216_v38 }
 0x198   : > { %5608 = vmatprep.subr.bf16.mxu0 %v7222_v41 }
 0x19b   : > { %5610 = vmatpush3.bf16.msra.mxu0 %v7222_v41 }
 0x19c   : > { %5612 = vmatprep.subr.bf16.mxu0 %v7228_v44 }
 0x19f   : > { %5614 = vmatpush3.bf16.msra.mxu0 %v7228_v44 }
 0x204   : > { %v1308_v47 = vpop.permute.xlu0 %1307 }
 0x205   : > { %vm1312_vm0 = vcmp.eq.s32.totalorder %v7233_v46, %v1308_v47 }
 0x206   : > { %5214 = vmatprep.mubr.msk.f32.mxu0 %vm1312_vm0, %v6745_v48 }
 0x208   : > { %v1311_v49 = vpop.permute.xlu0 %1310 }
 0x209   : > { %vm1313_vm1 = vcmp.eq.s32.totalorder %v7233_v46, %v1311_v49 }
 0x20a   : > { %5215 = vmatmul.mubr.msk.f32.vlgmr.msra.gmra.mrb[0].mxu0 %vm1313_vm1, %v6745_v48 }
 0x2dd   : > { %v5216_v58 = vpop.f32.mrb[0].mxu0 }
 0x2de   : > { %v1384_v59 = vpop.f32.mrb[1].mxu0  ;;  %v7257_v62 = vadd.f32 %v5216_v58, %v7251_v61 }
 0x2df   : > { %v7248_v60 = vadd.f32 %v1384_v59, %v7245_v57 }
 0x2e1   : > { %4870 = vmatmul.mubr.msk.f32.vlgmr.msra.gmra.mrb[0].mxu1 %vm1421_vm2, %v7248_v60 }
 0x2e2   : > { %1498 = vmatprep.mubr.f32.mxu1 %v6746_v56 }
 0x2e5   : > { %4871 = vmatmul.mubr.msk.f32.gmra.mrb[2].mxu1 %vm1421_vm2, %v7257_v62 }
 0x3b4   : > { %v1494_v6 = vpop.f32.mrb[0].mxu1 }
 0x3b5   : > { %v1495_v7 = vadd.f32 %v1494_v6, %v1414_v3  ;;  %v1496_v9 = vpop.f32.mrb[1].mxu1 }
 0x3b6   : > { %v7273_v15 = vadd.f32 %v1496_v9, %v1418_v10 }
 0x3b7   : > { %5221 = vmatprep.mubr.msk.f32.mxu1 %vm1519_vm3, %v1495_v7 }
 0x3b8   : > { %v1500_v12 = vpop.f32.mrb[2].mxu1 }
 0x3b9   : > { %v1501_v13 = vadd.f32 %v1500_v12, %v1414_v3  ;;  %v1502_v14 = vpop.f32.mrb[3].mxu1 }
 0x3ba   : > { %v7275_v16 = vadd.f32 %v1502_v14, %v1418_v10 }
 0x3bb   : > { %v6157_v17 = vpack.i.bf16 %v1501_v13, %v1495_v7 }
 0x3bc   : > { %v6167_v18 = vpack.i.bf16 %v7275_v16, %v7273_v15  ;;  %v5637_v19 = vpack.c.bf16 %v7275_v16, %v7273_v15 }
 0x3bd   : > { %6158 = vrot.lane.b32.xlu1 %v6157_v17, %s6747_s1 }
 0x42f   : > { %v6159_v20 = vpop.permute.xlu1 %6158 }
 0x430   : > { %v6161_v21 = vunpack.i.h.bf16 %v6159_v20  ;;  %v6160_v22 = vunpack.i.l.bf16 %v6159_v20 }
 0x432   : > { %v5631_v24 = vpack.c.bf16 %v6161_v21, %v6160_v22 }
 0x434   : > { %5633 = vmatprep.subr.msk.bf16.mxu1 %vm7284_vm4, %v5631_v24 }
 0x435   : > { %5636 = vmatpush3.bf16.xpose.msk.msra.mxu1 %vm7284_vm4, %v5631_v24 }
 0x436   : > { %5638 = vmatprep.subr.bf16.mxu1 %v5637_v19 }
 0x43c   : > { %5222 = vmatmul.mubr.msk.f32.vlgmr.msra.gmra.mrb[4].mxu1 %vm1519_vm3, %v1501_v13 }
 0x43d   : > { %5640 = vmatpush3.bf16.msra.mxu1 %v5637_v19 }
 0x50f   : > { %v5223_v30 = vpop.f32.mrb[4].mxu1 }
 0x510   : > { %v1604_v31 = vmul.f32 0.17677669, %v5223_v30  ;;  %v1594_v32 = vpop.f32.mrb[5].mxu1 }
 0x511   : > { %v1603_v33 = vmul.f32 0.17677669, %v1594_v32 }
 0x512   : > { %v1612_v35 = vadd.f32 %v7297_v29, %v1604_v31 }
 0x513   : > { %v1611_v36 = vadd.f32 %v7297_v29, %v1603_v33 }
 0x514   : > { %v1617_v37 = vsel %vm1613_vm6, %v1612_v35, -inf }
 0x515   : > { %1618 = vmax.xlane.f32.xlu0 %v1617_v37  ;;  %v1614_v39 = vsel %vm1613_vm6, %v1611_v36, -inf }
 0x516   : > { %1615 = vmax.xlane.f32.xlu1 %v1614_v39 }
 0x5a2   : > { %v1619_v40 = vpop.xlane.xlu0 %1618 }
 0x5a3   : > { %v1621_v42 = vsub.f32 %v1612_v35, %v1619_v40  ;;  %v1616_v43 = vpop.xlane.xlu1 %1615 }
 0x5a4   : > { %v1620_v45 = vsub.f32 %v1611_v36, %v1616_v43 }
 0x5a5   : > { %v1624_v47 = vmul.f32 1.442695, %v1621_v42 }
 0x5a6   : > { %v1622_v49 = vmul.f32 1.442695, %v1620_v45 }
 0x5a7   : > { %6203 = vpow2.f32 %v1624_v47  ;;  %v1509_v47 = vld [vmem:[%s7775_s0 + $0x20] sm:$0xff] }
 0x5a8   : > { %6205 = vpow2.f32 %v1622_v49  ;;  %v1510_v49 = vld [vmem:[%s7775_s0 + $0x28] sm:$0xff] }
 0x5b1   : > { %v6204_v50 = vpop.eup %6203 }
 0x5b2   : > { %v6206_v51 = vpop.eup %6205  ;;  %v1629_v52 = vsel %vm1613_vm6, %v6204_v50, 0.0 }
 0x5b3   : > { %1630 = vadd.xlane.f32.xlu1 %v1629_v52  ;;  %v1626_v53 = vsel %vm1613_vm6, %v6206_v51, 0.0 }
 0x5b4   : > { %1627 = vadd.xlane.f32.xlu0 %v1626_v53 }
 0x5c4   : > { %1717 = vrot.lane.b32.xlu1 %v1495_v7, %s6749_s10 }
 0x5c8   : > { %1719 = vrot.lane.b32.xlu1 %v1501_v13, %s6749_s10 }
 0x5ca   : > { %6163 = vrot.lane.b32.xlu0 %v6157_v17, %s6750_s23 }
 0x640   : > { %v1631_v54 = vpop.xlane.xlu1 %1630 }
 0x641   : > { %6207 = vrcp.f32 %v1631_v54  ;;  %v1628_v55 = vpop.xlane.xlu0 %1627 }
 0x642   : > { %6209 = vrcp.f32 %v1628_v55  ;;  %v1511_v55 = vld [vmem:[%s7775_s0 + $0x30] sm:$0xff] }
 0x644   : > { %v1718_v12 = vpop.permute.xlu1 %1717 }
 0x645   : > { %v6164_v58 = vpop.permute.xlu0 %6163 }
 0x646   : > { %v6166_v59 = vunpack.i.h.bf16 %v6164_v58  ;;  %v6165_v2 = vunpack.i.l.bf16 %v6164_v58  ;;  %v1512_v58 = vld [vmem:[%s7775_s0 + $0x38] sm:$0xff] }
 0x648   : > { %v5641_v3 = vpack.c.bf16 %v6166_v59, %v6165_v2  ;;  %v1720_v13 = vpop.permute.xlu1 %1719 }
 0x64a   : > { %5643 = vmatprep.subr.msk.bf16.mxu1 %vm7284_vm4, %v5641_v3 }
 0x64b   : > { %v6208_v6 = vpop.eup %6207 }
 0x64c   : > { %v6210_v9 = vpop.eup %6209  ;;  %v1635_v7 = vmul.f32 %v6208_v6, %v6204_v50  ;;  %v5651_v50 = vpack.c.bf16 %v1510_v49, %v1509_v47  ;;  %v1505_v6 = vld [vmem:[%s7775_s0] sm:$0xff]  ;;  %v2138_v47 = vld [vmem:[%s7778_s2 + $0x10] sm:$0xff]  ;;  %v2139_v49 = vld [vmem:[%s7778_s2 + $0x18] sm:$0xff] }
 0x64d   : > { %v1633_v10 = vmul.f32 %v6210_v9, %v6206_v51  ;;  %v1506_v9 = vld [vmem:[%s7775_s0 + $0x8] sm:$0xff] }
 0x64f   : > { %5228 = vmatprep.mubr.msk.f32.mxu1 %vm1613_vm6, %v1633_v10  ;;  %v5659_v10 = vpack.c.bf16 %v1506_v9, %v1505_v6 }
 0x650   : > { %5229 = vmatmul.mubr.msk.f32.vlgmr.msra.gmra.mrb[6].mxu1 %vm1613_vm6, %v1635_v7  ;;  %v1507_v7 = vld [vmem:[%s7775_s0 + $0x10] sm:$0xff] }
 0x651   : > { %5646 = vmatpush3.bf16.xpose.msk.msra.mxu1 %vm7284_vm4, %v5641_v3  ;;  %5235 = vmatprep.mubr.msk.f32.mxu1 %vm1519_vm3, %v1718_v12  ;;  %v5655_v3 = vpack.c.bf16 %v1512_v58, %v1511_v55  ;;  %v1508_v12 = vld [vmem:[%s7775_s0 + $0x18] sm:$0xff] }
 0x652   : > { %v2143_v55 = vld [vmem:[%s7778_s2 + $0x38] sm:$0xff] }
 0x658   : > { %5236 = vmatmul.mubr.msk.f32.vlgmr.msra.gmra.mrb[8].mxu1 %vm1519_vm3, %v1720_v13 }
 0x723   : > { %v7316_v14 = vpop.f32.mrb[6].mxu1 }
 0x724   : > { %v7318_v17 = vpop.f32.mrb[7].mxu1 }
 0x72b   : > { %v5237_v19 = vpop.f32.mrb[8].mxu1 }
 0x72c   : > { %v1809_v20 = vmul.f32 0.17677669, %v5237_v19  ;;  %v1799_v21 = vpop.f32.mrb[9].mxu1 }
 0x72d   : > { %v1808_v22 = vmul.f32 0.17677669, %v1799_v21  ;;  %v4888_v21 = vld [vmem:[%s7776_s28] ss:$0 sm:$0xff]  ;;  %s7781_s28 = sld [smem:[#allocation40_spill]] }
 0x72e   : > { %v1811_v24 = vadd.f32 %v1809_v20, %v7297_v29  ;;  %v5663_v20 = vpack.c.bf16 %v1508_v12, %v1507_v7  ;;  %v2123_v7 = vld [vmem:[%s7779_s11] sm:$0x3] }
 0x72f   : > { %v1810_v25 = vadd.f32 %v1808_v22, %v7297_v29  ;;  %v2127_v12 = vrot.slane %v2123_v7, %v7264_v1 }
 0x730   : > { %v1815_v28 = vsel %vm1613_vm6, %v1811_v24, -inf }
 0x731   : > { %1816 = vmax.xlane.f32.xlu1 %v1815_v28  ;;  %v1812_v30 = vsel %vm1613_vm6, %v1810_v25, -inf }
 0x732   : > { %1813 = vmax.xlane.f32.xlu0 %v1812_v30 }
 0x742   : > { %6168 = vrot.lane.b32.xlu1 %v6167_v18, %s6749_s10 }
 0x7be   : > { %v1817_v31 = vpop.xlane.xlu1 %1816 }
 0x7bf   : > { %v1819_v32 = vsub.f32 %v1811_v24, %v1817_v31  ;;  %v1814_v33 = vpop.xlane.xlu0 %1813 }
 0x7c0   : > { %v1818_v35 = vsub.f32 %v1810_v25, %v1814_v33 }
 0x7c1   : > { %v1822_v36 = vmul.f32 1.442695, %v1819_v32 }
 0x7c2   : > { %v1820_v37 = vmul.f32 1.442695, %v1818_v35  ;;  %v6169_v39 = vpop.permute.xlu1 %6168 }
 0x7c3   : > { %v6171_v40 = vunpack.i.h.bf16 %v6169_v39  ;;  %v6170_v42 = vunpack.i.l.bf16 %v6169_v39 }
 0x7c4   : > { %6211 = vpow2.f32 %v1820_v37 }
 0x7c5   : > { %v5647_v43 = vpack.c.bf16 %v6171_v40, %v6170_v42  ;;  %6213 = vpow2.f32 %v1822_v36 }
 0x7c7   : > { %5648 = vmatprep.subr.bf16.mxu0 %v5647_v43 }
 0x7c8   : > { %5650 = vmatpush3.bf16.msra.mxu0 %v5647_v43 }
 0x7c9   : > { %5652 = vmatprep.subr.bf16.mxu0 %v5651_v50 }
 0x7ce   : > { %v6212_v45 = vpop.eup %6211 }
 0x7cf   : > { %v1824_v15 = vsel %vm1613_vm6, %v6212_v45, 0.0  ;;  %v6214_v16 = vpop.eup %6213 }
 0x7d0   : > { %1825 = vadd.xlane.f32.xlu0 %v1824_v15  ;;  %v1827_v18 = vsel %vm1613_vm6, %v6214_v16, 0.0  ;;  %v2137_v15 = vld [vmem:[%s7778_s2 + $0x8] sm:$0xff] }
 0x7d4   : > { %1828 = vadd.xlane.f32.xlu0 %v1827_v18  ;;  %v1279_v18 = vld [vmem:[%s1264_s26 + $0x8] sm:$0xff] }
 0x85d   : > { %v1826_v51 = vpop.xlane.xlu0 %1825 }
 0x85e   : > { %6215 = vrcp.f32 %v1826_v51  ;;  %v2140_v51 = vld [vmem:[%s7778_s2 + $0x20] sm:$0xff] }
 0x861   : > { %v1829_v52 = vpop.xlane.xlu0 %1828 }
 0x862   : > { %6217 = vrcp.f32 %v1829_v52  ;;  %v2141_v52 = vld [vmem:[%s7778_s2 + $0x28] sm:$0xff] }
 0x868   : > { %v6216_v53 = vpop.eup %6215 }
 0x869   : > { %v1831_v54 = vmul.f32 %v6216_v53, %v6212_v45  ;;  %v2136_v45 = vld [vmem:[%s7778_s2] sm:$0xff]  ;;  %v5675_v53 = vpack.c.bf16 %v2141_v52, %v2140_v51 }
 0x86a   : > { %v2290_v52 = vld [vmem:[%s7781_s28 + $0x20] sm:$0xff] }
 0x86b   : > { %5242 = vmatprep.mubr.msk.f32.mxu0 %vm1613_vm6, %v1831_v54  ;;  %v2142_v54 = vld [vmem:[%s7778_s2 + $0x30] sm:$0xff] }
 0x86c   : > { %v6218_v59 = vpop.eup %6217  ;;  %v5679_v58 = vpack.c.bf16 %v2143_v55, %v2142_v54  ;;  %v2538_v54 = vld [vmem:[%s7780_s4 + $0x40] sm:$0xff] }
 0x86d   : > { %v1833_v2 = vmul.f32 %v6218_v59, %v6214_v16  ;;  %v5667_v16 = vpack.c.bf16 %v2137_v15, %v2136_v45  ;;  %v2289_v45 = vld [vmem:[%s7781_s28 + $0x18] sm:$0xff]  ;;  %v2534_v15 = vld [vmem:[%s7780_s4 + $0x20] sm:$0xff] }
 0x86f   : > { %5243 = vmatmul.mubr.msk.f32.vlgmr.msra.gmra.mrb[2].mxu0 %vm1613_vm6, %v1833_v2  ;;  %5668 = vmatprep.subr.bf16.mxu1 %v5667_v16 }
 0x870   : > { %5654 = vmatpush3.bf16.msra.mxu0 %v5651_v50  ;;  %5670 = vmatpush3.bf16.msra.mxu1 %v5667_v16  ;;  %v5671_v50 = vpack.c.bf16 %v2139_v49, %v2138_v47  ;;  %v2539_v49 = vld [vmem:[%s7780_s4 + $0x48] sm:$0xff] }
 0x871   : > { %5656 = vmatprep.subr.bf16.mxu0 %v5655_v3 }
 0x872   : > { %5672 = vmatprep.subr.bf16.mxu1 %v5671_v50 }
 0x874   : > { %5658 = vmatpush3.bf16.msra.mxu0 %v5655_v3  ;;  %5674 = vmatpush3.bf16.msra.mxu1 %v5671_v50  ;;  %v2541_v50 = vld [vmem:[%s7780_s4 + $0x58] sm:$0xff] }
 0x875   : > { %5660 = vmatprep.subr.bf16.mxu0 %v5659_v10  ;;  %5676 = vmatprep.subr.bf16.mxu1 %v5675_v53  ;;  %v5755_v51 = vpack.c.bf16 %v2541_v50, %v2539_v49 }
 0x878   : > { %5678 = vmatpush3.bf16.msra.mxu1 %v5675_v53  ;;  %v2291_v53 = vld [vmem:[%s7781_s28 + $0x28] sm:$0xff] }
 0x879   : > { %5680 = vmatprep.subr.bf16.mxu1 %v5679_v58  ;;  %v5691_v55 = vpack.c.bf16 %v2291_v53, %v2290_v52 }
 0x87c   : > { %5682 = vmatpush3.bf16.msra.mxu1 %v5679_v58  ;;  %v2540_v58 = vld [vmem:[%s7780_s4 + $0x50] sm:$0xff] }
 0x87d   : > { %5716 = vmatprep.subr.bf16.mxu1 %v7175_v5 }
 0x942   : > { %v5244_v13 = vpop.f32.mrb[2].mxu0 }
 0x943   : > { %v1914_v19 = vpop.f32.mrb[3].mxu0 }
 0x944   : > { %5253 = vmatprep.mubr.msk.f32.mxu0 %vm1519_vm3, %v1914_v19 }
 0x945   : > { %5254 = vmatmul.mubr.msk.f32.vlgmr.msra.gmra.mrb[4].mxu0 %vm1519_vm3, %v5244_v13 }
 0x946   : > { %5662 = vmatpush3.bf16.msra.mxu0 %v5659_v10  ;;  %5264 = vmatprep.mubr.msk.f32.mxu0 %vm1519_vm3, %v7318_v17  ;;  %v1278_v17 = vld [vmem:[%s1264_s26] sm:$0xff]  ;;  %s7783_s26 = sld [smem:[#allocation31_spill]] }
 0x947   : > { %5664 = vmatprep.subr.bf16.mxu0 %v5663_v20  ;;  %2428 = vperm.xlu1 %6172, %v1278_v17   ;;  %v2533_v17 = vld [vmem:[%s7780_s4 + $0x18] sm:$0xff] }
 0x94a   : > { %5666 = vmatpush3.bf16.msra.mxu0 %v5663_v20  ;;  %v2133_v20 = vrot.slane %v2123_v7, %v7269_v4  ;;  %v2542_v7 = vld [vmem:[%s7780_s4 + $0x60] sm:$0xff] }
 0x94c   : > { %s1267_s11 = scalar_lea.vmem %s7783_s26, %s7792_s18  ;;  %s7785_s26 = sld [smem:[#allocation44_spill]] }
 0x94d   : > { %5265 = vmatmul.mubr.msk.f32.vlgmr.msra.gmra.mrb[4].mxu0 %vm1519_vm3, %v7316_v14 }
 0xa20   : > { %v5266_v22 = vpop.f32.mrb[4].mxu0 }
 0xa21   : > { %v2076_v24 = vpop.f32.mrb[5].mxu0  ;;  %v2093_v25 = vadd.f32 %v5266_v22, %v4888_v21 }
 0xa22   : > { %v2092_v28 = vadd.f32 %v4888_v21, %v2076_v24 }
 0xa23   : > { %v2095_v32 = vadd.f32 %v2093_v25, %v7257_v62 }
 0xa24   : > { %v2094_v30 = vadd.f32 %v2092_v28, %v7248_v60  ;;  %v2429_v28 = vpop.permute.xlu1 %2428 }
 0xa25   : > { %v2099_v33 = vsel %vm1421_vm2, %v2095_v32, 0.0  ;;  %vm2433_vm7 = vcmp.eq.s32.totalorder %v7233_v46, %v2429_v28  ;;  %v2297_v28 = vld [vmem:[%s7781_s28 + $0x58] sm:$0xff] }
 0xa26   : > { %v2096_v31 = vsel %vm1421_vm2, %v2094_v30, 0.0 }
 0xa27   : > { %2097 = vadd.xlane.f32.xlu0 %v2096_v31 }
 0xa2b   : > { %2100 = vadd.xlane.f32.xlu0 %v2099_v33  ;;  %v2531_v33 = vld [vmem:[%s7780_s4 + $0x8] sm:$0xff] }
 0xab4   : > { %v2098_v14 = vpop.xlane.xlu0 %2097 }
 0xab5   : > { %v2103_v35 = vmul.f32 0.015625, %v2098_v14  ;;  %v5747_v14 = vpack.c.bf16 %v2533_v17, %v2531_v33  ;;  %v2299_v33 = vld [vmem:[%s7781_s28 + $0x68] sm:$0xff] }
 0xab7   : > { %v2105_v36 = vsub.f32 %v2094_v30, %v2103_v35  ;;  %v2286_v35 = vld [vmem:[%s7781_s28] sm:$0xff] }
 0xab8   : > { %v2101_v37 = vpop.xlane.xlu0 %2100 }
 0xab9   : > { %v2104_v60 = vmul.f32 0.015625, %v2101_v37  ;;  %v2107_v39 = vmul.f32 %v2105_v36, %v2105_v36  ;;  %v2530_v37 = vld [vmem:[%s7780_s4] sm:$0xff] }
 0xabb   : > { %v2106_v40 = vsub.f32 %v2095_v32, %v2104_v60  ;;  %v2109_v62 = vsel %vm1421_vm2, %v2107_v39, 0.0  ;;  %v2532_v39 = vld [vmem:[%s7780_s4 + $0x10] sm:$0xff] }
 0xabc   : > { %2110 = vadd.xlane.f32.xlu0 %v2109_v62  ;;  %v2537_v62 = vld [vmem:[%s7780_s4 + $0x38] sm:$0xff] }
 0xabd   : > { %v2108_v42 = vmul.f32 %v2106_v40, %v2106_v40 }
 0xabf   : > { %v2112_v43 = vsel %vm1421_vm2, %v2108_v42, 0.0 }
 0xac0   : > { %2113 = vadd.xlane.f32.xlu0 %v2112_v43  ;;  %v2288_v43 = vld [vmem:[%s7781_s28 + $0x10] sm:$0xff] }
 0xac1   : > { %v5687_v16 = vpack.c.bf16 %v2289_v45, %v2288_v43 }
 0xad6   : > { %2431 = vperm.xlu0 %6156, %v1279_v18   ;;  %v2536_v18 = vld [vmem:[%s7780_s4 + $0x30] sm:$0xff] }
 0xad7   : > { %v5753_v47 = vpack.c.bf16 %v2536_v18, %v2534_v15 }
 0xb49   : > { %v2111_v59 = vpop.xlane.xlu0 %2110 }
 0xb4a   : > { %v2115_v2 = vmul.f32 0.015625, %v2111_v59  ;;  %v5757_v59 = vpack.c.bf16 %v2540_v58, %v2538_v54 }
 0xb4c   : > { %v2117_v3 = vadd.f32 1e-05, %v2115_v2  ;;  %v2543_v2 = vld [vmem:[%s7780_s4 + $0x68] sm:$0xff] }
 0xb4d   : > { %v2114_v6 = vpop.xlane.xlu0 %2113 }
 0xb4e   : > { %6219 = vrsqrt.f32 %v2117_v3  ;;  %v2116_v9 = vmul.f32 0.015625, %v2114_v6  ;;  %v2545_v3 = vld [vmem:[%s7780_s4 + $0x78] sm:$0xff] }
 0xb4f   : > { %v5759_v6 = vpack.c.bf16 %v2545_v3, %v2543_v2 }
 0xb50   : > { %v2118_v10 = vadd.f32 1e-05, %v2116_v9  ;;  %v2292_v9 = vld [vmem:[%s7781_s28 + $0x30] sm:$0xff] }
 0xb52   : > { %6221 = vrsqrt.f32 %v2118_v10  ;;  %v2293_v10 = vld [vmem:[%s7781_s28 + $0x38] sm:$0xff] }
 0xb55   : > { %v2432_v32 = vpop.permute.xlu0 %2431 }
 0xb56   : > { %vm2434_vm8 = vcmp.eq.s32.totalorder %v7233_v46, %v2432_v32  ;;  %v2298_v32 = vld [vmem:[%s7781_s28 + $0x60] sm:$0xff] }
 0xb57   : > { %v5707_v17 = vpack.c.bf16 %v2299_v33, %v2298_v32 }
 0xb58   : > { %v6220_v13 = vpop.eup %6219 }
 0xb59   : > { %v2121_v19 = vmul.f32 %v6220_v13, %v2105_v36  ;;  %v2287_v36 = vld [vmem:[%s7781_s28 + $0x8] sm:$0xff]  ;;  %v2544_v13 = vld [vmem:[%s7780_s4 + $0x70] sm:$0xff] }
 0xb5a   : > { %v5683_v60 = vpack.c.bf16 %v2287_v36, %v2286_v35  ;;  %v2301_v35 = vld [vmem:[%s7781_s28 + $0x78] sm:$0xff] }
 0xb5b   : > { %v2128_v21 = vmul.f32 %v2127_v12, %v2121_v19  ;;  %v5761_v19 = vpack.c.bf16 %v2544_v13, %v2542_v7 }
 0xb5c   : > { %v6222_v22 = vpop.eup %6221  ;;  %5684 = vmatprep.subr.bf16.mxu0 %v5683_v60 }
 0xb5d   : > { %v2122_v24 = vmul.f32 %v6222_v22, %v2106_v40  ;;  %v7367_v25 = vadd.f32 %v2133_v20, %v2128_v21  ;;  %v5749_v40 = vpack.c.bf16 %v2532_v39, %v2530_v37  ;;  %5686 = vmatpush3.bf16.msra.mxu0 %v5683_v60  ;;  %v2295_v21 = vld [vmem:[%s7781_s28 + $0x48] sm:$0xff]  ;;  %v4889_v37 = vld [vmem:[%s7782_s7] ss:$0 sm:$0xff]  ;;  %s7784_s7 = sld [smem:[#allocation41_spill]] }
 0xb5e   : > { %5688 = vmatprep.subr.bf16.mxu0 %v5687_v16 }
 0xb5f   : > { %v2129_v30 = vmul.f32 %v2127_v12, %v2122_v24  ;;  %5283 = vmatprep.mubr.msk.f32.mxu1 %vm1421_vm2, %v7367_v25  ;;  %v5695_v12 = vpack.c.bf16 %v2293_v10, %v2292_v9  ;;  %v2296_v24 = vld [vmem:[%s7781_s28 + $0x50] sm:$0xff] }
 0xb61   : > { %v7371_v31 = vadd.f32 %v2133_v20, %v2129_v30  ;;  %5690 = vmatpush3.bf16.msra.mxu0 %v5687_v16  ;;  %v2294_v20 = vld [vmem:[%s7781_s28 + $0x40] sm:$0xff]  ;;  %v5703_v30 = vpack.c.bf16 %v2297_v28, %v2296_v24 }
 0xb62   : > { %5692 = vmatprep.subr.bf16.mxu0 %v5691_v55  ;;  %v5699_v22 = vpack.c.bf16 %v2295_v21, %v2294_v20 }
 0xb63   : > { %5284 = vmatmul.mubr.msk.f32.vlgmr.msra.gmra.mrb[10].mxu1 %vm1421_vm2, %v7371_v31 }
 0xb64   : > { %5718 = vmatpush3.bf16.msra.mxu1 %v7175_v5  ;;  %5353 = vmatprep.mubr.msk.f32.mxu1 %vm2433_vm7, %v6745_v48 }
 0xb65   : > { %5720 = vmatprep.subr.bf16.mxu1 %v7179_v8  ;;  %5694 = vmatpush3.bf16.msra.mxu0 %v5691_v55 }
 0xb66   : > { %5696 = vmatprep.subr.bf16.mxu0 %v5695_v12 }
 0xb68   : > { %5722 = vmatpush3.bf16.msra.mxu1 %v7179_v8 }
 0xb69   : > { %5724 = vmatprep.subr.bf16.mxu1 %v7186_v11  ;;  %5698 = vmatpush3.bf16.msra.mxu0 %v5695_v12 }
 0xb6a   : > { %5700 = vmatprep.subr.bf16.mxu0 %v5699_v22 }
 0xb6c   : > { %5726 = vmatpush3.bf16.msra.mxu1 %v7186_v11 }
 0xb6d   : > { %5728 = vmatprep.subr.bf16.mxu1 %v7202_v27  ;;  %5702 = vmatpush3.bf16.msra.mxu0 %v5699_v22 }
 0xb6e   : > { %5704 = vmatprep.subr.bf16.mxu0 %v5703_v30 }
 0xb70   : > { %5730 = vmatpush3.bf16.msra.mxu1 %v7202_v27 }
 0xb71   : > { %5732 = vmatprep.subr.bf16.mxu1 %v7210_v34  ;;  %5706 = vmatpush3.bf16.msra.mxu0 %v5703_v30 }
 0xb72   : > { %5708 = vmatprep.subr.bf16.mxu0 %v5707_v17 }
 0xb74   : > { %5734 = vmatpush3.bf16.msra.mxu1 %v7210_v34 }
 0xb75   : > { %5736 = vmatprep.subr.bf16.mxu1 %v7216_v38  ;;  %5710 = vmatpush3.bf16.msra.mxu0 %v5707_v17 }
 0xb78   : > { %5738 = vmatpush3.bf16.msra.mxu1 %v7216_v38 }
 0xb79   : > { %5740 = vmatprep.subr.bf16.mxu1 %v7222_v41 }
 0xb7c   : > { %5742 = vmatpush3.bf16.msra.mxu1 %v7222_v41 }
 0xb7d   : > { %5744 = vmatprep.subr.bf16.mxu1 %v7228_v44 }
 0xb80   : > { %5746 = vmatpush3.bf16.msra.mxu1 %v7228_v44 }
 0xb81   : > { %5748 = vmatprep.subr.bf16.mxu1 %v5747_v14  ;;  %v2300_v14 = vld [vmem:[%s7781_s28 + $0x70] sm:$0xff] }
 0xb82   : > { %v5711_v36 = vpack.c.bf16 %v2301_v35, %v2300_v14 }
 0xb83   : > { %5354 = vmatmul.mubr.msk.f32.vlgmr.msra.gmra.mrb[12].mxu1 %vm2434_vm8, %v6745_v48  ;;  %v2535_v48 = vld [vmem:[%s7780_s4 + $0x28] sm:$0xff] }
 0xb84   : > { %2628 = vmatprep.mubr.f32.mxu1 %v6746_v56  ;;  %5750 = vmatpush1.bf16.msra.mxu1 %v5749_v40  ;;  %v5751_v42 = vpack.c.bf16 %v2537_v62, %v2535_v48 }
 0xb85   : > { %5712 = vmatprep.subr.bf16.mxu0 %v5711_v36 }
 0xb86   : > { %5752 = vmatprep.subr.bf16.mxu1 %v5751_v42  ;;  %5714 = vmatpush3.bf16.msra.mxu0 %v5711_v36 }
 0xb88   : > { %5754 = vmatpush1.bf16.msra.mxu1 %v5753_v47 }
 0xb89   : > { %5756 = vmatprep.subr.bf16.mxu1 %v5755_v51 }
 0xb8c   : > { %5758 = vmatpush1.bf16.msra.mxu1 %v5757_v59 }
 0xb8d   : > { %5760 = vmatprep.subr.bf16.mxu1 %v5759_v6 }
 0xb90   : > { %5762 = vmatpush1.bf16.msra.mxu1 %v5761_v19 }
 0xc36   : > { %v5285_v60 = vpop.f32.mrb[10].mxu1 }
 0xc37   : > { %v7428_v39 = vadd.f32 %v5285_v60, %v4889_v37  ;;  %v2223_v40 = vpop.f32.mrb[11].mxu1 }
 0xc38   : > { %v2224_v48 = vadd.f32 %v4889_v37, %v2223_v40 }
 0xc39   : > { %v2235_v62 = vmul.f32 0.70710677, %v7428_v39 }
 0xc3a   : > { %v2234_v42 = vmul.f32 0.70710677, %v2224_v48 }
 0xc3b   : > { %v2241_v43 = vand.u32 2147483647, %v2235_v62  ;;  %vm2237_vm9 = vcmp.ge.f32.partialorder %v2235_v62, 0.0  ;;  %v2233_v62 = vmul.f32 0.5, %v7428_v39 }
 0xc3c   : > { %v2240_v45 = vand.u32 2147483647, %v2234_v42  ;;  %vm2236_vm10 = vcmp.ge.f32.partialorder %v2234_v42, 0.0  ;;  %v2546_v42 = vld [vmem:[#allocation2] sm:$0x3] }
 0xc3d   : > { %v2243_v15 = vmul.f32 0.3275911, %v2241_v43  ;;  %v2269_v49 = vsub.f32 0.0, %v2241_v43 }
 0xc3e   : > { %v2242_v16 = vmul.f32 0.3275911, %v2240_v45  ;;  %v2268_v50 = vsub.f32 0.0, %v2240_v45 }
 0xc3f   : > { %v2245_v18 = vadd.f32 1.0, %v2243_v15  ;;  %v2271_v52 = vmul.f32 %v2269_v49, %v2241_v43 }
 0xc40   : > { %v2244_v47 = vadd.f32 1.0, %v2242_v16  ;;  %v2270_v55 = vmul.f32 %v2268_v50, %v2240_v45  ;;  %v6751_v45 = vmov -1.0   ;;  %v2232_v50 = vmul.f32 0.5, %v2224_v48 }
 0xc41   : > { %6223 = vrcp.f32 %v2245_v18  ;;  %v2274_v2 = vmul.f32 1.442695, %v2271_v52  ;;  %v2239_v15 = vsel %vm2237_vm9, 1.0, %v6751_v45 }
 0xc42   : > { %6225 = vrcp.f32 %v2244_v47  ;;  %v2272_v9 = vmul.f32 1.442695, %v2270_v55  ;;  %v2238_v47 = vsel %vm2236_vm10, 1.0, %v6751_v45 }
 0xc43   : > { %6227 = vpow2.f32 %v2274_v2  ;;  %v2555_v2 = vrot.slane %v2546_v42, %v7269_v4 }
 0xc44   : > { %6229 = vpow2.f32 %v2272_v9 }
 0xc4b   : > { %v6224_v51 = vpop.eup %6223 }
 0xc4c   : > { %v6226_v53 = vpop.eup %6225  ;;  %v2251_v54 = vmul.f32 1.0614054, %v6224_v51 }
 0xc4d   : > { %v2250_v58 = vmul.f32 1.0614054, %v6226_v53  ;;  %v6228_v36 = vpop.eup %6227 }
 0xc4e   : > { %v2253_v59 = vadd.f32 -1.4531521, %v2251_v54  ;;  %v6230_v60 = vpop.eup %6229  ;;  %v2551_v54 = vrot.slane %v2546_v42, %v7264_v1 }
 0xc4f   : > { %v2252_v3 = vadd.f32 -1.4531521, %v2250_v58 }
 0xc50   : > { %v2255_v6 = vmul.f32 %v6224_v51, %v2253_v59 }
 0xc51   : > { %v2254_v10 = vmul.f32 %v6226_v53, %v2252_v3 }
 0xc52   : > { %v2257_v7 = vadd.f32 1.4214138, %v2255_v6 }
 0xc53   : > { %v2256_v12 = vadd.f32 1.4214138, %v2254_v10 }
 0xc54   : > { %v2259_v13 = vmul.f32 %v6224_v51, %v2257_v7 }
 0xc55   : > { %v2258_v19 = vmul.f32 %v6226_v53, %v2256_v12 }
 0xc56   : > { %v2261_v20 = vadd.f32 -0.28449672, %v2259_v13  ;;  %v5355_v21 = vpop.f32.mrb[12].mxu1 }
 0xc57   : > { %v2505_v22 = vpop.f32.mrb[13].mxu1  ;;  %v2260_v24 = vadd.f32 -0.28449672, %v2258_v19  ;;  %v7438_v35 = vadd.f32 %v5355_v21, %v7251_v61 }
 0xc58   : > { %v2263_v28 = vmul.f32 %v6224_v51, %v2261_v20  ;;  %v7432_v30 = vadd.f32 %v2505_v22, %v7245_v57 }
 0xc59   : > { %v2262_v32 = vmul.f32 %v6226_v53, %v2260_v24 }
 0xc5a   : > { %v2265_v33 = vadd.f32 0.2548296, %v2263_v28  ;;  %4897 = vmatmul.mubr.msk.f32.vlgmr.msra.gmra.mrb[14].mxu1 %vm1421_vm2, %v7432_v30  ;;  %v1283_v28 = vld [vmem:[%s1267_s11] sm:$0x1]  ;;  %s7786_s11 = sld [smem:[#allocation42_spill]] }
 0xc5b   : > { %2634 = vmatprep.mubr.f32.mxu1 %v6746_v56  ;;  %v2264_v17 = vadd.f32 0.2548296, %v2262_v32  ;;  %vm2519_vm11 = vcmp.gt.s32.totalorder %v1283_v28, 0 }
 0xc5c   : > { %v2267_v14 = vmul.f32 %v6224_v51, %v2265_v33  ;;  %v2520_v32 = vsel %vm2519_vm11, 1, %v6744_v0 }
 0xc5d   : > { %v2266_v37 = vmul.f32 %v6226_v53, %v2264_v17  ;;  %v2524_v33 = vrot.slane %v2520_v32, %v7264_v1  ;;  %v2516_v17 = vadd.s32 8, %v7261_v63 }
 0xc5e   : > { %v2277_v40 = vmul.f32 %v6228_v36, %v2267_v14  ;;  %4898 = vmatmul.mubr.msk.f32.gmra.mrb[16].mxu1 %vm1421_vm2, %v7438_v35 }
 0xc5f   : > { %v2276_v57 = vmul.f32 %v6230_v60, %v2266_v37  ;;  %vm2518_vm12 = vcmp.ge.s32.totalorder %v2516_v17, %v7233_v46  ;;  %vm2525_vm13 = vcmp.eq.s32.totalorder %v2524_v33, 1 }
 0xc60   : > { %v2279_v43 = vsub.f32 1.0, %v2277_v40  ;;  %vm2527_vm15 = vmand %vm2518_vm12, %vm2525_vm13  ;;  %vm4547_vm12 = vcmask 7168  }
 0xc61   : > { %v2278_v16 = vsub.f32 1.0, %v2276_v57  ;;  %vm2526_vm0 = vmand %vm2517_vm14, %vm2525_vm13  ;;  %v2529_v36 = vsel %vm2527_vm15, 0.0, %v6748_v26  ;;  %vm4572_vm13 = vcmp.eq.s32.totalorder %v7233_v46, 0  ;;  %vm4575_vm14 = vcmp.eq.s32.totalorder %v7233_v46, 1 }
 0xc62   : > { %v2281_v18 = vmul.f32 %v2279_v43, %v2239_v15  ;;  %v2528_v40 = vsel %vm2526_vm0, 0.0, %v6748_v26 }
 0xc63   : > { %v2280_v61 = vmul.f32 %v2278_v16, %v2238_v47 }
 0xc64   : > { %v2283_v49 = vadd.f32 1.0, %v2281_v18 }
 0xc65   : > { %v2282_v51 = vadd.f32 1.0, %v2280_v61 }
 0xc66   : > { %v2285_v53 = vmul.f32 %v2283_v49, %v2233_v62 }
 0xc67   : > { %v2284_v52 = vmul.f32 %v2282_v51, %v2232_v50 }
 0xc69   : > { %5318 = vmatprep.mubr.f32.mxu0 %v2284_v52 }
 0xc6a   : > { %5319 = vmatmul.mubr.f32.vlgmr.msra.gmra.mrb[6].mxu0 %v2285_v53 }
 0xd2d   : > { %v2630_v55 = vpop.f32.mrb[14].mxu1 }
 0xd2e   : > { %v2631_v58 = vadd.f32 %v2630_v55, %v2551_v54  ;;  %v2632_v59 = vpop.f32.mrb[15].mxu1 }
 0xd2f   : > { %v7448_v9 = vadd.f32 %v2632_v59, %v2555_v2 }
 0xd30   : > { %5360 = vmatprep.mubr.msk.f32.mxu1 %vm1519_vm3, %v2631_v58 }
 0xd31   : > { %v2636_v3 = vpop.f32.mrb[16].mxu1 }
 0xd32   : > { %v2637_v6 = vadd.f32 %v2636_v3, %v2551_v54  ;;  %v2638_v48 = vpop.f32.mrb[17].mxu1 }
 0xd33   : > { %v7450_v39 = vadd.f32 %v2638_v48, %v2555_v2 }
 0xd34   : > { %v6173_v10 = vpack.i.bf16 %v2637_v6, %v2631_v58 }
 0xd35   : > { %v6183_v7 = vpack.i.bf16 %v7450_v39, %v7448_v9  ;;  %v5769_v12 = vpack.c.bf16 %v7450_v39, %v7448_v9 }
 0xd36   : > { %6174 = vrot.lane.b32.xlu1 %v6173_v10, %s6747_s1 }
 0xd3d   : > { %v7457_v13 = vpop.f32.mrb[6].mxu0 }
 0xd3e   : > { %v7459_v19 = vpop.f32.mrb[7].mxu0 }
 0xda8   : > { %v6175_v20 = vpop.permute.xlu1 %6174 }
 0xda9   : > { %v6177_v21 = vunpack.i.h.bf16 %v6175_v20  ;;  %v6176_v22 = vunpack.i.l.bf16 %v6175_v20 }
 0xdab   : > { %v5763_v24 = vpack.c.bf16 %v6177_v21, %v6176_v22 }
 0xdad   : > { %5765 = vmatprep.subr.msk.bf16.mxu1 %vm7284_vm4, %v5763_v24 }
 0xdae   : > { %5768 = vmatpush3.bf16.xpose.msk.msra.mxu1 %vm7284_vm4, %v5763_v24 }
 0xdaf   : > { %5770 = vmatprep.subr.bf16.mxu1 %v5769_v12 }
 0xdb5   : > { %5361 = vmatmul.mubr.msk.f32.vlgmr.msra.gmra.mrb[18].mxu1 %vm1519_vm3, %v2637_v6 }
 0xdb6   : > { %5772 = vmatpush3.bf16.msra.mxu1 %v5769_v12 }
 0xe88   : > { %v5362_v14 = vpop.f32.mrb[18].mxu1 }
 0xe89   : > { %v2739_v37 = vmul.f32 0.17677669, %v5362_v14  ;;  %v2729_v60 = vpop.f32.mrb[19].mxu1 }
 0xe8a   : > { %v2738_v0 = vmul.f32 0.17677669, %v2729_v60 }
 0xe8b   : > { %v2741_v57 = vadd.f32 %v2739_v37, %v2529_v36 }
 0xe8c   : > { %v2740_v43 = vadd.f32 %v2738_v0, %v2528_v40 }
 0xe8d   : > { %v2745_v15 = vsel %vm1613_vm6, %v2741_v57, -inf }
 0xe8e   : > { %2746 = vmax.xlane.f32.xlu0 %v2745_v15  ;;  %v2742_v16 = vsel %vm1613_vm6, %v2740_v43, -inf }
 0xe8f   : > { %2743 = vmax.xlane.f32.xlu1 %v2742_v16 }
 0xea0   : > { %6179 = vrot.lane.b32.xlu1 %v6173_v10, %s6750_s23 }
 0xea4   : > { %2845 = vrot.lane.b32.xlu0 %v2631_v58, %s6749_s10 }
 0xf1b   : > { %v2747_v63 = vpop.xlane.xlu0 %2746 }
 0xf1c   : > { %v2749_v18 = vsub.f32 %v2741_v57, %v2747_v63  ;;  %v2744_v47 = vpop.xlane.xlu1 %2743  ;;  %v2377_v63 = vadd.f32 %v7459_v19, %v7367_v25 }
 0xf1d   : > { %v2748_v61 = vsub.f32 %v2740_v43, %v2744_v47  ;;  %v2378_v47 = vadd.f32 %v7457_v13, %v7371_v31  ;;  %v2645_v31 = vld [vmem:[%s7785_s26 + $0x20] sm:$0xff]  ;;  %v2646_v13 = vld [vmem:[%s7785_s26 + $0x28] sm:$0xff] }
 0xf1e   : > { %v2752_v49 = vmul.f32 1.442695, %v2749_v18 }
 0xf1f   : > { %v2750_v50 = vmul.f32 1.442695, %v2748_v61  ;;  %v2846_v12 = vpop.permute.xlu0 %2845 }
 0xf20   : > { %6231 = vpow2.f32 %v2752_v49  ;;  %v6180_v26 = vpop.permute.xlu1 %6179 }
 0xf21   : > { %v6182_v51 = vunpack.i.h.bf16 %v6180_v26  ;;  %v6181_v62 = vunpack.i.l.bf16 %v6180_v26  ;;  %6233 = vpow2.f32 %v2750_v50 }
 0xf23   : > { %v5773_v52 = vpack.c.bf16 %v6182_v51, %v6181_v62  ;;  %v2647_v51 = vld [vmem:[%s7785_s26 + $0x30] sm:$0xff]  ;;  %v5783_v62 = vpack.c.bf16 %v2646_v13, %v2645_v31 }
 0xf24   : > { %v3364_v13 = vld [vmem:[#allocation9 + $0x28] sm:$0xff] }
 0xf25   : > { %5775 = vmatprep.subr.msk.bf16.mxu1 %vm7284_vm4, %v5773_v52 }
 0xf2a   : > { %v6232_v53 = vpop.eup %6231 }
 0xf2b   : > { %v2757_v42 = vsel %vm1613_vm6, %v6232_v53, 0.0  ;;  %v6234_v54 = vpop.eup %6233 }
 0xf2c   : > { %2758 = vadd.xlane.f32.xlu1 %v2757_v42  ;;  %v2754_v55 = vsel %vm1613_vm6, %v6234_v54, 0.0 }
 0xf30   : > { %2755 = vadd.xlane.f32.xlu1 %v2754_v55 }
 0xf41   : > { %2847 = vrot.lane.b32.xlu1 %v2637_v6, %s6749_s10 }
 0xfb9   : > { %v2759_v58 = vpop.xlane.xlu1 %2758 }
 0xfba   : > { %6235 = vrcp.f32 %v2759_v58 }
 0xfbd   : > { %v2756_v59 = vpop.xlane.xlu1 %2755 }
 0xfbe   : > { %6237 = vrcp.f32 %v2756_v59 }
 0xfc1   : > { %v2848_v20 = vpop.permute.xlu1 %2847 }
 0xfc4   : > { %v6236_v2 = vpop.eup %6235 }
 0xfc5   : > { %v2763_v10 = vmul.f32 %v6236_v2, %v6232_v53 }
 0xfc8   : > { %v6238_v3 = vpop.eup %6237 }
 0xfc9   : > { %v2761_v48 = vmul.f32 %v6238_v3, %v6234_v54 }
 0xfcb   : > { %5367 = vmatprep.mubr.msk.f32.mxu1 %vm1613_vm6, %v2761_v48  ;;  %v2641_v48 = vld [vmem:[%s7785_s26] sm:$0xff] }
 0xfcc   : > { %5368 = vmatmul.mubr.msk.f32.vlgmr.msra.gmra.mrb[20].mxu1 %vm1613_vm6, %v2763_v10  ;;  %v2642_v10 = vld [vmem:[%s7785_s26 + $0x8] sm:$0xff] }
 0xfcd   : > { %5778 = vmatpush3.bf16.xpose.msk.msra.mxu1 %vm7284_vm4, %v5773_v52  ;;  %5374 = vmatprep.mubr.msk.f32.mxu1 %vm1519_vm3, %v2846_v12  ;;  %v2648_v52 = vld [vmem:[%s7785_s26 + $0x38] sm:$0xff]  ;;  %v5791_v12 = vpack.c.bf16 %v2642_v10, %v2641_v48 }
 0xfce   : > { %v5787_v53 = vpack.c.bf16 %v2648_v52, %v2647_v51  ;;  %5784 = vmatprep.subr.bf16.mxu1 %v5783_v62  ;;  %v3366_v52 = vld [vmem:[#allocation9 + $0x38] sm:$0xff] }
 0xfd4   : > { %5375 = vmatmul.mubr.msk.f32.vlgmr.msra.gmra.mrb[22].mxu1 %vm1519_vm3, %v2848_v20  ;;  %v2643_v20 = vld [vmem:[%s7785_s26 + $0x10] sm:$0xff] }
 0xfd5   : > { %5786 = vmatpush3.bf16.msra.mxu1 %v5783_v62  ;;  %v3365_v62 = vld [vmem:[#allocation9 + $0x30] sm:$0xff] }
 0xfd6   : > { %5788 = vmatprep.subr.bf16.mxu1 %v5787_v53 }
 0xfd9   : > { %5790 = vmatpush3.bf16.msra.mxu1 %v5787_v53  ;;  %v5827_v53 = vpack.c.bf16 %v3366_v52, %v3365_v62 }
 0xfda   : > { %5792 = vmatprep.subr.bf16.mxu1 %v5791_v12 }
0x109f   : > { %v7491_v6 = vpop.f32.mrb[20].mxu1 }
0x10a0   : > { %v7493_v21 = vpop.f32.mrb[21].mxu1 }
0x10a7   : > { %v5376_v22 = vpop.f32.mrb[22].mxu1 }
0x10a8   : > { %v2937_v24 = vmul.f32 0.17677669, %v5376_v22  ;;  %v2927_v28 = vpop.f32.mrb[23].mxu1  ;;  %v2644_v22 = vld [vmem:[%s7785_s26 + $0x18] sm:$0xff] }
0x10a9   : > { %v2936_v32 = vmul.f32 0.17677669, %v2927_v28 }
0x10aa   : > { %v2939_v33 = vadd.f32 %v2937_v24, %v2529_v36  ;;  %v4892_v36 = vld [vmem:[%s7784_s7] ss:$0 sm:$0xff]  ;;  %s7787_s7 = sld [smem:[#allocation45_spill]] }
0x10ab   : > { %v2938_v17 = vadd.f32 %v2936_v32, %v2528_v40  ;;  %v2386_v49 = vadd.f32 %v4892_v36, %v2377_v63  ;;  %v2387_v25 = vadd.f32 %v4892_v36, %v2378_v47  ;;  %v5795_v32 = vpack.c.bf16 %v2644_v22, %v2643_v20 }
0x10ac   : > { %v2943_v14 = vsel %vm1613_vm6, %v2939_v33, -inf }
0x10ad   : > { %2944 = vmax.xlane.f32.xlu0 %v2943_v14  ;;  %v2940_v37 = vsel %vm1613_vm6, %v2938_v17, -inf  ;;  %v2388_v26 = vsel %vm1421_vm2, %v2386_v49, 0.0  ;;  %v2391_v19 = vsel %vm1421_vm2, %v2387_v25, 0.0 }
0x10ae   : > { %2941 = vmax.xlane.f32.xlu1 %v2940_v37 }
0x113a   : > { %v2945_v60 = vpop.xlane.xlu0 %2944 }
0x113b   : > { %v2947_v0 = vsub.f32 %v2939_v33, %v2945_v60  ;;  %v2942_v57 = vpop.xlane.xlu1 %2941 }
0x113c   : > { %v2946_v43 = vsub.f32 %v2938_v17, %v2942_v57  ;;  %v4915_v17 = vld [vmem:[#allocation4] ss:$0 sm:$0xff] }
0x113d   : > { %v2950_v15 = vmul.f32 1.442695, %v2947_v0 }
0x113e   : > { %v2948_v16 = vmul.f32 1.442695, %v2946_v43 }
0x113f   : > { %6239 = vpow2.f32 %v2950_v15 }
0x1140   : > { %6241 = vpow2.f32 %v2948_v16 }
0x1149   : > { %v6240_v40 = vpop.eup %6239 }
0x114a   : > { %v6242_v18 = vpop.eup %6241  ;;  %v2955_v61 = vsel %vm1613_vm6, %v6240_v40, 0.0 }
0x114b   : > { %2956 = vadd.xlane.f32.xlu1 %v2955_v61  ;;  %v2952_v50 = vsel %vm1613_vm6, %v6242_v18, 0.0 }
0x114c   : > { %2953 = vadd.xlane.f32.xlu0 %v2952_v50 }
0x114f   : > { %2389 = vadd.xlane.f32.xlu1 %v2388_v26 }
0x1153   : > { %2392 = vadd.xlane.f32.xlu1 %v2391_v19  ;;  %v3361_v19 = vld [vmem:[#allocation9 + $0x10] sm:$0xff] }
0x1162   : > { %6184 = vrot.lane.b32.xlu0 %v6183_v7, %s6749_s10 }
0x11d8   : > { %v2957_v42 = vpop.xlane.xlu1 %2956 }
0x11d9   : > { %6243 = vrcp.f32 %v2957_v42  ;;  %v2954_v54 = vpop.xlane.xlu0 %2953 }
0x11da   : > { %6245 = vrcp.f32 %v2954_v54 }
0x11dc   : > { %v2390_v33 = vpop.xlane.xlu1 %2389 }
0x11dd   : > { %v6185_v55 = vpop.permute.xlu0 %6184  ;;  %v2394_v60 = vmul.f32 0.015625, %v2390_v33 }
0x11de   : > { %v6187_v9 = vunpack.i.h.bf16 %v6185_v55  ;;  %v6186_v39 = vunpack.i.l.bf16 %v6185_v55 }
0x11df   : > { %v2396_v16 = vsub.f32 %v2386_v49, %v2394_v60  ;;  %v3360_v49 = vld [vmem:[#allocation9 + $0x8] sm:$0xff] }
0x11e0   : > { %v5779_v7 = vpack.c.bf16 %v6187_v9, %v6186_v39  ;;  %v2393_v43 = vpop.xlane.xlu1 %2392 }
0x11e1   : > { %v2395_v63 = vmul.f32 0.015625, %v2393_v43  ;;  %v3263_v43 = vld [vmem:[%s7787_s7] sm:$0xff] }
0x11e2   : > { %5780 = vmatprep.subr.bf16.mxu0 %v5779_v7 }
0x11e3   : > { %v6244_v58 = vpop.eup %6243  ;;  %5782 = vmatpush3.bf16.msra.mxu0 %v5779_v7 }
0x11e4   : > { %v6246_v59 = vpop.eup %6245  ;;  %v2961_v3 = vmul.f32 %v6244_v58, %v6240_v40  ;;  %v2397_v40 = vsub.f32 %v2387_v25, %v2395_v63  ;;  %v3363_v25 = vld [vmem:[#allocation9 + $0x20] sm:$0xff] }
0x11e5   : > { %v2959_v2 = vmul.f32 %v6246_v59, %v6242_v18  ;;  %v2398_v18 = vmul.f32 %v2396_v16, %v2396_v16  ;;  %v5823_v51 = vpack.c.bf16 %v3364_v13, %v3363_v25 }
0x11e6   : > { %v2399_v61 = vmul.f32 %v2397_v40, %v2397_v40 }
0x11e7   : > { %5381 = vmatprep.mubr.msk.f32.mxu0 %vm1613_vm6, %v2959_v2  ;;  %v2400_v47 = vsel %vm1421_vm2, %v2398_v18, 0.0 }
0x11e8   : > { %5382 = vmatmul.mubr.msk.f32.vlgmr.msra.gmra.mrb[8].mxu0 %vm1613_vm6, %v2961_v3  ;;  %v2403_v50 = vsel %vm1421_vm2, %v2399_v61, 0.0 }
0x12bb   : > { %v5383_v24 = vpop.f32.mrb[8].mxu0 }
0x12bc   : > { %v3042_v28 = vpop.f32.mrb[9].mxu0 }
0x12bd   : > { %5392 = vmatprep.mubr.msk.f32.mxu1 %vm1519_vm3, %v3042_v28  ;;  %v2414_v28 = vld [vmem:[%s7786_s11] sm:$0x3]  ;;  %s1275_s11 = scalar_lea.vmem %s6930_s29, %s7792_s18 }
0x12be   : > { %5393 = vmatmul.mubr.msk.f32.vlgmr.msra.gmra.mrb[24].mxu1 %vm1519_vm3, %v5383_v24 }
0x12bf   : > { %5794 = vmatpush3.bf16.msra.mxu1 %v5791_v12  ;;  %5403 = vmatprep.mubr.msk.f32.mxu1 %vm1519_vm3, %v7493_v21 }
0x12c0   : > { %5796 = vmatprep.subr.bf16.mxu1 %v5795_v32 }
0x12c3   : > { %5798 = vmatpush3.bf16.msra.mxu1 %v5795_v32  ;;  %v2418_v32 = vrot.slane %v2414_v28, %v7264_v1 }
0x12c6   : > { %5404 = vmatmul.mubr.msk.f32.vlgmr.msra.gmra.mrb[24].mxu1 %vm1519_vm3, %v7491_v6 }
0x1399   : > { %v5405_v14 = vpop.f32.mrb[24].mxu1 }
0x139a   : > { %v3204_v37 = vpop.f32.mrb[25].mxu1  ;;  %v3221_v0 = vadd.f32 %v5405_v14, %v4915_v17  ;;  %v2424_v14 = vrot.slane %v2414_v28, %v7269_v4 }
0x139b   : > { %v3220_v57 = vadd.f32 %v4915_v17, %v3204_v37 }
0x139c   : > { %v3223_v21 = vadd.f32 %v3221_v0, %v7438_v35  ;;  %v3362_v35 = vld [vmem:[#allocation9 + $0x18] sm:$0xff] }
0x139d   : > { %v3222_v15 = vadd.f32 %v3220_v57, %v7432_v30  ;;  %v3359_v30 = vld [vmem:[#allocation9] sm:$0xff]  ;;  %v5819_v31 = vpack.c.bf16 %v3362_v35, %v3361_v19 }
0x139e   : > { %v3227_v6 = vsel %vm1421_vm2, %v3223_v21, 0.0  ;;  %v5815_v26 = vpack.c.bf16 %v3360_v49, %v3359_v30  ;;  %v3270_v30 = vld [vmem:[%s7787_s7 + $0x38] sm:$0xff] }
0x139f   : > { %v3224_v36 = vsel %vm1421_vm2, %v3222_v15, 0.0 }
0x13a0   : > { %3225 = vadd.xlane.f32.xlu1 %v3224_v36  ;;  %5816 = vmatprep.subr.bf16.mxu1 %v5815_v26 }
0x13a1   : > { %5818 = vmatpush3.bf16.msra.mxu1 %v5815_v26 }
0x13a2   : > { %5820 = vmatprep.subr.bf16.mxu1 %v5819_v31 }
0x13a4   : > { %3228 = vadd.xlane.f32.xlu1 %v3227_v6  ;;  %v3266_v6 = vld [vmem:[%s7787_s7 + $0x18] sm:$0xff] }
0x13a5   : > { %5822 = vmatpush3.bf16.msra.mxu1 %v5819_v31 }
0x13a6   : > { %5824 = vmatprep.subr.bf16.mxu1 %v5823_v51 }
0x13a8   : > { %2401 = vadd.xlane.f32.xlu1 %v2400_v47  ;;  %v3268_v47 = vld [vmem:[%s7787_s7 + $0x28] sm:$0xff] }
0x13a9   : > { %5826 = vmatpush3.bf16.msra.mxu1 %v5823_v51  ;;  %v3250_v51 = vld [vmem:[#allocation6] sm:$0x3] }
0x13aa   : > { %5828 = vmatprep.subr.bf16.mxu1 %v5827_v53  ;;  %v3254_v62 = vrot.slane %v3250_v51, %v7264_v1 }
0x13ac   : > { %2404 = vadd.xlane.f32.xlu1 %v2403_v50  ;;  %v3269_v50 = vld [vmem:[%s7787_s7 + $0x30] sm:$0xff] }
0x13ad   : > { %5830 = vmatpush3.bf16.msra.mxu1 %v5827_v53  ;;  %v5811_v49 = vpack.c.bf16 %v3270_v30, %v3269_v50 }
0x142d   : > { %v3226_v42 = vpop.xlane.xlu1 %3225 }
0x142e   : > { %v3230_v54 = vmul.f32 0.015625, %v3226_v42  ;;  %v3260_v42 = vrot.slane %v3250_v51, %v7269_v4 }
0x1430   : > { %v3232_v55 = vsub.f32 %v3222_v15, %v3230_v54  ;;  %v3264_v15 = vld [vmem:[%s7787_s7 + $0x8] sm:$0xff] }
0x1431   : > { %v3229_v9 = vpop.xlane.xlu1 %3228  ;;  %v5799_v63 = vpack.c.bf16 %v3264_v15, %v3263_v43 }
0x1432   : > { %v3231_v39 = vmul.f32 0.015625, %v3229_v9  ;;  %v3234_v7 = vmul.f32 %v3232_v55, %v3232_v55 }
0x1433   : > { %5800 = vmatprep.subr.bf16.mxu0 %v5799_v63 }
0x1434   : > { %v3233_v58 = vsub.f32 %v3223_v21, %v3231_v39  ;;  %v3236_v59 = vsel %vm1421_vm2, %v3234_v7, 0.0  ;;  %5802 = vmatpush3.bf16.msra.mxu0 %v5799_v63 }
0x1435   : > { %3237 = vadd.xlane.f32.xlu0 %v3236_v59  ;;  %v2402_v2 = vpop.xlane.xlu1 %2401 }
0x1436   : > { %v2406_v3 = vmul.f32 0.015625, %v2402_v2  ;;  %v3235_v48 = vmul.f32 %v3233_v58, %v3233_v58 }
0x1438   : > { %v2408_v10 = vadd.f32 1e-05, %v2406_v3  ;;  %v3239_v12 = vsel %vm1421_vm2, %v3235_v48, 0.0  ;;  %v4919_v3 = vld [vmem:[#allocation10] ss:$0 sm:$0xff] }
0x1439   : > { %3240 = vadd.xlane.f32.xlu1 %v3239_v12  ;;  %v2405_v20 = vpop.xlane.xlu1 %2404 }
0x143a   : > { %6247 = vrsqrt.f32 %v2408_v10  ;;  %v2407_v22 = vmul.f32 0.015625, %v2405_v20 }
0x143c   : > { %v2409_v24 = vadd.f32 1e-05, %v2407_v22 }
0x143e   : > { %6249 = vrsqrt.f32 %v2409_v24 }
0x1444   : > { %v6248_v33 = vpop.eup %6247 }
0x1445   : > { %v2412_v17 = vmul.f32 %v6248_v33, %v2396_v16  ;;  %v3265_v16 = vld [vmem:[%s7787_s7 + $0x10] sm:$0xff] }
0x1446   : > { %v5803_v18 = vpack.c.bf16 %v3266_v6, %v3265_v16 }
0x1447   : > { %v2419_v37 = vmul.f32 %v2418_v32, %v2412_v17 }
0x1448   : > { %v6250_v60 = vpop.eup %6249  ;;  %5804 = vmatprep.subr.bf16.mxu0 %v5803_v18 }
0x1449   : > { %v2413_v0 = vmul.f32 %v6250_v60, %v2397_v40  ;;  %v2425_v57 = vadd.f32 %v2424_v14, %v2419_v37  ;;  %5806 = vmatpush3.bf16.msra.mxu0 %v5803_v18  ;;  %v3267_v40 = vld [vmem:[%s7787_s7 + $0x20] sm:$0xff] }
0x144a   : > { %v5807_v61 = vpack.c.bf16 %v3268_v47, %v3267_v40 }
0x144b   : > { %v2420_v36 = vmul.f32 %v2418_v32, %v2413_v0  ;;  %5441 = vmatprep.mubr.msk.f32.mxu1 %vm1421_vm2, %v2425_v57 }
0x144c   : > { %5808 = vmatprep.subr.bf16.mxu0 %v5807_v61 }
0x144d   : > { %v2426_v21 = vadd.f32 %v2424_v14, %v2420_v36  ;;  %5810 = vmatpush3.bf16.msra.mxu0 %v5807_v61 }
0x144e   : > { %5812 = vmatprep.subr.bf16.mxu0 %v5811_v49 }
0x144f   : > { %5442 = vmatmul.mubr.msk.f32.vlgmr.msra.gmra.mrb[26].mxu1 %vm1421_vm2, %v2426_v21 }
0x1451   : > { %5814 = vmatpush3.bf16.msra.mxu0 %v5811_v49 }
0x14c2   : > { %v3238_v26 = vpop.xlane.xlu0 %3237 }
0x14c3   : > { %v3242_v19 = vmul.f32 0.015625, %v3238_v26 }
0x14c5   : > { %v3244_v35 = vadd.f32 1e-05, %v3242_v19 }
0x14c6   : > { %v3241_v31 = vpop.xlane.xlu1 %3240 }
0x14c7   : > { %6251 = vrsqrt.f32 %v3244_v35  ;;  %v3243_v25 = vmul.f32 0.015625, %v3241_v31 }
0x14c9   : > { %v3245_v13 = vadd.f32 1e-05, %v3243_v25 }
0x14cb   : > { %6253 = vrsqrt.f32 %v3245_v13 }
0x14d1   : > { %v6252_v52 = vpop.eup %6251 }
0x14d2   : > { %v3248_v53 = vmul.f32 %v6252_v52, %v3232_v55 }
0x14d4   : > { %v3255_v54 = vmul.f32 %v3254_v62, %v3248_v53 }
0x14d5   : > { %v6254_v9 = vpop.eup %6253 }
0x14d6   : > { %v3249_v39 = vmul.f32 %v6254_v9, %v3233_v58  ;;  %v7549_v7 = vadd.f32 %v3260_v42, %v3255_v54  ;;  %v4916_v58 = vld [vmem:[#allocation7] ss:$0 sm:$0xff] }
0x14d8   : > { %v3256_v59 = vmul.f32 %v3254_v62, %v3249_v39  ;;  %5422 = vmatprep.mubr.msk.f32.mxu0 %vm1421_vm2, %v7549_v7 }
0x14da   : > { %v7553_v2 = vadd.f32 %v3260_v42, %v3256_v59 }
0x14dc   : > { %5423 = vmatmul.mubr.msk.f32.vlgmr.msra.gmra.mrb[10].mxu0 %vm1421_vm2, %v7553_v2 }
0x1522   : > { %v5443_v48 = vpop.f32.mrb[26].mxu1 }
0x1523   : > { %v3452_v10 = vadd.f32 %v5443_v48, %v4919_v3  ;;  %v3446_v55 = vpop.f32.mrb[27].mxu1 }
0x1524   : > { %v3447_v12 = vadd.f32 %v4919_v3, %v3446_v55 }
0x1526   : > { %v7557_v20 = vpack.i.bf16 %v3452_v10, %v3447_v12  ;;  %v5831_v22 = vpack.c.bf16 %v3452_v10, %v3447_v12 }
0x1528   : > { %6194 = vrot.lane.b32.xlu0 %v7557_v20, %s6749_s10  ;;  %5833 = vmatprep.subr.msk.bf16.mxu0 %vm7284_vm4, %v5831_v22 }
0x1529   : > { %5836 = vmatpush3.bf16.xpose.msk.msra.mxu0 %vm7284_vm4, %v5831_v22 }
0x159a   : > { %v6195_v16 = vpop.permute.xlu0 %6194 }
0x159b   : > { %v6197_v47 = vunpack.i.h.bf16 %v6195_v16  ;;  %v6196_v50 = vunpack.i.l.bf16 %v6195_v16 }
0x159d   : > { %v5841_v19 = vpack.c.bf16 %v6197_v47, %v6196_v50  ;;  %v3462_v50 = vld [vmem:[#allocation12 + $0x38] sm:$0xff] }
0x15af   : > { %v5424_v24 = vpop.f32.mrb[10].mxu0 }
0x15b0   : > { %v3350_v28 = vpop.f32.mrb[11].mxu0  ;;  %v3356_v33 = vadd.f32 %v5424_v24, %v4916_v58 }
0x15b1   : > { %v3351_v32 = vadd.f32 %v4916_v58, %v3350_v28 }
0x15b3   : > { %5448 = vmatprep.mubr.msk.f32.mxu0 %vm1519_vm3, %v3351_v32 }
0x15b4   : > { %5449 = vmatmul.mubr.msk.f32.vlgmr.msra.gmra.mrb[12].mxu0 %vm1519_vm3, %v3356_v33 }
0x1687   : > { %v5450_v17 = vpop.f32.mrb[12].mxu0 }
0x1688   : > { %v3541_v14 = vpop.f32.mrb[13].mxu0  ;;  %v3551_v37 = vmul.f32 0.17677669, %v5450_v17 }
0x1689   : > { %v3550_v60 = vmul.f32 0.17677669, %v3541_v14 }
0x168a   : > { %v3553_v43 = vadd.f32 %v3551_v37, %v7297_v29 }
0x168b   : > { %v3552_v0 = vadd.f32 %v3550_v60, %v7297_v29 }
0x168c   : > { %v3557_v15 = vsel %vm1613_vm6, %v3553_v43, -inf }
0x168d   : > { %v3554_v57 = vsel %vm1613_vm6, %v3552_v0, -inf }
0x168e   : > { %3555 = vmax.xlane.f32.xlu1 %v3554_v57 }
0x1692   : > { %3558 = vmax.xlane.f32.xlu1 %v3557_v15 }
0x16a3   : > { %6189 = vrot.lane.b32.xlu1 %v7557_v20, %s6747_s1  ;;  %s7790_s1 = sld [smem:[#allocation32_spill]] }
0x16a7   : > { %3663 = vrot.lane.b32.xlu1 %v3351_v32, %s6749_s10 }
0x171b   : > { %v3556_v63 = vpop.xlane.xlu1 %3555 }
0x171c   : > { %v3560_v36 = vsub.f32 %v3552_v0, %v3556_v63 }
0x171e   : > { %v3562_v18 = vmul.f32 1.442695, %v3560_v36  ;;  %v3459_v36 = vld [vmem:[#allocation12 + $0x20] sm:$0xff] }
0x171f   : > { %v3559_v21 = vpop.xlane.xlu1 %3558 }
0x1720   : > { %v3561_v6 = vsub.f32 %v3553_v43, %v3559_v21  ;;  %v3460_v21 = vld [vmem:[#allocation12 + $0x28] sm:$0xff] }
0x1722   : > { %v3564_v40 = vmul.f32 1.442695, %v3561_v6 }
0x1723   : > { %v6190_v61 = vpop.permute.xlu1 %6189 }
0x1724   : > { %6255 = vpow2.f32 %v3564_v40  ;;  %v6192_v30 = vunpack.i.h.bf16 %v6190_v61  ;;  %v6191_v49 = vunpack.i.l.bf16 %v6190_v61  ;;  %v5851_v40 = vpack.c.bf16 %v3460_v21, %v3459_v36  ;;  %v3461_v61 = vld [vmem:[#allocation12 + $0x30] sm:$0xff] }
0x1725   : > { %6257 = vpow2.f32 %v3562_v18 }
0x1726   : > { %v5837_v26 = vpack.c.bf16 %v6192_v30, %v6191_v49 }
0x1727   : > { %v3664_v51 = vpop.permute.xlu1 %3663 }
0x1728   : > { %5838 = vmatprep.subr.bf16.mxu0 %v5837_v26 }
0x1729   : > { %5840 = vmatpush3.bf16.msra.mxu0 %v5837_v26  ;;  %v5855_v26 = vpack.c.bf16 %v3462_v50, %v3461_v61  ;;  %v4066_v61 = vld [vmem:[#allocation15] sm:$0x3] }
0x172a   : > { %5843 = vmatprep.subr.msk.bf16.mxu0 %vm7284_vm4, %v5841_v19  ;;  %v4070_v50 = vrot.slane %v4066_v61, %v7264_v1 }
0x172e   : > { %v6256_v35 = vpop.eup %6255 }
0x172f   : > { %v3569_v31 = vsel %vm1613_vm6, %v6256_v35, 0.0  ;;  %v6258_v25 = vpop.eup %6257 }
0x1730   : > { %3570 = vadd.xlane.f32.xlu1 %v3569_v31  ;;  %v3566_v13 = vsel %vm1613_vm6, %v6258_v25, 0.0 }
0x1734   : > { %3567 = vadd.xlane.f32.xlu1 %v3566_v13  ;;  %v3458_v13 = vld [vmem:[#allocation12 + $0x18] sm:$0xff] }
0x1745   : > { %3665 = vrot.lane.b32.xlu1 %v3356_v33, %s6749_s10  ;;  %s1272_s10 = scalar_lea.vmem %s7790_s1, %s7169_s22 }
0x17bd   : > { %v3571_v62 = vpop.xlane.xlu1 %3570 }
0x17be   : > { %6259 = vrcp.f32 %v3571_v62 }
0x17c1   : > { %v3568_v52 = vpop.xlane.xlu1 %3567 }
0x17c2   : > { %6261 = vrcp.f32 %v3568_v52 }
0x17c5   : > { %v3666_v39 = vpop.permute.xlu1 %3665 }
0x17c8   : > { %v6260_v53 = vpop.eup %6259 }
0x17c9   : > { %v3575_v9 = vmul.f32 %v6260_v53, %v6256_v35  ;;  %v3456_v35 = vld [vmem:[#allocation12 + $0x8] sm:$0xff]  ;;  %v4938_v53 = vld [vmem:[#allocation13] ss:$0 sm:$0xff] }
0x17cc   : > { %v6262_v42 = vpop.eup %6261 }
0x17cd   : > { %v3573_v54 = vmul.f32 %v6262_v42, %v6258_v25  ;;  %v3457_v25 = vld [vmem:[#allocation12 + $0x10] sm:$0xff] }
0x17ce   : > { %v5863_v52 = vpack.c.bf16 %v3458_v13, %v3457_v25 }
0x17cf   : > { %5455 = vmatprep.mubr.msk.f32.mxu0 %vm1613_vm6, %v3573_v54 }
0x17d0   : > { %5456 = vmatmul.mubr.msk.f32.vlgmr.msra.gmra.mrb[14].mxu0 %vm1613_vm6, %v3575_v9 }
0x17d1   : > { %5846 = vmatpush3.bf16.xpose.msk.msra.mxu0 %vm7284_vm4, %v5841_v19  ;;  %5462 = vmatprep.mubr.msk.f32.mxu0 %vm1519_vm3, %v3664_v51  ;;  %v3455_v19 = vld [vmem:[#allocation12] sm:$0xff]  ;;  %vm7645_vm4 = vmpackc.low %vm1421_vm2, %vm1421_vm2 }
0x17d2   : > { %v5859_v31 = vpack.c.bf16 %v3456_v35, %v3455_v19 }
0x17d8   : > { %5463 = vmatmul.mubr.msk.f32.vlgmr.msra.gmra.mrb[16].mxu0 %vm1519_vm3, %v3666_v39 }
0x18a3   : > { %v7585_v59 = vpop.f32.mrb[14].mxu0 }
0x18a4   : > { %v7587_v3 = vpop.f32.mrb[15].mxu0 }
0x18ab   : > { %v5464_v48 = vpop.f32.mrb[16].mxu0 }
0x18ac   : > { %v3755_v10 = vmul.f32 0.17677669, %v5464_v48  ;;  %v3745_v55 = vpop.f32.mrb[17].mxu0 }
0x18ad   : > { %v3754_v12 = vmul.f32 0.17677669, %v3745_v55 }
0x18ae   : > { %v3757_v22 = vadd.f32 %v3755_v10, %v7297_v29 }
0x18af   : > { %v3756_v58 = vadd.f32 %v3754_v12, %v7297_v29 }
0x18b0   : > { %v3761_v23 = vsel %vm1613_vm6, %v3757_v22, -inf }
0x18b1   : > { %3762 = vmax.xlane.f32.xlu0 %v3761_v23  ;;  %v3758_v24 = vsel %vm1613_vm6, %v3756_v58, -inf }
0x18b2   : > { %3759 = vmax.xlane.f32.xlu1 %v3758_v24 }
0x193e   : > { %v3763_v28 = vpop.xlane.xlu0 %3762 }
0x193f   : > { %v3765_v32 = vsub.f32 %v3757_v22, %v3763_v28  ;;  %v3760_v33 = vpop.xlane.xlu1 %3759 }
0x1940   : > { %v3764_v17 = vsub.f32 %v3756_v58, %v3760_v33 }
0x1941   : > { %v3768_v14 = vmul.f32 1.442695, %v3765_v32 }
0x1942   : > { %v3766_v37 = vmul.f32 1.442695, %v3764_v17  ;;  %v4079_v17 = vld [vmem:[#allocation16] sm:$0xff] }
0x1943   : > { %6263 = vpow2.f32 %v3768_v14 }
0x1944   : > { %6265 = vpow2.f32 %v3766_v37  ;;  %v4081_v37 = vld [vmem:[#allocation16 + $0x10] sm:$0xff] }
0x194d   : > { %v6264_v60 = vpop.eup %6263 }
0x194e   : > { %v6266_v0 = vpop.eup %6265  ;;  %v3773_v57 = vsel %vm1613_vm6, %v6264_v60, 0.0 }
0x194f   : > { %3774 = vadd.xlane.f32.xlu1 %v3773_v57  ;;  %v3770_v29 = vsel %vm1613_vm6, %v6266_v0, 0.0  ;;  %v4083_v57 = vld [vmem:[#allocation16 + $0x20] sm:$0xff] }
0x1950   : > { %3771 = vadd.xlane.f32.xlu0 %v3770_v29  ;;  %v4084_v29 = vld [vmem:[#allocation16 + $0x28] sm:$0xff] }
0x1966   : > { %6199 = vrot.lane.b32.xlu0 %v7557_v20, %s6750_s23 }
0x19dc   : > { %v3775_v43 = vpop.xlane.xlu1 %3774 }
0x19dd   : > { %6267 = vrcp.f32 %v3775_v43  ;;  %v3772_v15 = vpop.xlane.xlu0 %3771  ;;  %v5875_v43 = vpack.c.bf16 %v4084_v29, %v4083_v57 }
0x19de   : > { %6269 = vrcp.f32 %v3772_v15  ;;  %v4085_v15 = vld [vmem:[#allocation16 + $0x30] sm:$0xff] }
0x19e1   : > { %v6200_v63 = vpop.permute.xlu0 %6199 }
0x19e2   : > { %v6202_v16 = vunpack.i.h.bf16 %v6200_v63  ;;  %v6201_v6 = vunpack.i.l.bf16 %v6200_v63  ;;  %v4086_v63 = vld [vmem:[#allocation16 + $0x38] sm:$0xff] }
0x19e3   : > { %v5879_v36 = vpack.c.bf16 %v4086_v63, %v4085_v15 }
0x19e4   : > { %v5847_v18 = vpack.c.bf16 %v6202_v16, %v6201_v6 }
0x19e6   : > { %5848 = vmatprep.subr.bf16.mxu1 %v5847_v18 }
0x19e7   : > { %v6268_v47 = vpop.eup %6267  ;;  %5850 = vmatpush3.bf16.msra.mxu1 %v5847_v18 }
0x19e8   : > { %v6270_v30 = vpop.eup %6269  ;;  %5852 = vmatprep.subr.bf16.mxu1 %v5851_v40  ;;  %v3779_v20 = vmul.f32 %v6268_v47, %v6264_v60  ;;  %v4082_v60 = vld [vmem:[#allocation16 + $0x18] sm:$0xff] }
0x19e9   : > { %v3777_v49 = vmul.f32 %v6270_v30, %v6266_v0  ;;  %v5871_v0 = vpack.c.bf16 %v4082_v60, %v4081_v37 }
0x19eb   : > { %5469 = vmatprep.mubr.msk.f32.mxu1 %vm1613_vm6, %v3777_v49 }
0x19ec   : > { %5470 = vmatmul.mubr.msk.f32.vlgmr.msra.gmra.mrb[28].mxu1 %vm1613_vm6, %v3779_v20  ;;  %v4076_v20 = vrot.slane %v4066_v61, %v7269_v4 }
0x19ed   : > { %5854 = vmatpush3.bf16.msra.mxu1 %v5851_v40 }
0x19ee   : > { %5856 = vmatprep.subr.bf16.mxu1 %v5855_v26 }
0x19f1   : > { %5858 = vmatpush3.bf16.msra.mxu1 %v5855_v26 }
0x19f2   : > { %5860 = vmatprep.subr.bf16.mxu1 %v5859_v31 }
0x1abf   : > { %v5471_v51 = vpop.f32.mrb[28].mxu1 }
0x1ac0   : > { %v3858_v62 = vpop.f32.mrb[29].mxu1 }
0x1ac1   : > { %5480 = vmatprep.mubr.msk.f32.mxu1 %vm1519_vm3, %v3858_v62  ;;  %v4230_v62 = vld [vmem:[%s6915_s14 + $0x8] sm:$0xff] }
0x1ac2   : > { %5481 = vmatmul.mubr.msk.f32.vlgmr.msra.gmra.mrb[30].mxu1 %vm1519_vm3, %v5471_v51  ;;  %v4229_v51 = vld [vmem:[%s6915_s14] sm:$0xff] }
0x1ac3   : > { %5862 = vmatpush3.bf16.msra.mxu1 %v5859_v31  ;;  %5491 = vmatprep.mubr.msk.f32.mxu1 %vm1519_vm3, %v7587_v3 }
0x1ac4   : > { %5864 = vmatprep.subr.bf16.mxu1 %v5863_v52 }
0x1ac7   : > { %5866 = vmatpush3.bf16.msra.mxu1 %v5863_v52  ;;  %v5883_v52 = vpack.c.bf16 %v4230_v62, %v4229_v51 }
0x1ac9   : > { %5884 = vmatprep.subr.bf16.mxu1 %v5883_v52 }
0x1aca   : > { %5492 = vmatmul.mubr.msk.f32.vlgmr.msra.gmra.mrb[30].mxu1 %vm1519_vm3, %v7585_v59 }
0x1acb   : > { %5886 = vmatpush3.bf16.msra.mxu1 %v5883_v52 }
0x1b9d   : > { %v5493_v42 = vpop.f32.mrb[30].mxu1 }
0x1b9e   : > { %v4020_v54 = vpop.f32.mrb[31].mxu1  ;;  %v4037_v9 = vadd.f32 %v5493_v42, %v4938_v53  ;;  %v4232_v42 = vld [vmem:[%s6915_s14 + $0x18] sm:$0xff] }
0x1b9f   : > { %v4036_v39 = vadd.f32 %v4938_v53, %v4020_v54  ;;  %v4231_v53 = vld [vmem:[%s6915_s14 + $0x10] sm:$0xff] }
0x1ba0   : > { %v4039_v55 = vadd.f32 %v4037_v9, %v7553_v2  ;;  %v4080_v2 = vld [vmem:[#allocation16 + $0x8] sm:$0xff]  ;;  %v5887_v54 = vpack.c.bf16 %v4232_v42, %v4231_v53  ;;  %v4233_v9 = vld [vmem:[%s6915_s14 + $0x20] sm:$0xff] }
0x1ba1   : > { %v4038_v48 = vadd.f32 %v4036_v39, %v7549_v7  ;;  %v5867_v14 = vpack.c.bf16 %v4080_v2, %v4079_v17  ;;  %v4234_v39 = vld [vmem:[%s6915_s14 + $0x28] sm:$0xff]  ;;  %v4244_v17 = vld [vmem:[%s6915_s14 + $0x78] sm:$0xff] }
0x1ba2   : > { %v4043_v12 = vsel %vm1421_vm2, %v4039_v55, 0.0  ;;  %5888 = vmatprep.subr.bf16.mxu1 %v5887_v54 }
0x1ba3   : > { %v4040_v10 = vsel %vm1421_vm2, %v4038_v48, 0.0  ;;  %5868 = vmatprep.subr.bf16.mxu0 %v5867_v14  ;;  %5890 = vmatpush3.bf16.msra.mxu1 %v5887_v54 }
0x1ba4   : > { %4041 = vadd.xlane.f32.xlu1 %v4040_v10  ;;  %5870 = vmatpush3.bf16.msra.mxu0 %v5867_v14  ;;  %v4235_v10 = vld [vmem:[%s6915_s14 + $0x30] sm:$0xff]  ;;  %v4939_v14 = vld [vmem:[#allocation18] ss:$0 sm:$0xff] }
0x1ba5   : > { %5872 = vmatprep.subr.bf16.mxu0 %v5871_v0 }
0x1ba8   : > { %4044 = vadd.xlane.f32.xlu1 %v4043_v12  ;;  %5874 = vmatpush3.bf16.msra.mxu0 %v5871_v0 }
0x1ba9   : > { %5876 = vmatprep.subr.bf16.mxu0 %v5875_v43 }
0x1bac   : > { %5878 = vmatpush3.bf16.msra.mxu0 %v5875_v43 }
0x1bad   : > { %5880 = vmatprep.subr.bf16.mxu0 %v5879_v36 }
0x1bb0   : > { %5882 = vmatpush3.bf16.msra.mxu0 %v5879_v36 }
0x1bb1   : > { %5917 = vmatprep.subr.msk.bf16.mxu0 %vm7645_vm4, %v7175_v5 }
0x1c31   : > { %v4042_v3 = vpop.xlane.xlu1 %4041 }
0x1c32   : > { %v4046_v22 = vmul.f32 0.015625, %v4042_v3  ;;  %v4237_v3 = vld [vmem:[%s6915_s14 + $0x40] sm:$0xff] }
0x1c34   : > { %v4048_v58 = vsub.f32 %v4038_v48, %v4046_v22  ;;  %v5891_v48 = vpack.c.bf16 %v4234_v39, %v4233_v9  ;;  %v4238_v22 = vld [vmem:[%s6915_s14 + $0x48] sm:$0xff] }
0x1c35   : > { %v4045_v23 = vpop.xlane.xlu1 %4044 }
0x1c36   : > { %v4047_v59 = vmul.f32 0.015625, %v4045_v23  ;;  %v4050_v24 = vmul.f32 %v4048_v58, %v4048_v58  ;;  %5892 = vmatprep.subr.bf16.mxu1 %v5891_v48  ;;  %v4239_v23 = vld [vmem:[%s6915_s14 + $0x50] sm:$0xff] }
0x1c37   : > { %5894 = vmatpush3.bf16.msra.mxu1 %v5891_v48 }
0x1c38   : > { %v4049_v28 = vsub.f32 %v4039_v55, %v4047_v59  ;;  %v4052_v32 = vsel %vm1421_vm2, %v4050_v24, 0.0  ;;  %v4236_v55 = vld [vmem:[%s6915_s14 + $0x38] sm:$0xff] }
0x1c39   : > { %4053 = vadd.xlane.f32.xlu1 %v4052_v32  ;;  %v5895_v12 = vpack.c.bf16 %v4236_v55, %v4235_v10  ;;  %v4240_v59 = vld [vmem:[%s6915_s14 + $0x58] sm:$0xff]  ;;  %v4242_v32 = vld [vmem:[%s6915_s14 + $0x68] sm:$0xff] }
0x1c3a   : > { %v4051_v33 = vmul.f32 %v4049_v28, %v4049_v28  ;;  %v5903_v24 = vpack.c.bf16 %v4240_v59, %v4239_v23 }
0x1c3b   : > { %5896 = vmatprep.subr.bf16.mxu1 %v5895_v12 }
0x1c3c   : > { %v4055_v7 = vsel %vm1421_vm2, %v4051_v33, 0.0  ;;  %5898 = vmatpush3.bf16.msra.mxu1 %v5895_v12 }
0x1c3d   : > { %4056 = vadd.xlane.f32.xlu1 %v4055_v7  ;;  %v4243_v7 = vld [vmem:[%s6915_s14 + $0x70] sm:$0xff] }
0x1c3e   : > { %v5911_v2 = vpack.c.bf16 %v4244_v17, %v4243_v7 }
0x1cc6   : > { %v4054_v21 = vpop.xlane.xlu1 %4053 }
0x1cc7   : > { %v4058_v16 = vmul.f32 0.015625, %v4054_v21 }
0x1cc9   : > { %v4060_v6 = vadd.f32 1e-05, %v4058_v16 }
0x1cca   : > { %v4057_v18 = vpop.xlane.xlu1 %4056 }
0x1ccb   : > { %6271 = vrsqrt.f32 %v4060_v6  ;;  %v4059_v40 = vmul.f32 0.015625, %v4057_v18 }
0x1ccd   : > { %v4061_v47 = vadd.f32 1e-05, %v4059_v40 }
0x1ccf   : > { %6273 = vrsqrt.f32 %v4061_v47 }
0x1cd5   : > { %v6272_v30 = vpop.eup %6271 }
0x1cd6   : > { %v4064_v49 = vmul.f32 %v6272_v30, %v4048_v58  ;;  %v5899_v58 = vpack.c.bf16 %v4238_v22, %v4237_v3 }
0x1cd8   : > { %v4071_v26 = vmul.f32 %v4070_v50, %v4064_v49  ;;  %5900 = vmatprep.subr.bf16.mxu1 %v5899_v58 }
0x1cd9   : > { %v6274_v19 = vpop.eup %6273  ;;  %5902 = vmatpush3.bf16.msra.mxu1 %v5899_v58 }
0x1cda   : > { %v4065_v35 = vmul.f32 %v6274_v19, %v4049_v28  ;;  %v7613_v31 = vadd.f32 %v4076_v20, %v4071_v26  ;;  %5904 = vmatprep.subr.bf16.mxu1 %v5903_v24  ;;  %v4241_v28 = vld [vmem:[%s6915_s14 + $0x60] sm:$0xff] }
0x1cdb   : > { %v5907_v33 = vpack.c.bf16 %v4242_v32, %v4241_v28 }
0x1cdc   : > { %v4072_v25 = vmul.f32 %v4070_v50, %v4065_v35  ;;  %5510 = vmatprep.mubr.msk.f32.mxu0 %vm1421_vm2, %v7613_v31 }
0x1cdd   : > { %5906 = vmatpush3.bf16.msra.mxu1 %v5903_v24 }
0x1cde   : > { %v7617_v13 = vadd.f32 %v4076_v20, %v4072_v25  ;;  %5908 = vmatprep.subr.bf16.mxu1 %v5907_v33 }
0x1ce0   : > { %5511 = vmatmul.mubr.msk.f32.vlgmr.msra.gmra.mrb[18].mxu0 %vm1421_vm2, %v7617_v13 }
0x1ce1   : > { %5910 = vmatpush3.bf16.msra.mxu1 %v5907_v33  ;;  %5920 = vmatpush3.bf16.xpose.msk.msra.mxu0 %vm7645_vm4, %v7175_v5 }
0x1ce2   : > { %5912 = vmatprep.subr.bf16.mxu1 %v5911_v2  ;;  %5923 = vmatprep.subr.msk.bf16.mxu0 %vm7645_vm4, %v7179_v8 }
0x1ce5   : > { %5914 = vmatpush3.bf16.msra.mxu1 %v5911_v2 }
0x1ce9   : > { %5926 = vmatpush3.bf16.xpose.msk.msra.mxu0 %vm7645_vm4, %v7179_v8 }
0x1cea   : > { %5929 = vmatprep.subr.msk.bf16.mxu0 %vm7645_vm4, %v7186_v11 }
0x1cf1   : > { %5932 = vmatpush3.bf16.xpose.msk.msra.mxu0 %vm7645_vm4, %v7186_v11 }
0x1cf2   : > { %5935 = vmatprep.subr.msk.bf16.mxu0 %vm7645_vm4, %v7202_v27 }
0x1cf9   : > { %5938 = vmatpush3.bf16.xpose.msk.msra.mxu0 %vm7645_vm4, %v7202_v27 }
0x1cfa   : > { %5941 = vmatprep.subr.msk.bf16.mxu0 %vm7645_vm4, %v7210_v34 }
0x1d01   : > { %5944 = vmatpush3.bf16.xpose.msk.msra.mxu0 %vm7645_vm4, %v7210_v34 }
0x1d02   : > { %5947 = vmatprep.subr.msk.bf16.mxu0 %vm7645_vm4, %v7216_v38 }
0x1d09   : > { %5950 = vmatpush3.bf16.xpose.msk.msra.mxu0 %vm7645_vm4, %v7216_v38 }
0x1d0a   : > { %5953 = vmatprep.subr.msk.bf16.mxu0 %vm7645_vm4, %v7222_v41 }
0x1d11   : > { %5956 = vmatpush3.bf16.xpose.msk.msra.mxu0 %vm7645_vm4, %v7222_v41 }
0x1d12   : > { %5959 = vmatprep.subr.msk.bf16.mxu0 %vm7645_vm4, %v7228_v44 }
0x1d19   : > { %5962 = vmatpush3.bf16.xpose.msk.msra.mxu0 %vm7645_vm4, %v7228_v44 }
0x1db3   : > { %v5512_v37 = vpop.f32.mrb[18].mxu0 }
0x1db4   : > { %v4172_v60 = vadd.f32 %v5512_v37, %v4939_v14  ;;  %v4166_v0 = vpop.f32.mrb[19].mxu0 }
0x1db5   : > { %v4167_v57 = vadd.f32 %v4939_v14, %v4166_v0 }
0x1db6   : > { %v4178_v29 = vmul.f32 0.70710677, %v4172_v60 }
0x1db7   : > { %v4177_v43 = vmul.f32 0.70710677, %v4167_v57  ;;  %v4175_v37 = vmul.f32 0.5, %v4167_v57 }
0x1db8   : > { %v4184_v15 = vand.u32 2147483647, %v4178_v29  ;;  %vm4180_vm1 = vcmp.ge.f32.partialorder %v4178_v29, 0.0 }
0x1db9   : > { %v4183_v63 = vand.u32 2147483647, %v4177_v43  ;;  %vm4179_vm3 = vcmp.ge.f32.partialorder %v4177_v43, 0.0  ;;  %v4182_v32 = vsel %vm4180_vm1, 1.0, %v6751_v45  ;;  %v4942_v43 = vld [vmem:[#allocation19] ss:$0 sm:$0xff] }
0x1dba   : > { %v4186_v36 = vmul.f32 0.3275911, %v4184_v15  ;;  %v4212_v18 = vsub.f32 0.0, %v4184_v15  ;;  %v4181_v17 = vsel %vm4179_vm3, 1.0, %v6751_v45 }
0x1dbb   : > { %v4185_v21 = vmul.f32 0.3275911, %v4183_v63  ;;  %v4211_v40 = vsub.f32 0.0, %v4183_v63 }
0x1dbc   : > { %v4188_v16 = vadd.f32 1.0, %v4186_v36  ;;  %v4214_v61 = vmul.f32 %v4212_v18, %v4184_v15  ;;  %v4176_v15 = vmul.f32 0.5, %v4172_v60 }
0x1dbd   : > { %v4187_v6 = vadd.f32 1.0, %v4185_v21  ;;  %v4213_v49 = vmul.f32 %v4211_v40, %v4183_v63 }
0x1dbe   : > { %6275 = vrcp.f32 %v4188_v16  ;;  %v4217_v19 = vmul.f32 1.442695, %v4214_v61  ;;  %v1281_v61 = vld [vmem:[%s1272_s10 + $0x8] sm:$0xff] }
0x1dbf   : > { %6277 = vrcp.f32 %v4187_v6  ;;  %v4215_v51 = vmul.f32 1.442695, %v4213_v49  ;;  %vm4536_vm6 = vcmp.ne.s32.totalorder %v1281_v61, 1  ;;  %vm4538_vm7 = vcmp.ge.s32.totalorder %v1281_v61, 0 }
0x1dc0   : > { %6279 = vpow2.f32 %v4217_v19  ;;  %v4357_v19 = vld [vmem:[#allocation21] sm:$0x3]  ;;  %vm4540_vm10 = vmand %vm4536_vm6, %vm4538_vm7 }
0x1dc1   : > { %6281 = vpow2.f32 %v4215_v51 }
0x1dc8   : > { %v6276_v47 = vpop.eup %6275 }
0x1dc9   : > { %v6278_v50 = vpop.eup %6277  ;;  %v4194_v30 = vmul.f32 1.0614054, %v6276_v47 }
0x1dca   : > { %v4193_v20 = vmul.f32 1.0614054, %v6278_v50  ;;  %v6280_v22 = vpop.eup %6279 }
0x1dcb   : > { %v4196_v26 = vadd.f32 -1.4531521, %v4194_v30  ;;  %v6282_v23 = vpop.eup %6281 }
0x1dcc   : > { %v4195_v35 = vadd.f32 -1.4531521, %v4193_v20 }
0x1dcd   : > { %v4198_v25 = vmul.f32 %v6276_v47, %v4196_v26 }
0x1dce   : > { %v4197_v62 = vmul.f32 %v6278_v50, %v4195_v35  ;;  %v4361_v35 = vrot.slane %v4357_v19, %v7264_v1 }
0x1dcf   : > { %v4200_v52 = vadd.f32 1.4214138, %v4198_v25 }
0x1dd0   : > { %v4199_v53 = vadd.f32 1.4214138, %v4197_v62  ;;  %v4367_v62 = vrot.slane %v4357_v19, %v7269_v4 }
0x1dd1   : > { %v4202_v42 = vmul.f32 %v6276_v47, %v4200_v52 }
0x1dd2   : > { %v4201_v54 = vmul.f32 %v6278_v50, %v4199_v53 }
0x1dd3   : > { %v4204_v9 = vadd.f32 -0.28449672, %v4202_v42 }
0x1dd4   : > { %v4203_v39 = vadd.f32 -0.28449672, %v4201_v54 }
0x1dd5   : > { %v4206_v48 = vmul.f32 %v6276_v47, %v4204_v9 }
0x1dd6   : > { %v4205_v10 = vmul.f32 %v6278_v50, %v4203_v39 }
0x1dd7   : > { %v4208_v55 = vadd.f32 0.2548296, %v4206_v48 }
0x1dd8   : > { %v4207_v12 = vadd.f32 0.2548296, %v4205_v10 }
0x1dd9   : > { %v4210_v3 = vmul.f32 %v6276_v47, %v4208_v55  ;;  %v1280_v55 = vld [vmem:[%s1272_s10] sm:$0xff] }
0x1dda   : > { %v4209_v58 = vmul.f32 %v6278_v50, %v4207_v12  ;;  %vm4535_vm8 = vcmp.ne.s32.totalorder %v1280_v55, 1  ;;  %vm4537_vm9 = vcmp.ge.s32.totalorder %v1280_v55, 0 }
0x1ddb   : > { %v4220_v59 = vmul.f32 %v6280_v22, %v4210_v3  ;;  %vm4539_vm11 = vmand %vm4535_vm8, %vm4537_vm9 }
0x1ddc   : > { %v4219_v24 = vmul.f32 %v6282_v23, %v4209_v58 }
0x1ddd   : > { %v4222_v28 = vsub.f32 1.0, %v4220_v59 }
0x1dde   : > { %v4221_v33 = vsub.f32 1.0, %v4219_v24 }
0x1ddf   : > { %v4224_v7 = vmul.f32 %v4222_v28, %v4182_v32 }
0x1de0   : > { %v4223_v2 = vmul.f32 %v4221_v33, %v4181_v17 }
0x1de1   : > { %v4226_v14 = vadd.f32 1.0, %v4224_v7 }
0x1de2   : > { %v4225_v0 = vadd.f32 1.0, %v4223_v2 }
0x1de3   : > { %v4228_v36 = vmul.f32 %v4226_v14, %v4176_v15 }
0x1de4   : > { %v4227_v63 = vmul.f32 %v4225_v0, %v4175_v37 }
0x1de6   : > { %5545 = vmatprep.mubr.f32.mxu1 %v4227_v63 }
0x1de7   : > { %5546 = vmatmul.mubr.f32.vlgmr.msra.gmra.mrb[32].mxu1 %v4228_v36 }
0x1eba   : > { %v5547_v29 = vpop.f32.mrb[32].mxu1 }
0x1ebb   : > { %v4311_v21 = vpop.f32.mrb[33].mxu1  ;;  %v4321_v16 = vadd.f32 %v5547_v29, %v7617_v13 }
0x1ebc   : > { %v4320_v6 = vadd.f32 %v4311_v21, %v7613_v31  ;;  %v4962_v21 = vsel %vm4540_vm10, 1.0, %v6746_v56 }
0x1ebd   : > { %v4330_v45 = vadd.f32 %v4942_v43, %v4321_v16  ;;  %v4961_v16 = vsel %vm4539_vm11, 1.0, %v6746_v56 }
0x1ebe   : > { %v4329_v18 = vadd.f32 %v4942_v43, %v4320_v6  ;;  %v4560_v60 = vsel %vm4547_vm12, %v4961_v16, 0.0 }
0x1ebf   : > { %v4334_v57 = vsel %vm1421_vm2, %v4330_v45, 0.0 }
0x1ec0   : > { %v4331_v40 = vsel %vm1421_vm2, %v4329_v18, 0.0 }
0x1ec1   : > { %4332 = vadd.xlane.f32.xlu1 %v4331_v40 }
0x1ec5   : > { %4335 = vadd.xlane.f32.xlu1 %v4334_v57 }
0x1f4e   : > { %v4333_v5 = vpop.xlane.xlu1 %4332 }
0x1f4f   : > { %v4337_v8 = vmul.f32 0.015625, %v4333_v5  ;;  %v4561_v5 = vsel %vm4547_vm12, %v4962_v21, 0.0 }
0x1f51   : > { %v4339_v11 = vsub.f32 %v4329_v18, %v4337_v8 }
0x1f52   : > { %v4336_v27 = vpop.xlane.xlu1 %4335 }
0x1f53   : > { %v4338_v34 = vmul.f32 0.015625, %v4336_v27  ;;  %v4341_v38 = vmul.f32 %v4339_v11, %v4339_v11 }
0x1f55   : > { %v4340_v31 = vsub.f32 %v4330_v45, %v4338_v34  ;;  %v4343_v13 = vsel %vm1421_vm2, %v4341_v38, 0.0 }
0x1f56   : > { %4344 = vadd.xlane.f32.xlu0 %v4343_v13 }
0x1f57   : > { %v4342_v47 = vmul.f32 %v4340_v31, %v4340_v31 }
0x1f59   : > { %v4346_v41 = vsel %vm1421_vm2, %v4342_v47, 0.0 }
0x1f5a   : > { %4347 = vadd.xlane.f32.xlu1 %v4346_v41 }
0x1f6c   : > { %4523 = vperm.xlu0 %6156, %v1281_v61  }
0x1fe3   : > { %v4345_v50 = vpop.xlane.xlu0 %4344 }
0x1fe4   : > { %v4349_v30 = vmul.f32 0.015625, %v4345_v50 }
0x1fe6   : > { %v4351_v44 = vadd.f32 1e-05, %v4349_v30 }
0x1fe7   : > { %v4348_v49 = vpop.xlane.xlu1 %4347 }
0x1fe8   : > { %6283 = vrsqrt.f32 %v4351_v44  ;;  %v4350_v20 = vmul.f32 0.015625, %v4348_v49 }
0x1fea   : > { %v4352_v26 = vadd.f32 1e-05, %v4350_v20 }
0x1feb   : > { %v4524_v28 = vpop.permute.xlu0 %4523 }
0x1fec   : > { %6285 = vrsqrt.f32 %v4352_v26  ;;  %vm4526_vm5 = vcmp.eq.s32.totalorder %v7233_v46, %v4524_v28 }
0x1ff2   : > { %v6284_v25 = vpop.eup %6283 }
0x1ff3   : > { %v4355_v51 = vmul.f32 %v6284_v25, %v4339_v11  ;;  %v4562_v11 = vadd.f32 %v4561_v5, %v4560_v60 }
0x1ff5   : > { %v4362_v52 = vmul.f32 %v4361_v35, %v4355_v51 }
0x1ff6   : > { %v6286_v53 = vpop.eup %6285 }
0x1ff7   : > { %v4356_v42 = vmul.f32 %v6286_v53, %v4340_v31  ;;  %v4368_v54 = vadd.f32 %v4367_v62, %v4362_v52 }
0x1ff9   : > { %v4363_v9 = vmul.f32 %v4361_v35, %v4356_v42  ;;  %5580 = vmatprep.mubr.msk.f32.mxu0 %vm1421_vm2, %v4368_v54 }
0x1ffb   : > { %v4369_v39 = vadd.f32 %v4367_v62, %v4363_v9 }
0x1ffd   : > { %5581 = vmatmul.mubr.msk.f32.vlgmr.msra.gmra.mrb[20].mxu0 %vm1421_vm2, %v4369_v39 }
0x20d0   : > { %v5582_v48 = vpop.f32.mrb[20].mxu0 }
0x20d1   : > { %4501 = vmax.xlane.f32.xlu1 %v5582_v48  ;;  %v4490_v10 = vpop.f32.mrb[21].mxu0  ;;  %v4528_v33 = vsel %vm4526_vm5, %v5582_v48, 0.0 }
0x20d5   : > { %4499 = vmax.xlane.f32.xlu1 %v4490_v10 }
0x20e6   : > { %4520 = vperm.xlu1 %6172, %v1280_v55  }
0x215e   : > { %v4502_v1 = vpop.xlane.xlu1 %4501 }
0x215f   : > { %v4504_v12 = vsub.f32 %v5582_v48, %v4502_v1 }
0x2161   : > { %v4507_v3 = vmul.f32 1.442695, %v4504_v12 }
0x2162   : > { %v4500_v4 = vpop.xlane.xlu1 %4499 }
0x2163   : > { %6287 = vpow2.f32 %v4507_v3  ;;  %v4503_v22 = vsub.f32 %v4490_v10, %v4500_v4 }
0x2165   : > { %v4505_v58 = vmul.f32 1.442695, %v4503_v22 }
0x2166   : > { %v4521_v59 = vpop.permute.xlu1 %4520 }
0x2167   : > { %6289 = vpow2.f32 %v4505_v58  ;;  %vm4525_vm2 = vcmp.eq.s32.totalorder %v7233_v46, %v4521_v59 }
0x2168   : > { %v4527_v32 = vsel %vm4525_vm2, %v4490_v10, 0.0 }
0x216d   : > { %v6288_v23 = vpop.eup %6287 }
0x216e   : > { %4511 = vadd.xlane.f32.xlu0 %v6288_v23 }
0x2171   : > { %v6290_v24 = vpop.eup %6289 }
0x2172   : > { %4509 = vadd.xlane.f32.xlu1 %v6290_v24 }
0x2176   : > { %4529 = vadd.xlane.f32.xlu1 %v4527_v32 }
0x217a   : > { %4531 = vadd.xlane.f32.xlu1 %v4528_v33 }
0x21fb   : > { %v4512_v7 = vpop.xlane.xlu0 %4511 }
0x21fc   : > { %6291 = vlog2.f32 %v4512_v7 }
0x21ff   : > { %v4510_v17 = vpop.xlane.xlu1 %4509 }
0x2200   : > { %6293 = vlog2.f32 %v4510_v17 }
0x2203   : > { %v4530_v2 = vpop.xlane.xlu1 %4529 }
0x2206   : > { %v6292_v14 = vpop.eup %6291 }
0x2207   : > { %v4516_v37 = vmul.f32 0.6931472, %v6292_v14  ;;  %v4532_v63 = vpop.xlane.xlu1 %4531 }
0x2209   : > { %v4518_v0 = vadd.f32 %v4516_v37, %v4502_v1 }
0x220a   : > { %v6294_v15 = vpop.eup %6293 }
0x220b   : > { %v4514_v36 = vmul.f32 0.6931472, %v6294_v15  ;;  %v4534_v29 = vsub.f32 %v4518_v0, %v4532_v63 }
0x220d   : > { %v4517_v43 = vadd.f32 %v4514_v36, %v4500_v4  ;;  %v4546_v18 = vmul.f32 %v4962_v21, %v4534_v29 }
0x220f   : > { %v4533_v6 = vsub.f32 %v4517_v43, %v4530_v2  ;;  %v4549_v57 = vsel %vm4547_vm12, %v4546_v18, 0.0 }
0x2211   : > { %v4545_v40 = vmul.f32 %v4961_v16, %v4533_v6 }
0x2213   : > { %v4548_v45 = vsel %vm4547_vm12, %v4545_v40, 0.0 }
0x2214   : > { %v4550_v8 = vadd.f32 %v4549_v57, %v4548_v45 }
0x2216   : > { %4551 = vadd.xlane.f32.xlu1 %v4550_v8 }
0x221a   : > { %4563 = vadd.xlane.f32.xlu1 %v4562_v11 }
0x22a3   : > { %v4552_v27 = vpop.xlane.xlu1 %4551 }
0x22a4   : > { %v4553_v34 = vrot.slane %v4552_v27, 4 }
0x22a6   : > { %v4554_v38 = vadd.f32 %v4553_v34, %v4552_v27 }
0x22a7   : > { %v4564_v31 = vpop.xlane.xlu1 %4563 }
0x22a8   : > { %v4555_v13 = vrot.slane %v4554_v38, 2  ;;  %v4565_v47 = vrot.slane %v4564_v31, 4 }
0x22aa   : > { %v4566_v41 = vadd.f32 %v4565_v47, %v4564_v31  ;;  %v4556_v56 = vadd.f32 %v4555_v13, %v4554_v38 }
0x22ac   : > { %v4567_v61 = vrot.slane %v4566_v41, 2  ;;  %v4557_v50 = vrot.slane %v4556_v56, 1 }
0x22ae   : > { %v4568_v30 = vadd.f32 %v4567_v61, %v4566_v41  ;;  %v4558_v44 = vadd.f32 %v4557_v50, %v4556_v56 }
0x22b0   : > { %5969 = vpush %v4558_v44  ;;  %v4569_v49 = vrot.slane %v4568_v30, 1 }
0x22b2   : > { %v4570_v20 = vadd.f32 %v4569_v49, %v4568_v30 }
0x22b4   : > { %5971 = vpush %v4570_v20 }
0x22e1   : > { %s5970_s22 = spop %5969 }
0x22e2   : > { %v4573_v26 = vstv %s5970_s22 }
0x22e3   : > { %v4574_v35 = vsel %vm4572_vm13, %v4573_v26, 0.0 }
0x22e5   : > { %s5972_s23 = spop %5971 }
0x22e6   : > { %v4576_v19 = vstv %s5972_s23 }
0x22e7   : > { %v4577_v25 = vsel %vm4575_vm14, %v4576_v19, 0.0 }
0x22e8   : > { %v4578_v51 = vadd.f32 %v4577_v25, %v4574_v35 }
0x22ea   : > { %4579 = vst [vmem:[%s1275_s11] sm:$0x1] %v4578_v51 }
0x22eb PF: > { %s86_s15 = sadd.s32 1, %s6693_s15  }
0x22ec   : > { %p83_p2 = scmp.ge.s32.totalorder %s86_s15, 4  }
0x22ee   :  { %85 = sbr.rel (!%p83_p2) target bundleno = 61 (0x3d), region = 285 }
0x22f5   :  { %4597 = vsyncpa [#allocation3], 1 }
0x22f6   :  { %4599 = vsyncpa [#allocation3 + $0x1], 1 }
0x22f7   :  { %4600 = vsyncpa [#allocation5], 1 }
0x22f8   :  { %4601 = vsyncpa [#allocation8], 1 }
0x22f9   :  { %4602 = vsyncpa [#allocation11], 1 }
0x22fa   :  { %4603 = vsyncpa [#allocation14], 1 }
0x22fb   :  { %4604 = vsyncpa [#allocation17], 1 }
0x22fc   :  { %4605 = vsyncpa [#allocation20], 1 }

</bundles_post_ra>
